<compile_context>
chip_gen: v5e
topology: v5e:2x2
jax: 0.10.0
libtpu: 0.0.40
codegen_flags: <defaults>
</compile_context>

<pallas_src>
import functools

import jax
import jax.numpy as jnp
from jax import lax
from jax.experimental import pallas as pl
from jax.experimental.pallas import tpu as pltpu

LANE = 128


def _round_up(x, m):
    return ((x + m - 1) // m) * m


def _vmem_limit_bytes(resident_bytes):
    """Explicit VMEM budget: double-buffered resident blocks + headroom."""
    return int(max(32 << 20, min(100 << 20, 2 * resident_bytes + (8 << 20))))


# ---------------------------------------------------------------------------
# GRU cell: two bf16 MXU matmuls (x@Wx + h@Wh), f32 accumulation, four
# 128-lane-aligned gate blocks [r | z | n_x | n_h]; b_ih+b_hh folded for r/z.
# Padded H lanes stay exactly 0 across steps (zero weights/bias, zero h0).
# ---------------------------------------------------------------------------
def _gru_cell(x_bf16, h_f32, wx, wh, bg, h_pad):
    g = (jnp.dot(x_bf16, wx, preferred_element_type=jnp.float32)
         + jnp.dot(h_f32.astype(wh.dtype), wh, preferred_element_type=jnp.float32)
         + bg)
    r = jax.nn.sigmoid(g[:, 0 * h_pad:1 * h_pad])
    z = jax.nn.sigmoid(g[:, 1 * h_pad:2 * h_pad])
    n = jnp.tanh(g[:, 2 * h_pad:3 * h_pad] + r * g[:, 3 * h_pad:4 * h_pad])
    return (1.0 - z) * n + z * h_f32


# ---------------------------------------------------------------------------
# Encoder kernel: one GRU direction per leading ("parallel") grid index,
# k time steps per grid iteration (unrolled), hidden carried in VMEM scratch.
# ---------------------------------------------------------------------------
def _bigru_encoder_kernel(xs_ref, wx_ref, wh_ref, bg_ref, hout_ref, h_scr,
                          *, s_len, h_pad):
    sb = pl.program_id(1)
    k = xs_ref.shape[1]

    @pl.when(sb == 0)
    def _init():  # PyTorch GRU default h0 = 0
        h_scr[...] = jnp.zeros_like(h_scr)

    wx = wx_ref[0]          # (E_pad, 4*H_pad) bf16
    wh = wh_ref[0]          # (H_pad, 4*H_pad) bf16
    bg = bg_ref[0]          # (1, 4*H_pad)     f32

    def step(j, h):
        h_new = _gru_cell(xs_ref[0, j], h, wx, wh, bg, h_pad)
        # Mask padded time steps (sequence padded up to a multiple of k).
        return jnp.where(sb * k + j < s_len, h_new, h)

    h_scr[...] = lax.fori_loop(0, k, step, h_scr[...], unroll=True)

    @pl.when(sb == pl.num_programs(1) - 1)
    def _finalize():
        hout_ref[0] = h_scr[...]


# ---------------------------------------------------------------------------
# Decoder kernel: grid = (decode step, vocab tile).
#   v == 0 : gather previous greedy token's embedding (true gather), GRU step.
#   every v: fc projection for this vocab tile + online running (max, argmax).
# ---------------------------------------------------------------------------
def _greedy_decode_kernel(h0_ref, emb_ref, wx_ref, wh_ref, bg_ref,
                          wfc_ref, bfc_ref,
                          logits_ref, hout_ref,
                          x_scr, h_scr, m_scr, idx_scr,
                          *, h_pad, bos_id):
    t = pl.program_id(0)
    v = pl.program_id(1)
    bb = logits_ref.shape[1]
    tv = logits_ref.shape[2]

    @pl.when((v == 0) & (t == 0))
    def _first_step():
        h_scr[...] = h0_ref[...]                                  # encoder hidden
        x_scr[...] = jnp.broadcast_to(emb_ref[pl.ds(bos_id, 1), :], x_scr.shape)

    @pl.when((v == 0) & (t > 0))
    def _feedback_gather():
        # True gather of the previous step's greedy tokens (no one-hot matmul).
        for b in range(bb):
            idx_b = idx_scr[b, 0]
            x_scr[pl.ds(b, 1), :] = emb_ref[pl.ds(idx_b, 1), :]

    @pl.when(v == 0)
    def _gru_step():
        h_new = _gru_cell(x_scr[...].astype(jnp.bfloat16), h_scr[...],
                          wx_ref[...], wh_ref[...], bg_ref[...], h_pad)
        h_scr[...] = h_new
        hout_ref[...] = h_new

    # Vocab-tiled fc projection (bf16 MXU, f32 accumulation).  Padded vocab
    # lanes carry a -1e30 bias so greedy argmax never selects them.
    logits = (jnp.dot(h_scr[...].astype(jnp.bfloat16), wfc_ref[...],
                      preferred_element_type=jnp.float32) + bfc_ref[...])
    logits_ref[0] = logits

    # Online greedy argmax across vocab tiles: running (max, argmax) in VMEM.
    # argmax-in-tile = first lane attaining the tile max (exact f32 equality).
    lane_f = lax.broadcasted_iota(jnp.int32, (bb, tv), 1).astype(jnp.float32)
    m = jnp.max(logits, axis=-1, keepdims=True)
    arg_in_tile = jnp.min(jnp.where(logits == m, lane_f, float(tv)),
                          axis=-1, keepdims=True)
    tile_arg = arg_in_tile.astype(jnp.int32) + v * tv

    @pl.when(v == 0)
    def _argmax_init():
        m_scr[...] = m
        idx_scr[...] = tile_arg

    @pl.when(v > 0)
    def _argmax_merge():
        better = m > m_scr[...]
        m_scr[...] = jnp.where(better, m, m_scr[...])
        idx_scr[...] = jnp.where(better, tile_arg, idx_scr[...])


# ---------------------------------------------------------------------------
# Wrappers
# ---------------------------------------------------------------------------
def _encoder_forward(p, body, k_time=8):
    """EncoderRNN.forward (eval): embedding -> bi-GRU -> h_fwd + h_bwd (padded)."""
    emb, wx, wh, bg = p["emb"], p["wx"], p["wh"], p["bg"]
    b, s_len = body.shape
    e_pad = emb.shape[1]
    h_pad = wh.shape[1]
    k = max(1, min(k_time, s_len))
    s_pad = _round_up(s_len, k)
    nsb = s_pad // k

    # Whole-sequence embedding gather (bf16), laid out time-major; the backward
    # direction gets a pre-reversed copy so both directions stream in order.
    x = jnp.transpose(emb[body], (1, 0, 2))              # (S, B, E_pad) bf16
    xs = jnp.stack([x, x[::-1]], axis=0)                 # (2, S, B, E_pad)
    if s_pad != s_len:
        xs = jnp.pad(xs, ((0, 0), (0, s_pad - s_len), (0, 0), (0, 0)))

    kernel = functools.partial(_bigru_encoder_kernel, s_len=s_len, h_pad=h_pad)

    flops = int(2 * s_len * (2 * b * e_pad * 4 * h_pad
                             + 2 * b * h_pad * 4 * h_pad + 12 * b * h_pad))
    transc = int(2 * s_len * 3 * b * h_pad)
    nbytes = int(xs.size * 2 + wx.size * 2 + wh.size * 2 + bg.size * 4
                 + 2 * b * h_pad * 4)

    resident = (k * b * e_pad * 2 + e_pad * 4 * h_pad * 2 + h_pad * 4 * h_pad * 2
                + 4 * h_pad * 4 + b * h_pad * 4) + b * h_pad * 4

    houts = pl.pallas_call(
        kernel,
        out_shape=jax.ShapeDtypeStruct((2, b, h_pad), jnp.float32),
        grid_spec=pltpu.PrefetchScalarGridSpec(
            num_scalar_prefetch=0,
            grid=(2, nsb),
            in_specs=[
                pl.BlockSpec((1, k, b, e_pad), lambda d, sb: (d, sb, 0, 0)),
                pl.BlockSpec((1, e_pad, 4 * h_pad), lambda d, sb: (d, 0, 0)),
                pl.BlockSpec((1, h_pad, 4 * h_pad), lambda d, sb: (d, 0, 0)),
                pl.BlockSpec((1, 1, 4 * h_pad), lambda d, sb: (d, 0, 0)),
            ],
            out_specs=pl.BlockSpec((1, b, h_pad), lambda d, sb: (d, 0, 0)),
            scratch_shapes=[pltpu.VMEM((b, h_pad), jnp.float32)],
        ),
        compiler_params=pltpu.CompilerParams(
            dimension_semantics=("parallel", "arbitrary"),
            vmem_limit_bytes=_vmem_limit_bytes(resident)),
        cost_estimate=pl.CostEstimate(flops=flops, transcendentals=transc,
                                      bytes_accessed=nbytes),
    )(xs, wx, wh, bg)
    # hidden = h_fwd_final + h_bwd_final   (PyTorch: hidden[0] + hidden[1])
    return houts[0] + houts[1]


def _decoder_greedy(p, h0_pad, max_new_tokens, bos_id, tv=512):
    """Fused greedy decode loop; vocab-tiled fc + online argmax + gather feedback."""
    emb, wx, wh, bg, wfc, bfc = (p["emb"], p["wx"], p["wh"], p["bg"],
                                 p["w_fc"], p["b_fc"])
    b, h_pad = h0_pad.shape
    v_pad, e_pad = emb.shape
    tv = min(tv, v_pad)
    if v_pad % tv:
        tv = v_pad
    nv = v_pad // tv
    t_steps = max_new_tokens

    kernel = functools.partial(_greedy_decode_kernel, h_pad=h_pad, bos_id=bos_id)

    flops = int(t_steps * (2 * b * (e_pad + h_pad) * 4 * h_pad
                           + 2 * b * h_pad * v_pad + 12 * b * h_pad))
    transc = int(t_steps * 3 * b * h_pad)
    nbytes = int(4 * (h0_pad.size + emb.size + bg.size + bfc.size)
                 + 2 * (wx.size + wh.size + wfc.size)
                 + 4 * (t_steps * b * v_pad + b * h_pad))

    resident = (b * h_pad * 4 + v_pad * e_pad * 4
                + e_pad * 4 * h_pad * 2 + h_pad * 4 * h_pad * 2 + 4 * h_pad * 4
                + h_pad * tv * 2 + tv * 4 + b * tv * 4 + b * h_pad * 4
                + b * e_pad * 4 + b * h_pad * 4 + b * 8)

    logits_pad, h_out = pl.pallas_call(
        kernel,
        out_shape=(jax.ShapeDtypeStruct((t_steps, b, v_pad), jnp.float32),
                   jax.ShapeDtypeStruct((b, h_pad), jnp.float32)),
        grid_spec=pltpu.PrefetchScalarGridSpec(
            num_scalar_prefetch=0,
            grid=(t_steps, nv),
            in_specs=[
                pl.BlockSpec((b, h_pad), lambda t, v: (0, 0)),
                pl.BlockSpec((v_pad, e_pad), lambda t, v: (0, 0)),
                pl.BlockSpec((e_pad, 4 * h_pad), lambda t, v: (0, 0)),
                pl.BlockSpec((h_pad, 4 * h_pad), lambda t, v: (0, 0)),
                pl.BlockSpec((1, 4 * h_pad), lambda t, v: (0, 0)),
                pl.BlockSpec((h_pad, tv), lambda t, v: (0, v)),
                pl.BlockSpec((1, tv), lambda t, v: (0, v)),
            ],
            out_specs=(
                pl.BlockSpec((1, b, tv), lambda t, v: (t, 0, v)),
                pl.BlockSpec((b, h_pad), lambda t, v: (0, 0)),
            ),
            scratch_shapes=[pltpu.VMEM((b, e_pad), jnp.float32),   # x (current input emb)
                            pltpu.VMEM((b, h_pad), jnp.float32),   # hidden carry
                            pltpu.VMEM((b, 1), jnp.float32),       # running max
                            pltpu.VMEM((b, 1), jnp.int32)],        # running argmax
        ),
        compiler_params=pltpu.CompilerParams(
            dimension_semantics=("arbitrary", "arbitrary"),
            vmem_limit_bytes=_vmem_limit_bytes(resident)),
        cost_estimate=pl.CostEstimate(flops=flops, transcendentals=transc,
                                      bytes_accessed=nbytes),
    )(h0_pad, emb, wx, wh, bg, wfc, bfc)
    return logits_pad, h_out


@functools.partial(jax.jit, static_argnames=("max_new_tokens", "bos_id",
                                             "vocab_size", "hidden_dim",
                                             "vocab_tile", "time_block"))
def seq2seq_greedy_forward(enc_params, dec_params, body, *, max_new_tokens,
                           bos_id, vocab_size, hidden_dim,
                           vocab_tile=512, time_block=8):
    """Seq2seqRNN.forward (eval, title=None): encoder -> fused greedy decode."""
    h_enc_pad = _encoder_forward(enc_params, body, k_time=time_block)  # (B, H_pad)
    logits_pad, h_out_pad = _decoder_greedy(dec_params, h_enc_pad,
                                            max_new_tokens, bos_id,
                                            tv=vocab_tile)
    logits = jnp.transpose(logits_pad[:, :, :vocab_size], (1, 0, 2))   # (B, T, V)
    new_hidden = h_out_pad[None, :, :hidden_dim]                       # (1, B, H)
    return logits, new_hidden


# ---------------------------------------------------------------------------
# Parameter construction (PyTorch layout) + lane-aligned / bf16 packing
# ---------------------------------------------------------------------------
def init_raw_params(key, vocab_size, emb_dim, hidden_dim, pad_idx):
    """PyTorch-layout parameters (gate order [r|z|n], weight_ih: (3H, in))."""
    ks = jax.random.split(key, 16)
    sc = 0.1

    def normal(k, shape):
        return sc * jax.random.normal(k, shape, jnp.float32)

    enc = {
        "embedding": normal(ks[0], (vocab_size, emb_dim)).at[pad_idx].set(0.0),
        "w_ih_f": normal(ks[1], (3 * hidden_dim, emb_dim)),
        "w_hh_f": normal(ks[2], (3 * hidden_dim, hidden_dim)),
        "b_ih_f": normal(ks[3], (3 * hidden_dim,)),
        "b_hh_f": normal(ks[4], (3 * hidden_dim,)),
        "w_ih_b": normal(ks[5], (3 * hidden_dim, emb_dim)),
        "w_hh_b": normal(ks[6], (3 * hidden_dim, hidden_dim)),
        "b_ih_b": normal(ks[7], (3 * hidden_dim,)),
        "b_hh_b": normal(ks[8], (3 * hidden_dim,)),
    }
    dec = {
        "embedding": normal(ks[9], (vocab_size, emb_dim)).at[pad_idx].set(0.0),
        "w_ih": normal(ks[10], (3 * hidden_dim, emb_dim)),
        "w_hh": normal(ks[11], (3 * hidden_dim, hidden_dim)),
        "b_ih": normal(ks[12], (3 * hidden_dim,)),
        "b_hh": normal(ks[13], (3 * hidden_dim,)),
        "w_fc": normal(ks[14], (vocab_size, hidden_dim)),
        "b_fc": normal(ks[15], (vocab_size,)),
    }
    return enc, dec


def _pack_gru_gates(w_ih, w_hh, b_ih, b_hh, e_pad, h_pad):
    """Pack one GRU cell into Wx:(E_pad,4H_pad), Wh:(H_pad,4H_pad), bg:(1,4H_pad)
    with 128-lane gate blocks [r | z | n_x | n_h] (b_ih+b_hh folded for r/z)."""
    h = w_hh.shape[1]
    e = w_ih.shape[1]
    w_ir, w_iz, w_in = jnp.split(w_ih, 3, axis=0)
    w_hr, w_hz, w_hn = jnp.split(w_hh, 3, axis=0)
    b_ir, b_iz, b_in = jnp.split(b_ih, 3)
    b_hr, b_hz, b_hn = jnp.split(b_hh, 3)

    wx = jnp.zeros((e_pad, 4 * h_pad), jnp.float32)
    wx = wx.at[:e, 0 * h_pad:0 * h_pad + h].set(w_ir.T)
    wx = wx.at[:e, 1 * h_pad:1 * h_pad + h].set(w_iz.T)
    wx = wx.at[:e, 2 * h_pad:2 * h_pad + h].set(w_in.T)

    wh = jnp.zeros((h_pad, 4 * h_pad), jnp.float32)
    wh = wh.at[:h, 0 * h_pad:0 * h_pad + h].set(w_hr.T)
    wh = wh.at[:h, 1 * h_pad:1 * h_pad + h].set(w_hz.T)
    wh = wh.at[:h, 3 * h_pad:3 * h_pad + h].set(w_hn.T)

    bg = jnp.zeros((1, 4 * h_pad), jnp.float32)
    bg = bg.at[0, 0 * h_pad:0 * h_pad + h].set(b_ir + b_hr)
    bg = bg.at[0, 1 * h_pad:1 * h_pad + h].set(b_iz + b_hz)
    bg = bg.at[0, 2 * h_pad:2 * h_pad + h].set(b_in)
    bg = bg.at[0, 3 * h_pad:3 * h_pad + h].set(b_hn)
    return wx, wh, bg


def pack_params(raw_enc, raw_dec, vocab_size, emb_dim, hidden_dim):
    e_pad = _round_up(emb_dim, LANE)
    h_pad = _round_up(hidden_dim, LANE)
    v_pad = _round_up(vocab_size, LANE)
    bf16 = jnp.bfloat16

    def pad_emb(e, dtype):
        out = jnp.zeros((v_pad, e_pad), jnp.float32)
        return out.at[:vocab_size, :emb_dim].set(e).astype(dtype)

    wxf, whf, bgf = _pack_gru_gates(raw_enc["w_ih_f"], raw_enc["w_hh_f"],
                                    raw_enc["b_ih_f"], raw_enc["b_hh_f"],
                                    e_pad, h_pad)
    wxb, whb, bgb = _pack_gru_gates(raw_enc["w_ih_b"], raw_enc["w_hh_b"],
                                    raw_enc["b_ih_b"], raw_enc["b_hh_b"],
                                    e_pad, h_pad)
    enc_p = {
        "emb": pad_emb(raw_enc["embedding"], bf16),              # (V_pad, E_pad) bf16
        "wx": jnp.stack([wxf, wxb]).astype(bf16),                # (2, E_pad, 4H_pad)
        "wh": jnp.stack([whf, whb]).astype(bf16),                # (2, H_pad, 4H_pad)
        "bg": jnp.stack([bgf, bgb]),                             # (2, 1, 4H_pad) f32
    }

    wxd, whd, bgd = _pack_gru_gates(raw_dec["w_ih"], raw_dec["w_hh"],
                                    raw_dec["b_ih"], raw_dec["b_hh"],
                                    e_pad, h_pad)
    w_fc = jnp.zeros((h_pad, v_pad), jnp.float32
                     ).at[:hidden_dim, :vocab_size].set(raw_dec["w_fc"].T).astype(bf16)
    # Padded vocab lanes get a very negative bias so in-kernel greedy argmax
    # never selects them (they are sliced off in the wrapper).  Kept in f32.
    b_fc = jnp.full((1, v_pad), -1e30, jnp.float32
                    ).at[0, :vocab_size].set(raw_dec["b_fc"])
    dec_p = {
        # f32 table: the in-kernel dynamic-row gather stays on a 32-bit layout.
        "emb": pad_emb(raw_dec["embedding"], jnp.float32),
        "wx": wxd.astype(bf16), "wh": whd.astype(bf16), "bg": bgd,
        "w_fc": w_fc, "b_fc": b_fc,
    }
    return enc_p, dec_p


# ---------------------------------------------------------------------------
# Pure-JAX reference of the PyTorch module (eval mode) for correctness checks
# ---------------------------------------------------------------------------
def _gru_cell_ref(x, h, w_ih, w_hh, b_ih, b_hh):
    hd = h.shape[1]
    gi = x @ w_ih.T + b_ih
    gh = h @ w_hh.T + b_hh
    r = jax.nn.sigmoid(gi[:, :hd] + gh[:, :hd])
    z = jax.nn.sigmoid(gi[:, hd:2 * hd] + gh[:, hd:2 * hd])
    n = jnp.tanh(gi[:, 2 * hd:] + r * gh[:, 2 * hd:])
    return (1.0 - z) * n + z * h


def encoder_ref(raw, body):
    emb = raw["embedding"][body]                  # (B, S, E)
    bsz, slen, _ = emb.shape
    hd = raw["w_hh_f"].shape[1]
    hf = jnp.zeros((bsz, hd), jnp.float32)
    hb = jnp.zeros((bsz, hd), jnp.float32)
    for s in range(slen):
        hf = _gru_cell_ref(emb[:, s], hf, raw["w_ih_f"], raw["w_hh_f"],
                           raw["b_ih_f"], raw["b_hh_f"])
        hb = _gru_cell_ref(emb[:, slen - 1 - s], hb, raw["w_ih_b"], raw["w_hh_b"],
                           raw["b_ih_b"], raw["b_hh_b"])
    return hf + hb


def decoder_ref(raw, tokens_in, h0):
    h = h0
    outs = []
    for t in range(tokens_in.shape[1]):
        x = raw["embedding"][tokens_in[:, t]]
        h = _gru_cell_ref(x, h, raw["w_ih"], raw["w_hh"], raw["b_ih"], raw["b_hh"])
        outs.append(h @ raw["w_fc"].T + raw["b_fc"])
    return jnp.stack(outs, axis=1), h


if __name__ == "__main__":
    VOCAB_SIZE, EMB_DIM, HIDDEN_DIM = 200, 32, 32
    BATCH, BODY_LEN, MAX_NEW_TOKENS = 8, 12, 6
    PAD_IDX, BOS_IDX = 0, 1
    VOCAB_TILE, TIME_BLOCK = 128, 8        # V_pad=256 -> 2 vocab tiles; 2 time blocks

    key = jax.random.PRNGKey(0)
    k_params, k_body = jax.random.split(key)
    raw_enc, raw_dec = init_raw_params(k_params, VOCAB_SIZE, EMB_DIM,
                                       HIDDEN_DIM, PAD_IDX)
    # Round parameters to bf16 precision once so the bf16 kernel and the f32
    # reference use identical weight values (only activation rounding differs).
    _round_bf16 = lambda tree: jax.tree_util.tree_map(
        lambda a: a.astype(jnp.bfloat16).astype(jnp.float32), tree)
    raw_enc, raw_dec = _round_bf16(raw_enc), _round_bf16(raw_dec)
    enc_p, dec_p = pack_params(raw_enc, raw_dec, VOCAB_SIZE, EMB_DIM, HIDDEN_DIM)

    body = jax.random.randint(k_body, (BATCH, BODY_LEN), 2, VOCAB_SIZE,
                              dtype=jnp.int32)

    logits, new_hidden = seq2seq_greedy_forward(
        enc_p, dec_p, body, max_new_tokens=MAX_NEW_TOKENS, bos_id=BOS_IDX,
        vocab_size=VOCAB_SIZE, hidden_dim=HIDDEN_DIM,
        vocab_tile=VOCAB_TILE, time_block=TIME_BLOCK)
    jax.block_until_ready((logits, new_hidden))

    assert logits.shape == (BATCH, MAX_NEW_TOKENS, VOCAB_SIZE)
    assert new_hidden.shape == (1, BATCH, HIDDEN_DIM)

    # ---- correctness vs pure-JAX reference of the PyTorch module (eval) ----
    enc_pad = jax.jit(_encoder_forward, static_argnames=("k_time",))(
        enc_p, body, k_time=TIME_BLOCK)                          # (B, H_pad)
    h_enc_kernel = enc_pad[:, :HIDDEN_DIM]
    h_enc_ref = encoder_ref(raw_enc, body)
    assert jnp.allclose(h_enc_kernel, h_enc_ref, atol=1e-2, rtol=1e-2), \
        "encoder mismatch"

    # Teacher-force the reference with the tokens the kernel actually consumed
    # (<bos>, then its own greedy argmax) -> deterministic comparison.
    greedy_tokens = jnp.argmax(logits, axis=-1).astype(jnp.int32)       # (B, T)
    tokens_in = jnp.concatenate(
        [jnp.full((BATCH, 1), BOS_IDX, jnp.int32), greedy_tokens[:, :-1]], axis=1)
    logits_ref, h_ref = decoder_ref(raw_dec, tokens_in, h_enc_kernel)
    assert jnp.allclose(logits, logits_ref, atol=1e-2, rtol=1e-2), \
        "decoder logits mismatch"
    assert jnp.allclose(new_hidden[0], h_ref, atol=1e-2, rtol=1e-2), \
        "decoder hidden mismatch"

    print("KERNEL_OK")
</pallas_src>

<mosaic_0001>
module attributes {stable_mosaic.version = 11 : i64} {
  func.func @_bigru_encoder_kernel(%arg0: i32, %arg1: i32, %arg2: memref<1x8x8x128xbf16, #tpu.memory_space<vmem>>, %arg3: memref<1x128x512xbf16, #tpu.memory_space<vmem>>, %arg4: memref<1x128x512xbf16, #tpu.memory_space<vmem>>, %arg5: memref<1x1x512xf32, #tpu.memory_space<vmem>>, %arg6: memref<1x8x128xf32, #tpu.memory_space<vmem>>, %arg7: memref<8x128xf32, #tpu.memory_space<vmem>>) attributes {dimension_semantics = [#tpu.dimension_semantics<parallel>, #tpu.dimension_semantics<arbitrary>], iteration_bounds = array<i64: 2, 2>, scalar_prefetch = 0 : i64, scratch_operands = 1 : i64, tpu.core_type = #tpu.core_type<tc>, window_params = [{transform_indices = @transform_0, window_bounds = array<i64: 1, 8, 8, 128>}, {transform_indices = @transform_1, window_bounds = array<i64: 1, 128, 512>}, {transform_indices = @transform_2, window_bounds = array<i64: 1, 128, 512>}, {transform_indices = @transform_3, window_bounds = array<i64: 1, 1, 512>}, {transform_indices = @transform_4, window_bounds = array<i64: 1, 8, 128>}]} {
    %c0_i32 = arith.constant 0 : i32
    %0 = arith.cmpi eq, %arg1, %c0_i32 : i32
    %1 = arith.extui %0 : i1 to i32
    %c0_i32_0 = arith.constant 0 : i32
    %2 = arith.cmpi ne, %1, %c0_i32_0 : i32
    scf.if %2 {
      %cst_94 = arith.constant 0.000000e+00 : f32
      %294 = vector.broadcast %cst_94 : f32 to vector<8x128xf32>
      %c0_95 = arith.constant 0 : index
      %c0_96 = arith.constant 0 : index
      %295 = vector.load %arg7[%c0_95, %c0_96] : memref<8x128xf32, #tpu.memory_space<vmem>>, vector<8x128xf32>
      tpu.vector_store %arg7[%c0_95, %c0_96], %294 {strides = array<i32>} : memref<8x128xf32, #tpu.memory_space<vmem>>, vector<8x128xf32>,
    } else {
    }
    %c0 = arith.constant 0 : index
    %c0_1 = arith.constant 0 : index
    %c0_2 = arith.constant 0 : index
    %3 = vector.load %arg3[%c0, %c0_1, %c0_2] : memref<1x128x512xbf16, #tpu.memory_space<vmem>>, vector<1x128x512xbf16>
    %4 = vector.shape_cast %3 : vector<1x128x512xbf16> to vector<128x512xbf16>
    %c0_3 = arith.constant 0 : index
    %c0_4 = arith.constant 0 : index
    %c0_5 = arith.constant 0 : index
    %5 = vector.load %arg4[%c0_3, %c0_4, %c0_5] : memref<1x128x512xbf16, #tpu.memory_space<vmem>>, vector<1x128x512xbf16>
    %6 = vector.shape_cast %5 : vector<1x128x512xbf16> to vector<128x512xbf16>
    %c0_6 = arith.constant 0 : index
    %c0_7 = arith.constant 0 : index
    %c0_8 = arith.constant 0 : index
    %7 = vector.load %arg5[%c0_6, %c0_7, %c0_8] : memref<1x1x512xf32, #tpu.memory_space<vmem>>, vector<1x1x512xf32>
    %8 = vector.shape_cast %7 : vector<1x1x512xf32> to vector<1x512xf32>
    %c0_9 = arith.constant 0 : index
    %c0_10 = arith.constant 0 : index
    %9 = vector.load %arg7[%c0_9, %c0_10] : memref<8x128xf32, #tpu.memory_space<vmem>>, vector<8x128xf32>
    %c0_i32_11 = arith.constant 0 : i32
    %c0_12 = arith.constant 0 : index
    %10 = arith.index_cast %c0_i32_11 : i32 to index
    %c0_13 = arith.constant 0 : index
    %c0_14 = arith.constant 0 : index
    %11 = vector.load %arg2[%c0_12, %10, %c0_13, %c0_14] : memref<1x8x8x128xbf16, #tpu.memory_space<vmem>>, vector<1x1x8x128xbf16>
    %12 = vector.shape_cast %11 : vector<1x1x8x128xbf16> to vector<8x128xbf16>
    %cst = arith.constant dense<0.000000e+00> : vector<8x512xf32>
    %13 = tpu.matmul %12, %4, %cst {dimension_numbers = #tpu.dot_dimension_numbers<[1], [0], [0], [1], [0, 0, 1, 1], [], []>} : vector<8x128xbf16>, vector<128x512xbf16>, vector<8x512xf32> -> vector<8x512xf32>
    %14 = arith.truncf %9 : vector<8x128xf32> to vector<8x128xbf16>
    %cst_15 = arith.constant dense<0.000000e+00> : vector<8x512xf32>
    %15 = tpu.matmul %14, %6, %cst_15 {dimension_numbers = #tpu.dot_dimension_numbers<[1], [0], [0], [1], [0, 0, 1, 1], [], []>} : vector<8x128xbf16>, vector<128x512xbf16>, vector<8x512xf32> -> vector<8x512xf32>
    %16 = arith.addf %13, %15 : vector<8x512xf32>
    %17 = vector.broadcast %8 : vector<1x512xf32> to vector<8x512xf32>
    %18 = arith.addf %16, %17 : vector<8x512xf32>
    %19 = vector.extract_strided_slice %18 {offsets = [0, 0], sizes = [8, 128], strides = [1, 1]} : vector<8x512xf32> to vector<8x128xf32>
    %20 = arith.negf %19 : vector<8x128xf32>
    %21 = math.exp %20 : vector<8x128xf32>
    %cst_16 = arith.constant 1.000000e+00 : f32
    %22 = vector.broadcast %cst_16 : f32 to vector<8x128xf32>
    %23 = arith.addf %22, %21 : vector<8x128xf32>
    %24 = arith.divf %22, %23 : vector<8x128xf32>
    %25 = vector.extract_strided_slice %18 {offsets = [0, 128], sizes = [8, 128], strides = [1, 1]} : vector<8x512xf32> to vector<8x128xf32>
    %26 = arith.negf %25 : vector<8x128xf32>
    %27 = math.exp %26 : vector<8x128xf32>
    %cst_17 = arith.constant 1.000000e+00 : f32
    %28 = vector.broadcast %cst_17 : f32 to vector<8x128xf32>
    %29 = arith.addf %28, %27 : vector<8x128xf32>
    %30 = arith.divf %28, %29 : vector<8x128xf32>
    %31 = vector.extract_strided_slice %18 {offsets = [0, 256], sizes = [8, 128], strides = [1, 1]} : vector<8x512xf32> to vector<8x128xf32>
    %32 = vector.extract_strided_slice %18 {offsets = [0, 384], sizes = [8, 128], strides = [1, 1]} : vector<8x512xf32> to vector<8x128xf32>
    %33 = arith.mulf %24, %32 : vector<8x128xf32>
    %34 = arith.addf %31, %33 : vector<8x128xf32>
    %35 = math.tanh %34 : vector<8x128xf32>
    %cst_18 = arith.constant 1.000000e+00 : f32
    %36 = vector.broadcast %cst_18 : f32 to vector<8x128xf32>
    %37 = arith.subf %36, %30 : vector<8x128xf32>
    %38 = arith.mulf %37, %35 : vector<8x128xf32>
    %39 = arith.mulf %30, %9 : vector<8x128xf32>
    %40 = arith.addf %38, %39 : vector<8x128xf32>
    %c8_i32 = arith.constant 8 : i32
    %41 = arith.muli %arg1, %c8_i32 : i32
    %42 = arith.addi %41, %c0_i32_11 : i32
    %c12_i32 = arith.constant 12 : i32
    %43 = arith.cmpi slt, %42, %c12_i32 : i32
    %44 = arith.select %43, %40, %9 : vector<8x128xf32>
    %c1_i32 = arith.constant 1 : i32
    %c0_19 = arith.constant 0 : index
    %45 = arith.index_cast %c1_i32 : i32 to index
    %c0_20 = arith.constant 0 : index
    %c0_21 = arith.constant 0 : index
    %46 = vector.load %arg2[%c0_19, %45, %c0_20, %c0_21] : memref<1x8x8x128xbf16, #tpu.memory_space<vmem>>, vector<1x1x8x128xbf16>
    %47 = vector.shape_cast %46 : vector<1x1x8x128xbf16> to vector<8x128xbf16>
    %cst_22 = arith.constant dense<0.000000e+00> : vector<8x512xf32>
    %48 = tpu.matmul %47, %4, %cst_22 {dimension_numbers = #tpu.dot_dimension_numbers<[1], [0], [0], [1], [0, 0, 1, 1], [], []>} : vector<8x128xbf16>, vector<128x512xbf16>, vector<8x512xf32> -> vector<8x512xf32>
    %49 = arith.truncf %44 : vector<8x128xf32> to vector<8x128xbf16>
    %cst_23 = arith.constant dense<0.000000e+00> : vector<8x512xf32>
    %50 = tpu.matmul %49, %6, %cst_23 {dimension_numbers = #tpu.dot_dimension_numbers<[1], [0], [0], [1], [0, 0, 1, 1], [], []>} : vector<8x128xbf16>, vector<128x512xbf16>, vector<8x512xf32> -> vector<8x512xf32>
    %51 = arith.addf %48, %50 : vector<8x512xf32>
    %52 = vector.broadcast %8 : vector<1x512xf32> to vector<8x512xf32>
    %53 = arith.addf %51, %52 : vector<8x512xf32>
    %54 = vector.extract_strided_slice %53 {offsets = [0, 0], sizes = [8, 128], strides = [1, 1]} : vector<8x512xf32> to vector<8x128xf32>
    %55 = arith.negf %54 : vector<8x128xf32>
    %56 = math.exp %55 : vector<8x128xf32>
    %cst_24 = arith.constant 1.000000e+00 : f32
    %57 = vector.broadcast %cst_24 : f32 to vector<8x128xf32>
    %58 = arith.addf %57, %56 : vector<8x128xf32>
    %59 = arith.divf %57, %58 : vector<8x128xf32>
    %60 = vector.extract_strided_slice %53 {offsets = [0, 128], sizes = [8, 128], strides = [1, 1]} : vector<8x512xf32> to vector<8x128xf32>
    %61 = arith.negf %60 : vector<8x128xf32>
    %62 = math.exp %61 : vector<8x128xf32>
    %cst_25 = arith.constant 1.000000e+00 : f32
    %63 = vector.broadcast %cst_25 : f32 to vector<8x128xf32>
    %64 = arith.addf %63, %62 : vector<8x128xf32>
    %65 = arith.divf %63, %64 : vector<8x128xf32>
    %66 = vector.extract_strided_slice %53 {offsets = [0, 256], sizes = [8, 128], strides = [1, 1]} : vector<8x512xf32> to vector<8x128xf32>
    %67 = vector.extract_strided_slice %53 {offsets = [0, 384], sizes = [8, 128], strides = [1, 1]} : vector<8x512xf32> to vector<8x128xf32>
    %68 = arith.mulf %59, %67 : vector<8x128xf32>
    %69 = arith.addf %66, %68 : vector<8x128xf32>
    %70 = math.tanh %69 : vector<8x128xf32>
    %cst_26 = arith.constant 1.000000e+00 : f32
    %71 = vector.broadcast %cst_26 : f32 to vector<8x128xf32>
    %72 = arith.subf %71, %65 : vector<8x128xf32>
    %73 = arith.mulf %72, %70 : vector<8x128xf32>
    %74 = arith.mulf %65, %44 : vector<8x128xf32>
    %75 = arith.addf %73, %74 : vector<8x128xf32>
    %c8_i32_27 = arith.constant 8 : i32
    %76 = arith.muli %arg1, %c8_i32_27 : i32
    %77 = arith.addi %76, %c1_i32 : i32
    %c12_i32_28 = arith.constant 12 : i32
    %78 = arith.cmpi slt, %77, %c12_i32_28 : i32
    %79 = arith.select %78, %75, %44 : vector<8x128xf32>
    %c2_i32 = arith.constant 2 : i32
    %c0_29 = arith.constant 0 : index
    %80 = arith.index_cast %c2_i32 : i32 to index
    %c0_30 = arith.constant 0 : index
    %c0_31 = arith.constant 0 : index
    %81 = vector.load %arg2[%c0_29, %80, %c0_30, %c0_31] : memref<1x8x8x128xbf16, #tpu.memory_space<vmem>>, vector<1x1x8x128xbf16>
    %82 = vector.shape_cast %81 : vector<1x1x8x128xbf16> to vector<8x128xbf16>
    %cst_32 = arith.constant dense<0.000000e+00> : vector<8x512xf32>
    %83 = tpu.matmul %82, %4, %cst_32 {dimension_numbers = #tpu.dot_dimension_numbers<[1], [0], [0], [1], [0, 0, 1, 1], [], []>} : vector<8x128xbf16>, vector<128x512xbf16>, vector<8x512xf32> -> vector<8x512xf32>
    %84 = arith.truncf %79 : vector<8x128xf32> to vector<8x128xbf16>
    %cst_33 = arith.constant dense<0.000000e+00> : vector<8x512xf32>
    %85 = tpu.matmul %84, %6, %cst_33 {dimension_numbers = #tpu.dot_dimension_numbers<[1], [0], [0], [1], [0, 0, 1, 1], [], []>} : vector<8x128xbf16>, vector<128x512xbf16>, vector<8x512xf32> -> vector<8x512xf32>
    %86 = arith.addf %83, %85 : vector<8x512xf32>
    %87 = vector.broadcast %8 : vector<1x512xf32> to vector<8x512xf32>
    %88 = arith.addf %86, %87 : vector<8x512xf32>
    %89 = vector.extract_strided_slice %88 {offsets = [0, 0], sizes = [8, 128], strides = [1, 1]} : vector<8x512xf32> to vector<8x128xf32>
    %90 = arith.negf %89 : vector<8x128xf32>
    %91 = math.exp %90 : vector<8x128xf32>
    %cst_34 = arith.constant 1.000000e+00 : f32
    %92 = vector.broadcast %cst_34 : f32 to vector<8x128xf32>
    %93 = arith.addf %92, %91 : vector<8x128xf32>
    %94 = arith.divf %92, %93 : vector<8x128xf32>
    %95 = vector.extract_strided_slice %88 {offsets = [0, 128], sizes = [8, 128], strides = [1, 1]} : vector<8x512xf32> to vector<8x128xf32>
    %96 = arith.negf %95 : vector<8x128xf32>
    %97 = math.exp %96 : vector<8x128xf32>
    %cst_35 = arith.constant 1.000000e+00 : f32
    %98 = vector.broadcast %cst_35 : f32 to vector<8x128xf32>
    %99 = arith.addf %98, %97 : vector<8x128xf32>
    %100 = arith.divf %98, %99 : vector<8x128xf32>
    %101 = vector.extract_strided_slice %88 {offsets = [0, 256], sizes = [8, 128], strides = [1, 1]} : vector<8x512xf32> to vector<8x128xf32>
    %102 = vector.extract_strided_slice %88 {offsets = [0, 384], sizes = [8, 128], strides = [1, 1]} : vector<8x512xf32> to vector<8x128xf32>
    %103 = arith.mulf %94, %102 : vector<8x128xf32>
    %104 = arith.addf %101, %103 : vector<8x128xf32>
    %105 = math.tanh %104 : vector<8x128xf32>
    %cst_36 = arith.constant 1.000000e+00 : f32
    %106 = vector.broadcast %cst_36 : f32 to vector<8x128xf32>
    %107 = arith.subf %106, %100 : vector<8x128xf32>
    %108 = arith.mulf %107, %105 : vector<8x128xf32>
    %109 = arith.mulf %100, %79 : vector<8x128xf32>
    %110 = arith.addf %108, %109 : vector<8x128xf32>
    %c8_i32_37 = arith.constant 8 : i32
    %111 = arith.muli %arg1, %c8_i32_37 : i32
    %112 = arith.addi %111, %c2_i32 : i32
    %c12_i32_38 = arith.constant 12 : i32
    %113 = arith.cmpi slt, %112, %c12_i32_38 : i32
    %114 = arith.select %113, %110, %79 : vector<8x128xf32>
    %c3_i32 = arith.constant 3 : i32
    %c0_39 = arith.constant 0 : index
    %115 = arith.index_cast %c3_i32 : i32 to index
    %c0_40 = arith.constant 0 : index
    %c0_41 = arith.constant 0 : index
    %116 = vector.load %arg2[%c0_39, %115, %c0_40, %c0_41] : memref<1x8x8x128xbf16, #tpu.memory_space<vmem>>, vector<1x1x8x128xbf16>
    %117 = vector.shape_cast %116 : vector<1x1x8x128xbf16> to vector<8x128xbf16>
    %cst_42 = arith.constant dense<0.000000e+00> : vector<8x512xf32>
    %118 = tpu.matmul %117, %4, %cst_42 {dimension_numbers = #tpu.dot_dimension_numbers<[1], [0], [0], [1], [0, 0, 1, 1], [], []>} : vector<8x128xbf16>, vector<128x512xbf16>, vector<8x512xf32> -> vector<8x512xf32>
    %119 = arith.truncf %114 : vector<8x128xf32> to vector<8x128xbf16>
    %cst_43 = arith.constant dense<0.000000e+00> : vector<8x512xf32>
    %120 = tpu.matmul %119, %6, %cst_43 {dimension_numbers = #tpu.dot_dimension_numbers<[1], [0], [0], [1], [0, 0, 1, 1], [], []>} : vector<8x128xbf16>, vector<128x512xbf16>, vector<8x512xf32> -> vector<8x512xf32>
    %121 = arith.addf %118, %120 : vector<8x512xf32>
    %122 = vector.broadcast %8 : vector<1x512xf32> to vector<8x512xf32>
    %123 = arith.addf %121, %122 : vector<8x512xf32>
    %124 = vector.extract_strided_slice %123 {offsets = [0, 0], sizes = [8, 128], strides = [1, 1]} : vector<8x512xf32> to vector<8x128xf32>
    %125 = arith.negf %124 : vector<8x128xf32>
    %126 = math.exp %125 : vector<8x128xf32>
    %cst_44 = arith.constant 1.000000e+00 : f32
    %127 = vector.broadcast %cst_44 : f32 to vector<8x128xf32>
    %128 = arith.addf %127, %126 : vector<8x128xf32>
    %129 = arith.divf %127, %128 : vector<8x128xf32>
    %130 = vector.extract_strided_slice %123 {offsets = [0, 128], sizes = [8, 128], strides = [1, 1]} : vector<8x512xf32> to vector<8x128xf32>
    %131 = arith.negf %130 : vector<8x128xf32>
    %132 = math.exp %131 : vector<8x128xf32>
    %cst_45 = arith.constant 1.000000e+00 : f32
    %133 = vector.broadcast %cst_45 : f32 to vector<8x128xf32>
    %134 = arith.addf %133, %132 : vector<8x128xf32>
    %135 = arith.divf %133, %134 : vector<8x128xf32>
    %136 = vector.extract_strided_slice %123 {offsets = [0, 256], sizes = [8, 128], strides = [1, 1]} : vector<8x512xf32> to vector<8x128xf32>
    %137 = vector.extract_strided_slice %123 {offsets = [0, 384], sizes = [8, 128], strides = [1, 1]} : vector<8x512xf32> to vector<8x128xf32>
    %138 = arith.mulf %129, %137 : vector<8x128xf32>
    %139 = arith.addf %136, %138 : vector<8x128xf32>
    %140 = math.tanh %139 : vector<8x128xf32>
    %cst_46 = arith.constant 1.000000e+00 : f32
    %141 = vector.broadcast %cst_46 : f32 to vector<8x128xf32>
    %142 = arith.subf %141, %135 : vector<8x128xf32>
    %143 = arith.mulf %142, %140 : vector<8x128xf32>
    %144 = arith.mulf %135, %114 : vector<8x128xf32>
    %145 = arith.addf %143, %144 : vector<8x128xf32>
    %c8_i32_47 = arith.constant 8 : i32
    %146 = arith.muli %arg1, %c8_i32_47 : i32
    %147 = arith.addi %146, %c3_i32 : i32
    %c12_i32_48 = arith.constant 12 : i32
    %148 = arith.cmpi slt, %147, %c12_i32_48 : i32
    %149 = arith.select %148, %145, %114 : vector<8x128xf32>
    %c4_i32 = arith.constant 4 : i32
    %c0_49 = arith.constant 0 : index
    %150 = arith.index_cast %c4_i32 : i32 to index
    %c0_50 = arith.constant 0 : index
    %c0_51 = arith.constant 0 : index
    %151 = vector.load %arg2[%c0_49, %150, %c0_50, %c0_51] : memref<1x8x8x128xbf16, #tpu.memory_space<vmem>>, vector<1x1x8x128xbf16>
    %152 = vector.shape_cast %151 : vector<1x1x8x128xbf16> to vector<8x128xbf16>
    %cst_52 = arith.constant dense<0.000000e+00> : vector<8x512xf32>
    %153 = tpu.matmul %152, %4, %cst_52 {dimension_numbers = #tpu.dot_dimension_numbers<[1], [0], [0], [1], [0, 0, 1, 1], [], []>} : vector<8x128xbf16>, vector<128x512xbf16>, vector<8x512xf32> -> vector<8x512xf32>
    %154 = arith.truncf %149 : vector<8x128xf32> to vector<8x128xbf16>
    %cst_53 = arith.constant dense<0.000000e+00> : vector<8x512xf32>
    %155 = tpu.matmul %154, %6, %cst_53 {dimension_numbers = #tpu.dot_dimension_numbers<[1], [0], [0], [1], [0, 0, 1, 1], [], []>} : vector<8x128xbf16>, vector<128x512xbf16>, vector<8x512xf32> -> vector<8x512xf32>
    %156 = arith.addf %153, %155 : vector<8x512xf32>
    %157 = vector.broadcast %8 : vector<1x512xf32> to vector<8x512xf32>
    %158 = arith.addf %156, %157 : vector<8x512xf32>
    %159 = vector.extract_strided_slice %158 {offsets = [0, 0], sizes = [8, 128], strides = [1, 1]} : vector<8x512xf32> to vector<8x128xf32>
    %160 = arith.negf %159 : vector<8x128xf32>
    %161 = math.exp %160 : vector<8x128xf32>
    %cst_54 = arith.constant 1.000000e+00 : f32
    %162 = vector.broadcast %cst_54 : f32 to vector<8x128xf32>
    %163 = arith.addf %162, %161 : vector<8x128xf32>
    %164 = arith.divf %162, %163 : vector<8x128xf32>
    %165 = vector.extract_strided_slice %158 {offsets = [0, 128], sizes = [8, 128], strides = [1, 1]} : vector<8x512xf32> to vector<8x128xf32>
    %166 = arith.negf %165 : vector<8x128xf32>
    %167 = math.exp %166 : vector<8x128xf32>
    %cst_55 = arith.constant 1.000000e+00 : f32
    %168 = vector.broadcast %cst_55 : f32 to vector<8x128xf32>
    %169 = arith.addf %168, %167 : vector<8x128xf32>
    %170 = arith.divf %168, %169 : vector<8x128xf32>
    %171 = vector.extract_strided_slice %158 {offsets = [0, 256], sizes = [8, 128], strides = [1, 1]} : vector<8x512xf32> to vector<8x128xf32>
    %172 = vector.extract_strided_slice %158 {offsets = [0, 384], sizes = [8, 128], strides = [1, 1]} : vector<8x512xf32> to vector<8x128xf32>
    %173 = arith.mulf %164, %172 : vector<8x128xf32>
    %174 = arith.addf %171, %173 : vector<8x128xf32>
    %175 = math.tanh %174 : vector<8x128xf32>
    %cst_56 = arith.constant 1.000000e+00 : f32
    %176 = vector.broadcast %cst_56 : f32 to vector<8x128xf32>
    %177 = arith.subf %176, %170 : vector<8x128xf32>
    %178 = arith.mulf %177, %175 : vector<8x128xf32>
    %179 = arith.mulf %170, %149 : vector<8x128xf32>
    %180 = arith.addf %178, %179 : vector<8x128xf32>
    %c8_i32_57 = arith.constant 8 : i32
    %181 = arith.muli %arg1, %c8_i32_57 : i32
    %182 = arith.addi %181, %c4_i32 : i32
    %c12_i32_58 = arith.constant 12 : i32
    %183 = arith.cmpi slt, %182, %c12_i32_58 : i32
    %184 = arith.select %183, %180, %149 : vector<8x128xf32>
    %c5_i32 = arith.constant 5 : i32
    %c0_59 = arith.constant 0 : index
    %185 = arith.index_cast %c5_i32 : i32 to index
    %c0_60 = arith.constant 0 : index
    %c0_61 = arith.constant 0 : index
    %186 = vector.load %arg2[%c0_59, %185, %c0_60, %c0_61] : memref<1x8x8x128xbf16, #tpu.memory_space<vmem>>, vector<1x1x8x128xbf16>
    %187 = vector.shape_cast %186 : vector<1x1x8x128xbf16> to vector<8x128xbf16>
    %cst_62 = arith.constant dense<0.000000e+00> : vector<8x512xf32>
    %188 = tpu.matmul %187, %4, %cst_62 {dimension_numbers = #tpu.dot_dimension_numbers<[1], [0], [0], [1], [0, 0, 1, 1], [], []>} : vector<8x128xbf16>, vector<128x512xbf16>, vector<8x512xf32> -> vector<8x512xf32>
    %189 = arith.truncf %184 : vector<8x128xf32> to vector<8x128xbf16>
    %cst_63 = arith.constant dense<0.000000e+00> : vector<8x512xf32>
    %190 = tpu.matmul %189, %6, %cst_63 {dimension_numbers = #tpu.dot_dimension_numbers<[1], [0], [0], [1], [0, 0, 1, 1], [], []>} : vector<8x128xbf16>, vector<128x512xbf16>, vector<8x512xf32> -> vector<8x512xf32>
    %191 = arith.addf %188, %190 : vector<8x512xf32>
    %192 = vector.broadcast %8 : vector<1x512xf32> to vector<8x512xf32>
    %193 = arith.addf %191, %192 : vector<8x512xf32>
    %194 = vector.extract_strided_slice %193 {offsets = [0, 0], sizes = [8, 128], strides = [1, 1]} : vector<8x512xf32> to vector<8x128xf32>
    %195 = arith.negf %194 : vector<8x128xf32>
    %196 = math.exp %195 : vector<8x128xf32>
    %cst_64 = arith.constant 1.000000e+00 : f32
    %197 = vector.broadcast %cst_64 : f32 to vector<8x128xf32>
    %198 = arith.addf %197, %196 : vector<8x128xf32>
    %199 = arith.divf %197, %198 : vector<8x128xf32>
    %200 = vector.extract_strided_slice %193 {offsets = [0, 128], sizes = [8, 128], strides = [1, 1]} : vector<8x512xf32> to vector<8x128xf32>
    %201 = arith.negf %200 : vector<8x128xf32>
    %202 = math.exp %201 : vector<8x128xf32>
    %cst_65 = arith.constant 1.000000e+00 : f32
    %203 = vector.broadcast %cst_65 : f32 to vector<8x128xf32>
    %204 = arith.addf %203, %202 : vector<8x128xf32>
    %205 = arith.divf %203, %204 : vector<8x128xf32>
    %206 = vector.extract_strided_slice %193 {offsets = [0, 256], sizes = [8, 128], strides = [1, 1]} : vector<8x512xf32> to vector<8x128xf32>
    %207 = vector.extract_strided_slice %193 {offsets = [0, 384], sizes = [8, 128], strides = [1, 1]} : vector<8x512xf32> to vector<8x128xf32>
    %208 = arith.mulf %199, %207 : vector<8x128xf32>
    %209 = arith.addf %206, %208 : vector<8x128xf32>
    %210 = math.tanh %209 : vector<8x128xf32>
    %cst_66 = arith.constant 1.000000e+00 : f32
    %211 = vector.broadcast %cst_66 : f32 to vector<8x128xf32>
    %212 = arith.subf %211, %205 : vector<8x128xf32>
    %213 = arith.mulf %212, %210 : vector<8x128xf32>
    %214 = arith.mulf %205, %184 : vector<8x128xf32>
    %215 = arith.addf %213, %214 : vector<8x128xf32>
    %c8_i32_67 = arith.constant 8 : i32
    %216 = arith.muli %arg1, %c8_i32_67 : i32
    %217 = arith.addi %216, %c5_i32 : i32
    %c12_i32_68 = arith.constant 12 : i32
    %218 = arith.cmpi slt, %217, %c12_i32_68 : i32
    %219 = arith.select %218, %215, %184 : vector<8x128xf32>
    %c6_i32 = arith.constant 6 : i32
    %c0_69 = arith.constant 0 : index
    %220 = arith.index_cast %c6_i32 : i32 to index
    %c0_70 = arith.constant 0 : index
    %c0_71 = arith.constant 0 : index
    %221 = vector.load %arg2[%c0_69, %220, %c0_70, %c0_71] : memref<1x8x8x128xbf16, #tpu.memory_space<vmem>>, vector<1x1x8x128xbf16>
    %222 = vector.shape_cast %221 : vector<1x1x8x128xbf16> to vector<8x128xbf16>
    %cst_72 = arith.constant dense<0.000000e+00> : vector<8x512xf32>
    %223 = tpu.matmul %222, %4, %cst_72 {dimension_numbers = #tpu.dot_dimension_numbers<[1], [0], [0], [1], [0, 0, 1, 1], [], []>} : vector<8x128xbf16>, vector<128x512xbf16>, vector<8x512xf32> -> vector<8x512xf32>
    %224 = arith.truncf %219 : vector<8x128xf32> to vector<8x128xbf16>
    %cst_73 = arith.constant dense<0.000000e+00> : vector<8x512xf32>
    %225 = tpu.matmul %224, %6, %cst_73 {dimension_numbers = #tpu.dot_dimension_numbers<[1], [0], [0], [1], [0, 0, 1, 1], [], []>} : vector<8x128xbf16>, vector<128x512xbf16>, vector<8x512xf32> -> vector<8x512xf32>
    %226 = arith.addf %223, %225 : vector<8x512xf32>
    %227 = vector.broadcast %8 : vector<1x512xf32> to vector<8x512xf32>
    %228 = arith.addf %226, %227 : vector<8x512xf32>
    %229 = vector.extract_strided_slice %228 {offsets = [0, 0], sizes = [8, 128], strides = [1, 1]} : vector<8x512xf32> to vector<8x128xf32>
    %230 = arith.negf %229 : vector<8x128xf32>
    %231 = math.exp %230 : vector<8x128xf32>
    %cst_74 = arith.constant 1.000000e+00 : f32
    %232 = vector.broadcast %cst_74 : f32 to vector<8x128xf32>
    %233 = arith.addf %232, %231 : vector<8x128xf32>
    %234 = arith.divf %232, %233 : vector<8x128xf32>
    %235 = vector.extract_strided_slice %228 {offsets = [0, 128], sizes = [8, 128], strides = [1, 1]} : vector<8x512xf32> to vector<8x128xf32>
    %236 = arith.negf %235 : vector<8x128xf32>
    %237 = math.exp %236 : vector<8x128xf32>
    %cst_75 = arith.constant 1.000000e+00 : f32
    %238 = vector.broadcast %cst_75 : f32 to vector<8x128xf32>
    %239 = arith.addf %238, %237 : vector<8x128xf32>
    %240 = arith.divf %238, %239 : vector<8x128xf32>
    %241 = vector.extract_strided_slice %228 {offsets = [0, 256], sizes = [8, 128], strides = [1, 1]} : vector<8x512xf32> to vector<8x128xf32>
    %242 = vector.extract_strided_slice %228 {offsets = [0, 384], sizes = [8, 128], strides = [1, 1]} : vector<8x512xf32> to vector<8x128xf32>
    %243 = arith.mulf %234, %242 : vector<8x128xf32>
    %244 = arith.addf %241, %243 : vector<8x128xf32>
    %245 = math.tanh %244 : vector<8x128xf32>
    %cst_76 = arith.constant 1.000000e+00 : f32
    %246 = vector.broadcast %cst_76 : f32 to vector<8x128xf32>
    %247 = arith.subf %246, %240 : vector<8x128xf32>
    %248 = arith.mulf %247, %245 : vector<8x128xf32>
    %249 = arith.mulf %240, %219 : vector<8x128xf32>
    %250 = arith.addf %248, %249 : vector<8x128xf32>
    %c8_i32_77 = arith.constant 8 : i32
    %251 = arith.muli %arg1, %c8_i32_77 : i32
    %252 = arith.addi %251, %c6_i32 : i32
    %c12_i32_78 = arith.constant 12 : i32
    %253 = arith.cmpi slt, %252, %c12_i32_78 : i32
    %254 = arith.select %253, %250, %219 : vector<8x128xf32>
    %c7_i32 = arith.constant 7 : i32
    %c0_79 = arith.constant 0 : index
    %255 = arith.index_cast %c7_i32 : i32 to index
    %c0_80 = arith.constant 0 : index
    %c0_81 = arith.constant 0 : index
    %256 = vector.load %arg2[%c0_79, %255, %c0_80, %c0_81] : memref<1x8x8x128xbf16, #tpu.memory_space<vmem>>, vector<1x1x8x128xbf16>
    %257 = vector.shape_cast %256 : vector<1x1x8x128xbf16> to vector<8x128xbf16>
    %cst_82 = arith.constant dense<0.000000e+00> : vector<8x512xf32>
    %258 = tpu.matmul %257, %4, %cst_82 {dimension_numbers = #tpu.dot_dimension_numbers<[1], [0], [0], [1], [0, 0, 1, 1], [], []>} : vector<8x128xbf16>, vector<128x512xbf16>, vector<8x512xf32> -> vector<8x512xf32>
    %259 = arith.truncf %254 : vector<8x128xf32> to vector<8x128xbf16>
    %cst_83 = arith.constant dense<0.000000e+00> : vector<8x512xf32>
    %260 = tpu.matmul %259, %6, %cst_83 {dimension_numbers = #tpu.dot_dimension_numbers<[1], [0], [0], [1], [0, 0, 1, 1], [], []>} : vector<8x128xbf16>, vector<128x512xbf16>, vector<8x512xf32> -> vector<8x512xf32>
    %261 = arith.addf %258, %260 : vector<8x512xf32>
    %262 = vector.broadcast %8 : vector<1x512xf32> to vector<8x512xf32>
    %263 = arith.addf %261, %262 : vector<8x512xf32>
    %264 = vector.extract_strided_slice %263 {offsets = [0, 0], sizes = [8, 128], strides = [1, 1]} : vector<8x512xf32> to vector<8x128xf32>
    %265 = arith.negf %264 : vector<8x128xf32>
    %266 = math.exp %265 : vector<8x128xf32>
    %cst_84 = arith.constant 1.000000e+00 : f32
    %267 = vector.broadcast %cst_84 : f32 to vector<8x128xf32>
    %268 = arith.addf %267, %266 : vector<8x128xf32>
    %269 = arith.divf %267, %268 : vector<8x128xf32>
    %270 = vector.extract_strided_slice %263 {offsets = [0, 128], sizes = [8, 128], strides = [1, 1]} : vector<8x512xf32> to vector<8x128xf32>
    %271 = arith.negf %270 : vector<8x128xf32>
    %272 = math.exp %271 : vector<8x128xf32>
    %cst_85 = arith.constant 1.000000e+00 : f32
    %273 = vector.broadcast %cst_85 : f32 to vector<8x128xf32>
    %274 = arith.addf %273, %272 : vector<8x128xf32>
    %275 = arith.divf %273, %274 : vector<8x128xf32>
    %276 = vector.extract_strided_slice %263 {offsets = [0, 256], sizes = [8, 128], strides = [1, 1]} : vector<8x512xf32> to vector<8x128xf32>
    %277 = vector.extract_strided_slice %263 {offsets = [0, 384], sizes = [8, 128], strides = [1, 1]} : vector<8x512xf32> to vector<8x128xf32>
    %278 = arith.mulf %269, %277 : vector<8x128xf32>
    %279 = arith.addf %276, %278 : vector<8x128xf32>
    %280 = math.tanh %279 : vector<8x128xf32>
    %cst_86 = arith.constant 1.000000e+00 : f32
    %281 = vector.broadcast %cst_86 : f32 to vector<8x128xf32>
    %282 = arith.subf %281, %275 : vector<8x128xf32>
    %283 = arith.mulf %282, %280 : vector<8x128xf32>
    %284 = arith.mulf %275, %254 : vector<8x128xf32>
    %285 = arith.addf %283, %284 : vector<8x128xf32>
    %c8_i32_87 = arith.constant 8 : i32
    %286 = arith.muli %arg1, %c8_i32_87 : i32
    %287 = arith.addi %286, %c7_i32 : i32
    %c12_i32_88 = arith.constant 12 : i32
    %288 = arith.cmpi slt, %287, %c12_i32_88 : i32
    %289 = arith.select %288, %285, %254 : vector<8x128xf32>
    %c8_i32_89 = arith.constant 8 : i32
    %c0_90 = arith.constant 0 : index
    %c0_91 = arith.constant 0 : index
    %290 = vector.load %arg7[%c0_90, %c0_91] : memref<8x128xf32, #tpu.memory_space<vmem>>, vector<8x128xf32>
    tpu.vector_store %arg7[%c0_90, %c0_91], %289 {strides = array<i32>} : memref<8x128xf32, #tpu.memory_space<vmem>>, vector<8x128xf32>,
    %c1_i32_92 = arith.constant 1 : i32
    %291 = arith.cmpi eq, %arg1, %c1_i32_92 : i32
    %292 = arith.extui %291 : i1 to i32
    %c0_i32_93 = arith.constant 0 : i32
    %293 = arith.cmpi ne, %292, %c0_i32_93 : i32
    scf.if %293 {
      %c0_94 = arith.constant 0 : index
      %c0_95 = arith.constant 0 : index
      %294 = vector.load %arg7[%c0_94, %c0_95] : memref<8x128xf32, #tpu.memory_space<vmem>>, vector<8x128xf32>
      %c0_96 = arith.constant 0 : index
      %c0_97 = arith.constant 0 : index
      %c0_98 = arith.constant 0 : index
      %295 = vector.load %arg6[%c0_96, %c0_97, %c0_98] : memref<1x8x128xf32, #tpu.memory_space<vmem>>, vector<1x8x128xf32>
      %296 = vector.shape_cast %295 : vector<1x8x128xf32> to vector<8x128xf32>
      %297 = vector.shape_cast %294 : vector<8x128xf32> to vector<1x8x128xf32>
      tpu.vector_store %arg6[%c0_96, %c0_97, %c0_98], %297 {strides = array<i32>} : memref<1x8x128xf32, #tpu.memory_space<vmem>>, vector<1x8x128xf32>,
    } else {
    }
    return
  }
  func.func @transform_0(%arg0: i32, %arg1: i32) -> (i32, i32, i32, i32) {
    %c0_i32 = arith.constant 0 : i32
    %c0_i32_0 = arith.constant 0 : i32
    %c0_i32_1 = arith.constant 0 : i32
    return %arg0, %arg1, %c0_i32, %c0_i32_0 : i32, i32, i32, i32
  }
  func.func @transform_1(%arg0: i32, %arg1: i32) -> (i32, i32, i32) {
    %c0_i32 = arith.constant 0 : i32
    %c0_i32_0 = arith.constant 0 : i32
    %c0_i32_1 = arith.constant 0 : i32
    return %arg0, %c0_i32, %c0_i32_0 : i32, i32, i32
  }
  func.func @transform_2(%arg0: i32, %arg1: i32) -> (i32, i32, i32) {
    %c0_i32 = arith.constant 0 : i32
    %c0_i32_0 = arith.constant 0 : i32
    %c0_i32_1 = arith.constant 0 : i32
    return %arg0, %c0_i32, %c0_i32_0 : i32, i32, i32
  }
  func.func @transform_3(%arg0: i32, %arg1: i32) -> (i32, i32, i32) {
    %c0_i32 = arith.constant 0 : i32
    %c0_i32_0 = arith.constant 0 : i32
    %c0_i32_1 = arith.constant 0 : i32
    return %arg0, %c0_i32, %c0_i32_0 : i32, i32, i32
  }
  func.func @transform_4(%arg0: i32, %arg1: i32) -> (i32, i32, i32) {
    %c0_i32 = arith.constant 0 : i32
    %c0_i32_0 = arith.constant 0 : i32
    %c0_i32_1 = arith.constant 0 : i32
    return %arg0, %c0_i32, %c0_i32_0 : i32, i32, i32
  }
}

module attributes {stable_mosaic.version = 11 : i64} {
  func.func @_greedy_decode_kernel(%arg0: i32, %arg1: i32, %arg2: memref<8x128xf32, #tpu.memory_space<vmem>>, %arg3: memref<256x128xf32, #tpu.memory_space<vmem>>, %arg4: memref<128x512xbf16, #tpu.memory_space<vmem>>, %arg5: memref<128x512xbf16, #tpu.memory_space<vmem>>, %arg6: memref<1x512xf32, #tpu.memory_space<vmem>>, %arg7: memref<128x128xbf16, #tpu.memory_space<vmem>>, %arg8: memref<1x128xf32, #tpu.memory_space<vmem>>, %arg9: memref<1x8x128xf32, #tpu.memory_space<vmem>>, %arg10: memref<8x128xf32, #tpu.memory_space<vmem>>, %arg11: memref<8x128xf32, #tpu.memory_space<vmem>>, %arg12: memref<8x128xf32, #tpu.memory_space<vmem>>, %arg13: memref<8x1xf32, #tpu.memory_space<vmem>>, %arg14: memref<8x1xi32, #tpu.memory_space<vmem>>) attributes {dimension_semantics = [#tpu.dimension_semantics<arbitrary>, #tpu.dimension_semantics<arbitrary>], iteration_bounds = array<i64: 6, 2>, scalar_prefetch = 0 : i64, scratch_operands = 4 : i64, tpu.core_type = #tpu.core_type<tc>, window_params = [{pipeline_mode = #tpu.pipeline_mode<synchronous>, transform_indices = @transform_0, window_bounds = array<i64: 8, 128>}, {pipeline_mode = #tpu.pipeline_mode<synchronous>, transform_indices = @transform_1, window_bounds = array<i64: 256, 128>}, {pipeline_mode = #tpu.pipeline_mode<synchronous>, transform_indices = @transform_2, window_bounds = array<i64: 128, 512>}, {pipeline_mode = #tpu.pipeline_mode<synchronous>, transform_indices = @transform_3, window_bounds = array<i64: 128, 512>}, {pipeline_mode = #tpu.pipeline_mode<synchronous>, transform_indices = @transform_4, window_bounds = array<i64: 1, 512>}, {transform_indices = @transform_5, window_bounds = array<i64: 128, 128>}, {transform_indices = @transform_6, window_bounds = array<i64: 1, 128>}, {transform_indices = @transform_7, window_bounds = array<i64: 1, 8, 128>}, {pipeline_mode = #tpu.pipeline_mode<synchronous>, transform_indices = @transform_8, window_bounds = array<i64: 8, 128>}]} {
    %c0_i32 = arith.constant 0 : i32
    %0 = arith.cmpi eq, %arg1, %c0_i32 : i32
    %c0_i32_0 = arith.constant 0 : i32
    %1 = arith.cmpi eq, %arg0, %c0_i32_0 : i32
    %2 = arith.andi %0, %1 : i1
    %3 = arith.extui %2 : i1 to i32
    %c0_i32_1 = arith.constant 0 : i32
    %4 = arith.cmpi ne, %3, %c0_i32_1 : i32
    scf.if %4 {
      %c0_22 = arith.constant 0 : index
      %c0_23 = arith.constant 0 : index
      %43 = vector.load %arg2[%c0_22, %c0_23] : memref<8x128xf32, #tpu.memory_space<vmem>>, vector<8x128xf32>
      %c0_24 = arith.constant 0 : index
      %c0_25 = arith.constant 0 : index
      %44 = vector.load %arg12[%c0_24, %c0_25] : memref<8x128xf32, #tpu.memory_space<vmem>>, vector<8x128xf32>
      tpu.vector_store %arg12[%c0_24, %c0_25], %43 {strides = array<i32>} : memref<8x128xf32, #tpu.memory_space<vmem>>, vector<8x128xf32>,
      %c1 = arith.constant 1 : index
      %c0_26 = arith.constant 0 : index
      %45 = vector.load %arg3[%c1, %c0_26] : memref<256x128xf32, #tpu.memory_space<vmem>>, vector<1x128xf32>
      %46 = vector.shape_cast %45 : vector<1x128xf32> to vector<1x128xf32>
      %47 = vector.broadcast %46 : vector<1x128xf32> to vector<8x128xf32>
      %c0_27 = arith.constant 0 : index
      %c0_28 = arith.constant 0 : index
      %48 = vector.load %arg11[%c0_27, %c0_28] : memref<8x128xf32, #tpu.memory_space<vmem>>, vector<8x128xf32>
      tpu.vector_store %arg11[%c0_27, %c0_28], %47 {strides = array<i32>} : memref<8x128xf32, #tpu.memory_space<vmem>>, vector<8x128xf32>,
    } else {
    }
    %c0_i32_2 = arith.constant 0 : i32
    %5 = arith.cmpi eq, %arg1, %c0_i32_2 : i32
    %c0_i32_3 = arith.constant 0 : i32
    %6 = arith.cmpi sgt, %arg0, %c0_i32_3 : i32
    %7 = arith.andi %5, %6 : i1
    %8 = arith.extui %7 : i1 to i32
    %c0_i32_4 = arith.constant 0 : i32
    %9 = arith.cmpi ne, %8, %c0_i32_4 : i32
    scf.if %9 {
      %c0_22 = arith.constant 0 : index
      %c0_23 = arith.constant 0 : index
      %43 = vector.load %arg14[%c0_22, %c0_23] : memref<8x1xi32, #tpu.memory_space<vmem>>, vector<1x1xi32>
      %44 = vector.extract %43[0, 0] : i32 from vector<1x1xi32>
      %45 = arith.index_cast %44 : i32 to index
      %c0_24 = arith.constant 0 : index
      %46 = vector.load %arg3[%45, %c0_24] : memref<256x128xf32, #tpu.memory_space<vmem>>, vector<1x128xf32>
      %c0_25 = arith.constant 0 : index
      %c0_26 = arith.constant 0 : index
      %47 = vector.load %arg11[%c0_25, %c0_26] : memref<8x128xf32, #tpu.memory_space<vmem>>, vector<1x128xf32>
      tpu.vector_store %arg11[%c0_25, %c0_26], %46 {strides = array<i32>} : memref<8x128xf32, #tpu.memory_space<vmem>>, vector<1x128xf32>,
      %c1 = arith.constant 1 : index
      %c0_27 = arith.constant 0 : index
      %48 = vector.load %arg14[%c1, %c0_27] : memref<8x1xi32, #tpu.memory_space<vmem>>, vector<1x1xi32>
      %49 = vector.extract %48[0, 0] : i32 from vector<1x1xi32>
      %50 = arith.index_cast %49 : i32 to index
      %c0_28 = arith.constant 0 : index
      %51 = vector.load %arg3[%50, %c0_28] : memref<256x128xf32, #tpu.memory_space<vmem>>, vector<1x128xf32>
      %c1_29 = arith.constant 1 : index
      %c0_30 = arith.constant 0 : index
      %52 = vector.load %arg11[%c1_29, %c0_30] : memref<8x128xf32, #tpu.memory_space<vmem>>, vector<1x128xf32>
      tpu.vector_store %arg11[%c1_29, %c0_30], %51 {strides = array<i32>} : memref<8x128xf32, #tpu.memory_space<vmem>>, vector<1x128xf32>,
      %c2 = arith.constant 2 : index
      %c0_31 = arith.constant 0 : index
      %53 = vector.load %arg14[%c2, %c0_31] : memref<8x1xi32, #tpu.memory_space<vmem>>, vector<1x1xi32>
      %54 = vector.extract %53[0, 0] : i32 from vector<1x1xi32>
      %55 = arith.index_cast %54 : i32 to index
      %c0_32 = arith.constant 0 : index
      %56 = vector.load %arg3[%55, %c0_32] : memref<256x128xf32, #tpu.memory_space<vmem>>, vector<1x128xf32>
      %c2_33 = arith.constant 2 : index
      %c0_34 = arith.constant 0 : index
      %57 = vector.load %arg11[%c2_33, %c0_34] : memref<8x128xf32, #tpu.memory_space<vmem>>, vector<1x128xf32>
      tpu.vector_store %arg11[%c2_33, %c0_34], %56 {strides = array<i32>} : memref<8x128xf32, #tpu.memory_space<vmem>>, vector<1x128xf32>,
      %c3 = arith.constant 3 : index
      %c0_35 = arith.constant 0 : index
      %58 = vector.load %arg14[%c3, %c0_35] : memref<8x1xi32, #tpu.memory_space<vmem>>, vector<1x1xi32>
      %59 = vector.extract %58[0, 0] : i32 from vector<1x1xi32>
      %60 = arith.index_cast %59 : i32 to index
      %c0_36 = arith.constant 0 : index
      %61 = vector.load %arg3[%60, %c0_36] : memref<256x128xf32, #tpu.memory_space<vmem>>, vector<1x128xf32>
      %c3_37 = arith.constant 3 : index
      %c0_38 = arith.constant 0 : index
      %62 = vector.load %arg11[%c3_37, %c0_38] : memref<8x128xf32, #tpu.memory_space<vmem>>, vector<1x128xf32>
      tpu.vector_store %arg11[%c3_37, %c0_38], %61 {strides = array<i32>} : memref<8x128xf32, #tpu.memory_space<vmem>>, vector<1x128xf32>,
      %c4 = arith.constant 4 : index
      %c0_39 = arith.constant 0 : index
      %63 = vector.load %arg14[%c4, %c0_39] : memref<8x1xi32, #tpu.memory_space<vmem>>, vector<1x1xi32>
      %64 = vector.extract %63[0, 0] : i32 from vector<1x1xi32>
      %65 = arith.index_cast %64 : i32 to index
      %c0_40 = arith.constant 0 : index
      %66 = vector.load %arg3[%65, %c0_40] : memref<256x128xf32, #tpu.memory_space<vmem>>, vector<1x128xf32>
      %c4_41 = arith.constant 4 : index
      %c0_42 = arith.constant 0 : index
      %67 = vector.load %arg11[%c4_41, %c0_42] : memref<8x128xf32, #tpu.memory_space<vmem>>, vector<1x128xf32>
      tpu.vector_store %arg11[%c4_41, %c0_42], %66 {strides = array<i32>} : memref<8x128xf32, #tpu.memory_space<vmem>>, vector<1x128xf32>,
      %c5 = arith.constant 5 : index
      %c0_43 = arith.constant 0 : index
      %68 = vector.load %arg14[%c5, %c0_43] : memref<8x1xi32, #tpu.memory_space<vmem>>, vector<1x1xi32>
      %69 = vector.extract %68[0, 0] : i32 from vector<1x1xi32>
      %70 = arith.index_cast %69 : i32 to index
      %c0_44 = arith.constant 0 : index
      %71 = vector.load %arg3[%70, %c0_44] : memref<256x128xf32, #tpu.memory_space<vmem>>, vector<1x128xf32>
      %c5_45 = arith.constant 5 : index
      %c0_46 = arith.constant 0 : index
      %72 = vector.load %arg11[%c5_45, %c0_46] : memref<8x128xf32, #tpu.memory_space<vmem>>, vector<1x128xf32>
      tpu.vector_store %arg11[%c5_45, %c0_46], %71 {strides = array<i32>} : memref<8x128xf32, #tpu.memory_space<vmem>>, vector<1x128xf32>,
      %c6 = arith.constant 6 : index
      %c0_47 = arith.constant 0 : index
      %73 = vector.load %arg14[%c6, %c0_47] : memref<8x1xi32, #tpu.memory_space<vmem>>, vector<1x1xi32>
      %74 = vector.extract %73[0, 0] : i32 from vector<1x1xi32>
      %75 = arith.index_cast %74 : i32 to index
      %c0_48 = arith.constant 0 : index
      %76 = vector.load %arg3[%75, %c0_48] : memref<256x128xf32, #tpu.memory_space<vmem>>, vector<1x128xf32>
      %c6_49 = arith.constant 6 : index
      %c0_50 = arith.constant 0 : index
      %77 = vector.load %arg11[%c6_49, %c0_50] : memref<8x128xf32, #tpu.memory_space<vmem>>, vector<1x128xf32>
      tpu.vector_store %arg11[%c6_49, %c0_50], %76 {strides = array<i32>} : memref<8x128xf32, #tpu.memory_space<vmem>>, vector<1x128xf32>,
      %c7 = arith.constant 7 : index
      %c0_51 = arith.constant 0 : index
      %78 = vector.load %arg14[%c7, %c0_51] : memref<8x1xi32, #tpu.memory_space<vmem>>, vector<1x1xi32>
      %79 = vector.extract %78[0, 0] : i32 from vector<1x1xi32>
      %80 = arith.index_cast %79 : i32 to index
      %c0_52 = arith.constant 0 : index
      %81 = vector.load %arg3[%80, %c0_52] : memref<256x128xf32, #tpu.memory_space<vmem>>, vector<1x128xf32>
      %c7_53 = arith.constant 7 : index
      %c0_54 = arith.constant 0 : index
      %82 = vector.load %arg11[%c7_53, %c0_54] : memref<8x128xf32, #tpu.memory_space<vmem>>, vector<1x128xf32>
      tpu.vector_store %arg11[%c7_53, %c0_54], %81 {strides = array<i32>} : memref<8x128xf32, #tpu.memory_space<vmem>>, vector<1x128xf32>,
    } else {
    }
    %c0_i32_5 = arith.constant 0 : i32
    %10 = arith.cmpi eq, %arg1, %c0_i32_5 : i32
    %11 = arith.extui %10 : i1 to i32
    %c0_i32_6 = arith.constant 0 : i32
    %12 = arith.cmpi ne, %11, %c0_i32_6 : i32
    scf.if %12 {
      %c0_22 = arith.constant 0 : index
      %c0_23 = arith.constant 0 : index
      %43 = vector.load %arg11[%c0_22, %c0_23] : memref<8x128xf32, #tpu.memory_space<vmem>>, vector<8x128xf32>
      %44 = arith.truncf %43 : vector<8x128xf32> to vector<8x128xbf16>
      %c0_24 = arith.constant 0 : index
      %c0_25 = arith.constant 0 : index
      %45 = vector.load %arg12[%c0_24, %c0_25] : memref<8x128xf32, #tpu.memory_space<vmem>>, vector<8x128xf32>
      %c0_26 = arith.constant 0 : index
      %c0_27 = arith.constant 0 : index
      %46 = vector.load %arg4[%c0_26, %c0_27] : memref<128x512xbf16, #tpu.memory_space<vmem>>, vector<128x512xbf16>
      %c0_28 = arith.constant 0 : index
      %c0_29 = arith.constant 0 : index
      %47 = vector.load %arg5[%c0_28, %c0_29] : memref<128x512xbf16, #tpu.memory_space<vmem>>, vector<128x512xbf16>
      %c0_30 = arith.constant 0 : index
      %c0_31 = arith.constant 0 : index
      %48 = vector.load %arg6[%c0_30, %c0_31] : memref<1x512xf32, #tpu.memory_space<vmem>>, vector<1x512xf32>
      %cst_32 = arith.constant dense<0.000000e+00> : vector<8x512xf32>
      %49 = tpu.matmul %44, %46, %cst_32 {dimension_numbers = #tpu.dot_dimension_numbers<[1], [0], [0], [1], [0, 0, 1, 1], [], []>} : vector<8x128xbf16>, vector<128x512xbf16>, vector<8x512xf32> -> vector<8x512xf32>
      %50 = arith.truncf %45 : vector<8x128xf32> to vector<8x128xbf16>
      %cst_33 = arith.constant dense<0.000000e+00> : vector<8x512xf32>
      %51 = tpu.matmul %50, %47, %cst_33 {dimension_numbers = #tpu.dot_dimension_numbers<[1], [0], [0], [1], [0, 0, 1, 1], [], []>} : vector<8x128xbf16>, vector<128x512xbf16>, vector<8x512xf32> -> vector<8x512xf32>
      %52 = arith.addf %49, %51 : vector<8x512xf32>
      %53 = vector.broadcast %48 : vector<1x512xf32> to vector<8x512xf32>
      %54 = arith.addf %52, %53 : vector<8x512xf32>
      %55 = vector.extract_strided_slice %54 {offsets = [0, 0], sizes = [8, 128], strides = [1, 1]} : vector<8x512xf32> to vector<8x128xf32>
      %56 = arith.negf %55 : vector<8x128xf32>
      %57 = math.exp %56 : vector<8x128xf32>
      %cst_34 = arith.constant 1.000000e+00 : f32
      %58 = vector.broadcast %cst_34 : f32 to vector<8x128xf32>
      %59 = arith.addf %58, %57 : vector<8x128xf32>
      %60 = arith.divf %58, %59 : vector<8x128xf32>
      %61 = vector.extract_strided_slice %54 {offsets = [0, 128], sizes = [8, 128], strides = [1, 1]} : vector<8x512xf32> to vector<8x128xf32>
      %62 = arith.negf %61 : vector<8x128xf32>
      %63 = math.exp %62 : vector<8x128xf32>
      %cst_35 = arith.constant 1.000000e+00 : f32
      %64 = vector.broadcast %cst_35 : f32 to vector<8x128xf32>
      %65 = arith.addf %64, %63 : vector<8x128xf32>
      %66 = arith.divf %64, %65 : vector<8x128xf32>
      %67 = vector.extract_strided_slice %54 {offsets = [0, 256], sizes = [8, 128], strides = [1, 1]} : vector<8x512xf32> to vector<8x128xf32>
      %68 = vector.extract_strided_slice %54 {offsets = [0, 384], sizes = [8, 128], strides = [1, 1]} : vector<8x512xf32> to vector<8x128xf32>
      %69 = arith.mulf %60, %68 : vector<8x128xf32>
      %70 = arith.addf %67, %69 : vector<8x128xf32>
      %71 = math.tanh %70 : vector<8x128xf32>
      %cst_36 = arith.constant 1.000000e+00 : f32
      %72 = vector.broadcast %cst_36 : f32 to vector<8x128xf32>
      %73 = arith.subf %72, %66 : vector<8x128xf32>
      %74 = arith.mulf %73, %71 : vector<8x128xf32>
      %75 = arith.mulf %66, %45 : vector<8x128xf32>
      %76 = arith.addf %74, %75 : vector<8x128xf32>
      %c0_37 = arith.constant 0 : index
      %c0_38 = arith.constant 0 : index
      %77 = vector.load %arg12[%c0_37, %c0_38] : memref<8x128xf32, #tpu.memory_space<vmem>>, vector<8x128xf32>
      tpu.vector_store %arg12[%c0_37, %c0_38], %76 {strides = array<i32>} : memref<8x128xf32, #tpu.memory_space<vmem>>, vector<8x128xf32>,
      %c0_39 = arith.constant 0 : index
      %c0_40 = arith.constant 0 : index
      %78 = vector.load %arg10[%c0_39, %c0_40] : memref<8x128xf32, #tpu.memory_space<vmem>>, vector<8x128xf32>
      tpu.vector_store %arg10[%c0_39, %c0_40], %76 {strides = array<i32>} : memref<8x128xf32, #tpu.memory_space<vmem>>, vector<8x128xf32>,
    } else {
    }
    %c0 = arith.constant 0 : index
    %c0_7 = arith.constant 0 : index
    %13 = vector.load %arg12[%c0, %c0_7] : memref<8x128xf32, #tpu.memory_space<vmem>>, vector<8x128xf32>
    %14 = arith.truncf %13 : vector<8x128xf32> to vector<8x128xbf16>
    %c0_8 = arith.constant 0 : index
    %c0_9 = arith.constant 0 : index
    %15 = vector.load %arg7[%c0_8, %c0_9] : memref<128x128xbf16, #tpu.memory_space<vmem>>, vector<128x128xbf16>
    %cst = arith.constant dense<0.000000e+00> : vector<8x128xf32>
    %16 = tpu.matmul %14, %15, %cst {dimension_numbers = #tpu.dot_dimension_numbers<[1], [0], [0], [1], [0, 0, 1, 1], [], []>} : vector<8x128xbf16>, vector<128x128xbf16>, vector<8x128xf32> -> vector<8x128xf32>
    %c0_10 = arith.constant 0 : index
    %c0_11 = arith.constant 0 : index
    %17 = vector.load %arg8[%c0_10, %c0_11] : memref<1x128xf32, #tpu.memory_space<vmem>>, vector<1x128xf32>
    %18 = vector.broadcast %17 : vector<1x128xf32> to vector<8x128xf32>
    %19 = arith.addf %16, %18 : vector<8x128xf32>
    %c0_12 = arith.constant 0 : index
    %c0_13 = arith.constant 0 : index
    %c0_14 = arith.constant 0 : index
    %20 = vector.load %arg9[%c0_12, %c0_13, %c0_14] : memref<1x8x128xf32, #tpu.memory_space<vmem>>, vector<1x8x128xf32>
    %21 = vector.shape_cast %20 : vector<1x8x128xf32> to vector<8x128xf32>
    %22 = vector.shape_cast %19 : vector<8x128xf32> to vector<1x8x128xf32>
    tpu.vector_store %arg9[%c0_12, %c0_13, %c0_14], %22 {strides = array<i32>} : memref<1x8x128xf32, #tpu.memory_space<vmem>>, vector<1x8x128xf32>,
    %23 = tpu.iota {dimensions = array<i32: 1>} : vector<8x128xi32>
    %24 = arith.sitofp %23 : vector<8x128xi32> to vector<8x128xf32>
    %cst_15 = arith.constant dense<0xFF800000> : vector<8xf32>
    %25 = vector.multi_reduction <maximumf>, %19, %cst_15 [1] : vector<8x128xf32> to vector<8xf32>
    %26 = vector.shape_cast %25 : vector<8xf32> to vector<8x1xf32>
    %27 = vector.broadcast %26 : vector<8x1xf32> to vector<8x128xf32>
    %28 = arith.cmpf oeq, %19, %27 : vector<8x128xf32>
    %cst_16 = arith.constant 1.280000e+02 : f32
    %29 = vector.broadcast %cst_16 : f32 to vector<8x128xf32>
    %30 = arith.select %28, %24, %29 : vector<8x128xi1>, vector<8x128xf32>
    %cst_17 = arith.constant dense<0x7F800000> : vector<8xf32>
    %31 = vector.multi_reduction <minimumf>, %30, %cst_17 [1] : vector<8x128xf32> to vector<8xf32>
    %32 = vector.shape_cast %31 : vector<8xf32> to vector<8x1xf32>
    %33 = arith.fptosi %32 : vector<8x1xf32> to vector<8x1xi32>
    %c128_i32 = arith.constant 128 : i32
    %34 = arith.muli %arg1, %c128_i32 : i32
    %35 = vector.broadcast %34 : i32 to vector<8x1xi32>
    %36 = arith.addi %33, %35 : vector<8x1xi32>
    %c0_i32_18 = arith.constant 0 : i32
    %37 = arith.cmpi eq, %arg1, %c0_i32_18 : i32
    %38 = arith.extui %37 : i1 to i32
    %c0_i32_19 = arith.constant 0 : i32
    %39 = arith.cmpi ne, %38, %c0_i32_19 : i32
    scf.if %39 {
      %c0_22 = arith.constant 0 : index
      %c0_23 = arith.constant 0 : index
      %43 = vector.load %arg13[%c0_22, %c0_23] : memref<8x1xf32, #tpu.memory_space<vmem>>, vector<8x1xf32>
      tpu.vector_store %arg13[%c0_22, %c0_23], %26 {strides = array<i32>} : memref<8x1xf32, #tpu.memory_space<vmem>>, vector<8x1xf32>,
      %c0_24 = arith.constant 0 : index
      %c0_25 = arith.constant 0 : index
      %44 = vector.load %arg14[%c0_24, %c0_25] : memref<8x1xi32, #tpu.memory_space<vmem>>, vector<8x1xi32>
      tpu.vector_store %arg14[%c0_24, %c0_25], %36 {strides = array<i32>} : memref<8x1xi32, #tpu.memory_space<vmem>>, vector<8x1xi32>,
    } else {
    }
    %c0_i32_20 = arith.constant 0 : i32
    %40 = arith.cmpi sgt, %arg1, %c0_i32_20 : i32
    %41 = arith.extui %40 : i1 to i32
    %c0_i32_21 = arith.constant 0 : i32
    %42 = arith.cmpi ne, %41, %c0_i32_21 : i32
    scf.if %42 {
      %c0_22 = arith.constant 0 : index
      %c0_23 = arith.constant 0 : index
      %43 = vector.load %arg13[%c0_22, %c0_23] : memref<8x1xf32, #tpu.memory_space<vmem>>, vector<8x1xf32>
      %44 = arith.cmpf ogt, %26, %43 : vector<8x1xf32>
      %c0_24 = arith.constant 0 : index
      %c0_25 = arith.constant 0 : index
      %45 = vector.load %arg13[%c0_24, %c0_25] : memref<8x1xf32, #tpu.memory_space<vmem>>, vector<8x1xf32>
      %46 = arith.select %44, %26, %45 : vector<8x1xi1>, vector<8x1xf32>
      %c0_26 = arith.constant 0 : index
      %c0_27 = arith.constant 0 : index
      %47 = vector.load %arg13[%c0_26, %c0_27] : memref<8x1xf32, #tpu.memory_space<vmem>>, vector<8x1xf32>
      tpu.vector_store %arg13[%c0_26, %c0_27], %46 {strides = array<i32>} : memref<8x1xf32, #tpu.memory_space<vmem>>, vector<8x1xf32>,
      %c0_28 = arith.constant 0 : index
      %c0_29 = arith.constant 0 : index
      %48 = vector.load %arg14[%c0_28, %c0_29] : memref<8x1xi32, #tpu.memory_space<vmem>>, vector<8x1xi32>
      %49 = arith.select %44, %36, %48 : vector<8x1xi1>, vector<8x1xi32>
      %c0_30 = arith.constant 0 : index
      %c0_31 = arith.constant 0 : index
      %50 = vector.load %arg14[%c0_30, %c0_31] : memref<8x1xi32, #tpu.memory_space<vmem>>, vector<8x1xi32>
      tpu.vector_store %arg14[%c0_30, %c0_31], %49 {strides = array<i32>} : memref<8x1xi32, #tpu.memory_space<vmem>>, vector<8x1xi32>,
    } else {
    }
    return
  }
  func.func @transform_0(%arg0: i32, %arg1: i32) -> (i32, i32) {
    %c0_i32 = arith.constant 0 : i32
    %c0_i32_0 = arith.constant 0 : i32
    %c0_i32_1 = arith.constant 0 : i32
    return %c0_i32, %c0_i32_0 : i32, i32
  }
  func.func @transform_1(%arg0: i32, %arg1: i32) -> (i32, i32) {
    %c0_i32 = arith.constant 0 : i32
    %c0_i32_0 = arith.constant 0 : i32
    %c0_i32_1 = arith.constant 0 : i32
    return %c0_i32, %c0_i32_0 : i32, i32
  }
  func.func @transform_2(%arg0: i32, %arg1: i32) -> (i32, i32) {
    %c0_i32 = arith.constant 0 : i32
    %c0_i32_0 = arith.constant 0 : i32
    %c0_i32_1 = arith.constant 0 : i32
    return %c0_i32, %c0_i32_0 : i32, i32
  }
  func.func @transform_3(%arg0: i32, %arg1: i32) -> (i32, i32) {
    %c0_i32 = arith.constant 0 : i32
    %c0_i32_0 = arith.constant 0 : i32
    %c0_i32_1 = arith.constant 0 : i32
    return %c0_i32, %c0_i32_0 : i32, i32
  }
  func.func @transform_4(%arg0: i32, %arg1: i32) -> (i32, i32) {
    %c0_i32 = arith.constant 0 : i32
    %c0_i32_0 = arith.constant 0 : i32
    %c0_i32_1 = arith.constant 0 : i32
    return %c0_i32, %c0_i32_0 : i32, i32
  }
  func.func @transform_5(%arg0: i32, %arg1: i32) -> (i32, i32) {
    %c0_i32 = arith.constant 0 : i32
    %c0_i32_0 = arith.constant 0 : i32
    return %c0_i32, %arg1 : i32, i32
  }
  func.func @transform_6(%arg0: i32, %arg1: i32) -> (i32, i32) {
    %c0_i32 = arith.constant 0 : i32
    %c0_i32_0 = arith.constant 0 : i32
    return %c0_i32, %arg1 : i32, i32
  }
  func.func @transform_7(%arg0: i32, %arg1: i32) -> (i32, i32, i32) {
    %c0_i32 = arith.constant 0 : i32
    %c0_i32_0 = arith.constant 0 : i32
    return %arg0, %c0_i32, %arg1 : i32, i32, i32
  }
  func.func @transform_8(%arg0: i32, %arg1: i32) -> (i32, i32) {
    %c0_i32 = arith.constant 0 : i32
    %c0_i32_0 = arith.constant 0 : i32
    %c0_i32_1 = arith.constant 0 : i32
    return %c0_i32, %c0_i32_0 : i32, i32
  }
}

</mosaic_0001>

<bundles_post_ra>
// kernel: seq2seq_greedy_forward.3
= control target key start
LH: loop header
LB: loop body
LE: loop exit
PB: predicated region body
PF: predicated region fallthrough
CT: control target
= control target key end

     0   :  { %s2415_s0 = inlined_call_operand.vmem [shape: f32[8,128], index: 0, kind: input, shape index: {}]   ;;  %s2416_s1 = inlined_call_operand.vmem [shape: f32[256,128], index: 1, kind: input, shape index: {}]   ;;  %s2417_s2 = inlined_call_operand.vmem [shape: bf16[128,512], index: 2, kind: input, shape index: {}]   ;;  %s2418_s3 = inlined_call_operand.vmem [shape: bf16[128,512], index: 3, kind: input, shape index: {}]   ;;  %s2419_s4 = inlined_call_operand.vmem [shape: f32[1,512], index: 4, kind: input, shape index: {}]   ;;  %s2420_s5 = inlined_call_operand.vmem [shape: bf16[128,256], index: 5, kind: input, shape index: {}]   ;;  %s2421_s6 = inlined_call_operand.vmem [shape: f32[1,256], index: 6, kind: input, shape index: {}]   ;;  %s2422_s7 = inlined_call_operand.vmem [shape: f32[6,8,256], index: 7, kind: output, shape index: {0}]   ;;  %s2423_s8 = inlined_call_operand.vmem [shape: f32[8,128], index: 8, kind: output, shape index: {1}]  }
   0x1   :  { %2424 = sst [smem:[#allocation8_spill]] %s2415_s0 }
   0x2   :  { %2425 = sst [smem:[#allocation9_spill]] %s2420_s5 }
   0x3   :  { %2426 = sst [smem:[#allocation10_spill]] %s2422_s7 }
   0x4   :  { %s1845_s27 = smov 0   ;;  %s1847_s28 = smov 0  }
   0x5   :  { %s1849_s29 = smov 0   ;;  %s1851_s30 = smov 0  }
   0x6   :  { %s1853_s9 = smov 0   ;;  %s1855_s10 = smov 0  }
   0x7   :  { %s1857_s11 = smov 0  }
   0x8 LB: > { %s28_s12 = sadd.s32 1, %s1790_s9  ;;  %s31_s13 = sadd.s32 1, %s1794_s10  ;;  %s1798_s11 = sphi %s1857_s11, %s19_s11   ;;  %s1794_s10 = sphi %s1855_s10, %s2438_s10   ;;  %s1790_s9 = sphi %s1853_s9, %s2437_s9   ;;  %s1786_s30 = sphi %s1851_s30, %s2436_s30   ;;  %s1782_s29 = sphi %s1849_s29, %s2435_s29   ;;  %s1778_s28 = sphi %s1847_s28, %s2434_s28   ;;  %s1774_s27 = sphi %s1845_s27, %s2433_s27  }
   0x9   : > { %p29_p0 = scmp.ge.s32.totalorder %s28_s12, 2  ;;  %s143_s14 = sadd.s32 1, %s1778_s28 }
   0xa   : > { %p150_p1 = scmp.ne.s32.totalorder %s1778_s28, %s1774_s27  ;;  %p151_p2 = scmp.eq.s32.totalorder %s1798_s11, 0 }
   0xb   : > { %s2440_s12 = smov (%p29_p0, %s28_s12), 0  ;;  %s2442_s13 = smov (!%p29_p0, %s31_s13), %s1794_s10 }
   0xc   : > { %s140_s15 = ssub.s32 %s1790_s9, %s2440_s12  ;;  %p152_p3 = por %p151_p2, %p150_p1 }
   0xd   : > { %p33_p4 = scmp.ge.s32.totalorder %s2442_s13, 6  ;;  %p141_p5 = scmp.eq.s32.totalorder %s140_s15, 0 }
   0xe   : > { %p1280_p6 = scmp.ge.s32.totalorder %s1798_s11, 12 }
   0xf   : > { %s2444_s13 = smov (%p33_p4, %s2442_s13), 0 }
  0x10   : > { %2427 = sst [smem:[#allocation7_spill]] %s2444_s13  ;;  %266 = sbr.rel (%p1280_p6) target bundleno = 47 (0x2f), region = 36 }
  0x11   : > { %s1894_s16 = scalar_select %p141_p5, %s1778_s28, %s143_s14  }
  0x15   : > { %269 = sbr.rel (!%p152_p3) target bundleno = 47 (0x2f), region = 40  ;;  %s271_s17 = sand.u32 (%p152_p3), 1, %s1778_s28  }
  0x16   : > { %s1282_s18 = sshll.u32 (%p152_p3), %s1790_s9, 2  ;;  %s1281_s19 = sshll.u32 (%p152_p3), %s271_s17, 6 }
  0x17   : > { %s2428_s5 = sld [smem:[#allocation9_spill]] (%p152_p3)  ;;  %s273_s23 = scalar_lea.vmem (%p152_p3), [#allocation6], %s1281_s19 }
  0x1d   : > { %s1902_s22 = scalar_lea.vmem %s2428_s5, %s1282_s18 }
  0x1e   : > { %v292_v0 = vld [vmem:[%s1902_s22] sm:$0xf]  ;;  %v294_v1 = vld [vmem:[%s1902_s22 + $0x8] sm:$0xf]  ;;  %v296_v2 = vld [vmem:[%s1902_s22 + $0x10] sm:$0xf] }
  0x1f   : > { %293 = vst [vmem:[%s273_s23] sm:$0xf] %v292_v0  ;;  %v298_v3 = vld [vmem:[%s1902_s22 + $0x18] sm:$0xf]  ;;  %v300_v4 = vld [vmem:[%s1902_s22 + $0x20] sm:$0xf] }
  0x20   : > { %295 = vst [vmem:[%s273_s23 + $0x4] sm:$0xf] %v294_v1  ;;  %v302_v5 = vld [vmem:[%s1902_s22 + $0x28] sm:$0xf]  ;;  %v304_v6 = vld [vmem:[%s1902_s22 + $0x30] sm:$0xf] }
  0x21   : > { %297 = vst [vmem:[%s273_s23 + $0x8] sm:$0xf] %v296_v2  ;;  %v306_v7 = vld [vmem:[%s1902_s22 + $0x38] sm:$0xf]  ;;  %v308_v8 = vld [vmem:[%s1902_s22 + $0x40] sm:$0xf] }
  0x22   : > { %299 = vst [vmem:[%s273_s23 + $0xc] sm:$0xf] %v298_v3  ;;  %v310_v9 = vld [vmem:[%s1902_s22 + $0x48] sm:$0xf]  ;;  %v312_v10 = vld [vmem:[%s1902_s22 + $0x50] sm:$0xf] }
  0x23   : > { %301 = vst [vmem:[%s273_s23 + $0x10] sm:$0xf] %v300_v4  ;;  %v314_v11 = vld [vmem:[%s1902_s22 + $0x58] sm:$0xf]  ;;  %v316_v12 = vld [vmem:[%s1902_s22 + $0x60] sm:$0xf] }
  0x24   : > { %303 = vst [vmem:[%s273_s23 + $0x14] sm:$0xf] %v302_v5  ;;  %v318_v13 = vld [vmem:[%s1902_s22 + $0x68] sm:$0xf]  ;;  %v320_v14 = vld [vmem:[%s1902_s22 + $0x70] sm:$0xf] }
  0x25   : > { %305 = vst [vmem:[%s273_s23 + $0x18] sm:$0xf] %v304_v6  ;;  %v322_v15 = vld [vmem:[%s1902_s22 + $0x78] sm:$0xf] }
  0x26   : > { %307 = vst [vmem:[%s273_s23 + $0x1c] sm:$0xf] %v306_v7 }
  0x27   : > { %309 = vst [vmem:[%s273_s23 + $0x20] sm:$0xf] %v308_v8 }
  0x28   : > { %311 = vst [vmem:[%s273_s23 + $0x24] sm:$0xf] %v310_v9 }
  0x29   : > { %313 = vst [vmem:[%s273_s23 + $0x28] sm:$0xf] %v312_v10 }
  0x2a   : > { %315 = vst [vmem:[%s273_s23 + $0x2c] sm:$0xf] %v314_v11 }
  0x2b   : > { %317 = vst [vmem:[%s273_s23 + $0x30] sm:$0xf] %v316_v12 }
  0x2c   : > { %319 = vst [vmem:[%s273_s23 + $0x34] sm:$0xf] %v318_v13 }
  0x2d   : > { %321 = vst [vmem:[%s273_s23 + $0x38] sm:$0xf] %v320_v14 }
  0x2e   : > { %323 = vst [vmem:[%s273_s23 + $0x3c] sm:$0xf] %v322_v15 }
  0x2f PF: > { %p1283_p7 = scmp.ge.s32.totalorder %s1798_s11, 1  ;;  %p384_p8 = scmp.lt.s32.totalorder %s1798_s11, 13 }
  0x31   : > { %p385_p9 = pnand %p1283_p7, %p384_p8 }
  0x32   : > { %s391_s24 = sand.u32 (!%p385_p9), 1, %s1774_s27   ;;  %p430_p10 = scmp.lt.s32.totalorder (!%p385_p9), %s1782_s29, 1 }
  0x33   : > { %388 = sbr.rel (%p385_p9) target bundleno = 799 (0x31f), region = 85  ;;  %s1284_s25 = sshll.u32 (!%p385_p9), %s391_s24, 6 }
  0x34   : > { %p433_p11 = scmp.lt.s32.totalorder (!%p385_p9), %s1786_s30, 5  ;;  %p441_p12 = scmp.eq.s32.totalorder (!%p385_p9), %s1782_s29, 0 }
  0x35   : > { %p442_p13 = scmp.eq.s32.totalorder (!%p385_p9), %s1786_s30, 0  ;;  %s2429_s7 = sld [smem:[#allocation10_spill]] (!%p385_p9) }
  0x36   : > { %s1943_s24 = scalar_lea.vmem (!%p385_p9), [#allocation6], %s1284_s25 }
  0x37   : > { %p443_p0 = pnand (!%p385_p9), %p442_p13, %p441_p12 }
  0x38   : > { %s1927_s26 = scalar_select %p430_p10, %s1782_s29, 1 }
  0x39   : > { %s434_s14 = scalar_select %p433_p11, %s1786_s30, 5 }
  0x3a   : > { %446 = sbr.rel (%p443_p0) target bundleno = 66 (0x42), region = 93  ;;  %s2430_s0 = sld [smem:[#allocation8_spill]] (!%p443_p0) }
  0x3b   : > { %s1285_s19 = sshll.u32 %s434_s14, 1 }
  0x3c   : > { %s438_s20 = sadd.s32 %s1285_s19, %s1927_s26 }
  0x3d   : > { %s1286_s21 = sshll.u32 %s438_s20, 3 }
  0x3e   : > { %s1941_s23 = scalar_lea.vmem %s2429_s7, %s1286_s21 }
  0x3f   : > { %v1732_v17 = vld [vmem:[%s2416_s1 + $0x1] ss:$0 sm:$0xff] }
  0x40   : > { %v447_v16 = vld [vmem:[%s2430_s0] sm:$0xff]  ;;  %451 = vst [vmem:[#allocation2] sm:$0xff] %v1732_v17 }
  0x41   : > { %448 = vst [vmem:[#allocation3] sm:$0xff] %v447_v16 }
  0x42 PF: > { %p452_p1 = scmp.gt.s32.totalorder %s1786_s30, 0 }
  0x44   : > { %p453_p2 = pnand %p452_p1, %p441_p12 }
  0x46   : > { %456 = sbr.rel (%p453_p2) target bundleno = 136 (0x88), region = 97 }
  0x4b   : > { %v457_v18 = vld [vmem:[#allocation5] sm:$0x1]  ;;  %v462_v19 = vld [vmem:[#allocation5 + $0x1] sm:$0x1]  ;;  %v467_v20 = vld [vmem:[#allocation5 + $0x2] sm:$0x1] }
  0x4c   : > { %1655 = vpush %v457_v18  ;;  %v472_v21 = vld [vmem:[#allocation5 + $0x3] sm:$0x1]  ;;  %v477_v22 = vld [vmem:[#allocation5 + $0x4] sm:$0x1]  ;;  %v482_v23 = vld [vmem:[#allocation5 + $0x5] sm:$0x1] }
  0x4d   : > { %1657 = vpush %v462_v19  ;;  %v487_v24 = vld [vmem:[#allocation5 + $0x6] sm:$0x1]  ;;  %v492_v25 = vld [vmem:[#allocation5 + $0x7] sm:$0x1] }
  0x4e   : > { %1659 = vpush %v467_v20 }
  0x4f   : > { %1661 = vpush %v472_v21 }
  0x50   : > { %1663 = vpush %v477_v22 }
  0x51   : > { %1665 = vpush %v482_v23 }
  0x52   : > { %1667 = vpush %v487_v24 }
  0x53   : > { %1669 = vpush %v492_v25 }
  0x7d   : > { %s1656_s5 = spop %1655 }
  0x7e   : > { %s459_s25 = scalar_lea.vmem %s2416_s1, %s1656_s5  ;;  %s1658_s14 = spop %1657 }
  0x7f   : > { %v460_v26 = vld [vmem:[%s459_s25] sm:$0x1]  ;;  %s464_s21 = scalar_lea.vmem %s2416_s1, %s1658_s14  ;;  %s1660_s27 = spop %1659 }
  0x80   : > { %461 = vst [vmem:[#allocation2] sm:$0x1] %v460_v26  ;;  %v465_v27 = vld [vmem:[%s464_s21] sm:$0x1]  ;;  %s469_s17 = scalar_lea.vmem %s2416_s1, %s1660_s27  ;;  %s1662_s18 = spop %1661 }
  0x81   : > { %466 = vst [vmem:[#allocation2 + $0x1] sm:$0x1] %v465_v27  ;;  %v470_v28 = vld [vmem:[%s469_s17] sm:$0x1]  ;;  %s474_s5 = scalar_lea.vmem %s2416_s1, %s1662_s18  ;;  %s1664_s30 = spop %1663 }
  0x82   : > { %471 = vst [vmem:[#allocation2 + $0x2] sm:$0x1] %v470_v28  ;;  %v475_v29 = vld [vmem:[%s474_s5] sm:$0x1]  ;;  %s479_s14 = scalar_lea.vmem %s2416_s1, %s1664_s30  ;;  %s1666_s19 = spop %1665 }
  0x83   : > { %476 = vst [vmem:[#allocation2 + $0x3] sm:$0x1] %v475_v29  ;;  %v480_v30 = vld [vmem:[%s479_s14] sm:$0x1]  ;;  %s484_s27 = scalar_lea.vmem %s2416_s1, %s1666_s19  ;;  %s1668_s22 = spop %1667 }
  0x84   : > { %481 = vst [vmem:[#allocation2 + $0x4] sm:$0x1] %v480_v30  ;;  %v485_v31 = vld [vmem:[%s484_s27] sm:$0x1]  ;;  %s489_s7 = scalar_lea.vmem %s2416_s1, %s1668_s22  ;;  %s1670_s18 = spop %1669 }
  0x85   : > { %486 = vst [vmem:[#allocation2 + $0x5] sm:$0x1] %v485_v31  ;;  %v490_v32 = vld [vmem:[%s489_s7] sm:$0x1]  ;;  %s494_s30 = scalar_lea.vmem %s2416_s1, %s1670_s18 }
  0x86   : > { %491 = vst [vmem:[#allocation2 + $0x6] sm:$0x1] %v490_v32  ;;  %v495_v33 = vld [vmem:[%s494_s30] sm:$0x1] }
  0x87   : > { %496 = vst [vmem:[#allocation2 + $0x7] sm:$0x1] %v495_v33 }
  0x88 PF: > { %p1287_p3 = scmp.ne.s32.totalorder %s1782_s29, 0 }
  0x8a   : > { %499 = sbr.rel (%p1287_p3) target bundleno = 384 (0x180), region = 101 }
  0x8f   : > { %v1402_v34 = vld [vmem:[%s2418_s3 + $0xe0] sm:$0xf]  ;;  %v1645_v35 = vld [vmem:[%s2418_s3 + $0xec] sm:$0xf0]  ;;  %v1643_v36 = vld [vmem:[%s2418_s3 + $0xe4] sm:$0xf] }
  0x90   : > { %v1403_v37 = vor.u32 %v1645_v35, %v1402_v34  ;;  %v1404_v38 = vld [vmem:[%s2418_s3 + $0xf0] sm:$0xf0]  ;;  %v1386_v39 = vld [vmem:[%s2418_s3 + $0xc0] sm:$0xf]  ;;  %v1641_v40 = vld [vmem:[%s2418_s3 + $0xcc] sm:$0xf0] }
  0x91   : > { %v1407_v41 = vor.u32 %v1643_v36, %v1404_v38  ;;  %v1639_v42 = vld [vmem:[%s2418_s3 + $0xc4] sm:$0xf]  ;;  %v1388_v43 = vld [vmem:[%s2418_s3 + $0xd0] sm:$0xf0]  ;;  %v1644_v44 = vld [vmem:[%s2418_s3 + $0xec] sm:$0xf]  ;;  %v1387_v45 = vor.u32 %v1641_v40, %v1386_v39 }
  0x92   : > { %729 = vmatpush.bf16.msra.mxu0 %v1403_v37  ;;  %v1412_v46 = vld [vmem:[%s2418_s3 + $0xf8] sm:$0xf0]  ;;  %v1370_v47 = vld [vmem:[%s2418_s3 + $0xa0] sm:$0xf]  ;;  %v1637_v48 = vld [vmem:[%s2418_s3 + $0xac] sm:$0xf0]  ;;  %v1391_v49 = vor.u32 %v1639_v42, %v1388_v43 }
  0x93   : > { %742 = vmatpush.bf16.msra.mxu1 %v1407_v41  ;;  %v1415_v50 = vor.u32 %v1644_v44, %v1412_v46  ;;  %v1635_v51 = vld [vmem:[%s2418_s3 + $0xa4] sm:$0xf]  ;;  %v1372_v52 = vld [vmem:[%s2418_s3 + $0xb0] sm:$0xf0]  ;;  %v1410_v53 = vld [vmem:[%s2418_s3 + $0xe8] sm:$0xf]  ;;  %v1371_v59 = vor.u32 %v1637_v48, %v1370_v47 }
  0x94   : > { %v1646_v54 = vld [vmem:[%s2418_s3 + $0xf4] sm:$0xf0]  ;;  %v1640_v55 = vld [vmem:[%s2418_s3 + $0xcc] sm:$0xf]  ;;  %v1396_v56 = vld [vmem:[%s2418_s3 + $0xd8] sm:$0xf0]  ;;  %v1375_v63 = vor.u32 %v1635_v51, %v1372_v52 }
  0x95   : > { %768 = vmatpush.bf16.msra.mxu3 %v1415_v50  ;;  %v1411_v57 = vor.u32 %v1646_v54, %v1410_v53  ;;  %v1399_v58 = vor.u32 %v1640_v55, %v1396_v56  ;;  %v1354_v60 = vld [vmem:[%s2418_s3 + $0x80] sm:$0xf]  ;;  %v1394_v61 = vld [vmem:[%s2418_s3 + $0xc8] sm:$0xf]  ;;  %v1642_v62 = vld [vmem:[%s2418_s3 + $0xd4] sm:$0xf0] }
  0x96   : > { %730 = vmatpush.bf16.msra.mxu0 %v1387_v45  ;;  %v1633_v0 = vld [vmem:[%s2418_s3 + $0x8c] sm:$0xf0]  ;;  %v1395_v1 = vor.u32 %v1642_v62, %v1394_v61  ;;  %v1636_v2 = vld [vmem:[%s2418_s3 + $0xac] sm:$0xf]  ;;  %v1380_v3 = vld [vmem:[%s2418_s3 + $0xb8] sm:$0xf0] }
  0x97   : > { %743 = vmatpush.bf16.msra.mxu1 %v1391_v49  ;;  %755 = vmatpush.bf16.msra.mxu2 %v1411_v57  ;;  %v1631_v4 = vld [vmem:[%s2418_s3 + $0x84] sm:$0xf]  ;;  %v1356_v5 = vld [vmem:[%s2418_s3 + $0x90] sm:$0xf0]  ;;  %v1383_v6 = vor.u32 %v1636_v2, %v1380_v3  ;;  %v1378_v7 = vld [vmem:[%s2418_s3 + $0xa8] sm:$0xf]  ;;  %v1355_v9 = vor.u32 %v1633_v0, %v1354_v60 }
  0x98   : > { %v1638_v8 = vld [vmem:[%s2418_s3 + $0xb4] sm:$0xf0]  ;;  %v1632_v10 = vld [vmem:[%s2418_s3 + $0x8c] sm:$0xf]  ;;  %v1364_v11 = vld [vmem:[%s2418_s3 + $0x98] sm:$0xf0]  ;;  %v1359_v12 = vor.u32 %v1631_v4, %v1356_v5 }
  0x99   : > { %769 = vmatpush.bf16.msra.mxu3 %v1399_v58  ;;  %v1338_v13 = vld [vmem:[%s2418_s3 + $0x60] sm:$0xf]  ;;  %v1629_v14 = vld [vmem:[%s2418_s3 + $0x6c] sm:$0xf0]  ;;  %v1627_v15 = vld [vmem:[%s2418_s3 + $0x64] sm:$0xf]  ;;  %v1379_v16 = vor.u32 %v1638_v8, %v1378_v7  ;;  %v1367_v20 = vor.u32 %v1632_v10, %v1364_v11 }
  0x9a   : > { %731 = vmatpush.bf16.msra.mxu0 %v1371_v59  ;;  %v1340_v17 = vld [vmem:[%s2418_s3 + $0x70] sm:$0xf0]  ;;  %v1362_v18 = vld [vmem:[%s2418_s3 + $0x88] sm:$0xf]  ;;  %v1634_v19 = vld [vmem:[%s2418_s3 + $0x94] sm:$0xf0]  ;;  %v1339_v21 = vor.u32 %v1629_v14, %v1338_v13 }
  0x9b   : > { %744 = vmatpush.bf16.msra.mxu1 %v1375_v63  ;;  %756 = vmatpush.bf16.msra.mxu2 %v1395_v1  ;;  %v1628_v22 = vld [vmem:[%s2418_s3 + $0x6c] sm:$0xf]  ;;  %v1348_v23 = vld [vmem:[%s2418_s3 + $0x78] sm:$0xf0]  ;;  %v1343_v24 = vor.u32 %v1627_v15, %v1340_v17  ;;  %v1322_v25 = vld [vmem:[%s2418_s3 + $0x40] sm:$0xf]  ;;  %v1363_v28 = vor.u32 %v1634_v19, %v1362_v18 }
  0x9c   : > { %v1625_v26 = vld [vmem:[%s2418_s3 + $0x4c] sm:$0xf0]  ;;  %v1623_v27 = vld [vmem:[%s2418_s3 + $0x44] sm:$0xf]  ;;  %v1324_v29 = vld [vmem:[%s2418_s3 + $0x50] sm:$0xf0]  ;;  %v1351_v32 = vor.u32 %v1628_v22, %v1348_v23 }
  0x9d   : > { %770 = vmatpush.bf16.msra.mxu3 %v1383_v6  ;;  %v1346_v30 = vld [vmem:[%s2418_s3 + $0x68] sm:$0xf]  ;;  %v1630_v31 = vld [vmem:[%s2418_s3 + $0x74] sm:$0xf0]  ;;  %v1323_v33 = vor.u32 %v1625_v26, %v1322_v25  ;;  %v1624_v34 = vld [vmem:[%s2418_s3 + $0x4c] sm:$0xf]  ;;  %v1327_v36 = vor.u32 %v1623_v27, %v1324_v29 }
  0x9e   : > { %732 = vmatpush.bf16.msra.mxu0 %v1355_v9  ;;  %v1332_v35 = vld [vmem:[%s2418_s3 + $0x58] sm:$0xf0]  ;;  %v1306_v37 = vld [vmem:[%s2418_s3 + $0x20] sm:$0xf]  ;;  %v1621_v38 = vld [vmem:[%s2418_s3 + $0x2c] sm:$0xf0]  ;;  %v1347_v40 = vor.u32 %v1630_v31, %v1346_v30 }
  0x9f   : > { %745 = vmatpush.bf16.msra.mxu1 %v1359_v12  ;;  %757 = vmatpush.bf16.msra.mxu2 %v1379_v16  ;;  %v1619_v39 = vld [vmem:[%s2418_s3 + $0x24] sm:$0xf]  ;;  %v1308_v41 = vld [vmem:[%s2418_s3 + $0x30] sm:$0xf0]  ;;  %v1330_v42 = vld [vmem:[%s2418_s3 + $0x48] sm:$0xf]  ;;  %v1335_v44 = vor.u32 %v1624_v34, %v1332_v35  ;;  %v1307_v45 = vor.u32 %v1621_v38, %v1306_v37 }
  0xa0   : > { %v1626_v43 = vld [vmem:[%s2418_s3 + $0x54] sm:$0xf0]  ;;  %v1290_v46 = vld [vmem:[%s2418_s3] sm:$0xf]  ;;  %v1620_v47 = vld [vmem:[%s2418_s3 + $0x2c] sm:$0xf]  ;;  %v1311_v49 = vor.u32 %v1619_v39, %v1308_v41 }
  0xa1   : > { %771 = vmatpush.bf16.msra.mxu3 %v1367_v20  ;;  %v1316_v48 = vld [vmem:[%s2418_s3 + $0x38] sm:$0xf0]  ;;  %v1617_v50 = vld [vmem:[%s2418_s3 + $0xc] sm:$0xf0]  ;;  %v1615_v51 = vld [vmem:[%s2418_s3 + $0x4] sm:$0xf]  ;;  %v1331_v53 = vor.u32 %v1626_v43, %v1330_v42 }
  0xa2   : > { %733 = vmatpush.bf16.msra.mxu0 %v1339_v21  ;;  %v1292_v52 = vld [vmem:[%s2418_s3 + $0x10] sm:$0xf0]  ;;  %v1530_v54 = vld [vmem:[%s2417_s2 + $0xe0] sm:$0xf]  ;;  %v1613_v55 = vld [vmem:[%s2417_s2 + $0xec] sm:$0xf0]  ;;  %v1319_v58 = vor.u32 %v1620_v47, %v1316_v48  ;;  %v1291_v61 = vor.u32 %v1617_v50, %v1290_v46 }
  0xa3   : > { %746 = vmatpush.bf16.msra.mxu1 %v1343_v24  ;;  %758 = vmatpush.bf16.msra.mxu2 %v1363_v28  ;;  %v1611_v56 = vld [vmem:[%s2417_s2 + $0xe4] sm:$0xf]  ;;  %v1532_v57 = vld [vmem:[%s2417_s2 + $0xf0] sm:$0xf0]  ;;  %v1314_v59 = vld [vmem:[%s2418_s3 + $0x28] sm:$0xf]  ;;  %v1295_v1 = vor.u32 %v1615_v51, %v1292_v52  ;;  %v1531_v2 = vor.u32 %v1613_v55, %v1530_v54 }
  0xa4   : > { %v1622_v60 = vld [vmem:[%s2418_s3 + $0x34] sm:$0xf0]  ;;  %v1616_v62 = vld [vmem:[%s2418_s3 + $0xc] sm:$0xf]  ;;  %v1300_v63 = vld [vmem:[%s2418_s3 + $0x18] sm:$0xf0]  ;;  %v1535_v5 = vor.u32 %v1611_v56, %v1532_v57 }
  0xa5   : > { %772 = vmatpush.bf16.msra.mxu3 %v1351_v32  ;;  %v2179_v0 = vld [vmem:[#allocation3] sm:$0xff]  ;;  %v1540_v4 = vld [vmem:[%s2417_s2 + $0xf8] sm:$0xf0]  ;;  %v1315_v6 = vor.u32 %v1622_v60, %v1314_v59  ;;  %v1514_v7 = vld [vmem:[%s2417_s2 + $0xc0] sm:$0xf]  ;;  %v1303_v11 = vor.u32 %v1616_v62, %v1300_v63 }
  0xa6   : > { %734 = vmatpush.bf16.msra.mxu0 %v1323_v33  ;;  %v1612_v3 = vld [vmem:[%s2417_s2 + $0xec] sm:$0xf]  ;;  %v1609_v8 = vld [vmem:[%s2417_s2 + $0xcc] sm:$0xf0]  ;;  %v1607_v9 = vld [vmem:[%s2417_s2 + $0xc4] sm:$0xf]  ;;  %v568_v12 = vpack.c.bf16 %v2179_v0, %v2179_v0 }
  0xa7   : > { %747 = vmatpush.bf16.msra.mxu1 %v1327_v36  ;;  %759 = vmatpush.bf16.msra.mxu2 %v1347_v40  ;;  %v1516_v10 = vld [vmem:[%s2417_s2 + $0xd0] sm:$0xf0]  ;;  %v1298_v13 = vld [vmem:[%s2418_s3 + $0x8] sm:$0xf]  ;;  %v1618_v14 = vld [vmem:[%s2418_s3 + $0x14] sm:$0xf0]  ;;  %v1543_v15 = vor.u32 %v1612_v3, %v1540_v4  ;;  %v1515_v18 = vor.u32 %v1609_v8, %v1514_v7 }
  0xa8   : > { %v1538_v16 = vld [vmem:[%s2417_s2 + $0xe8] sm:$0xf]  ;;  %v1614_v17 = vld [vmem:[%s2417_s2 + $0xf4] sm:$0xf0]  ;;  %v1608_v19 = vld [vmem:[%s2417_s2 + $0xcc] sm:$0xf]  ;;  %v1519_v21 = vor.u32 %v1607_v9, %v1516_v10  ;;  %v1299_v22 = vor.u32 %v1618_v14, %v1298_v13 }
  0xa9   : > { %773 = vmatpush.bf16.msra.mxu3 %v1335_v44  ;;  %v1524_v20 = vld [vmem:[%s2417_s2 + $0xd8] sm:$0xf0]  ;;  %v1498_v23 = vld [vmem:[%s2417_s2 + $0xa0] sm:$0xf]  ;;  %v1605_v24 = vld [vmem:[%s2417_s2 + $0xac] sm:$0xf0]  ;;  %v1539_v27 = vor.u32 %v1614_v17, %v1538_v16 }
  0xaa   : > { %735 = vmatpush.bf16.msra.mxu0 %v1307_v45  ;;  %v1603_v25 = vld [vmem:[%s2417_s2 + $0xa4] sm:$0xf]  ;;  %v1500_v26 = vld [vmem:[%s2417_s2 + $0xb0] sm:$0xf0]  ;;  %v1527_v28 = vor.u32 %v1608_v19, %v1524_v20  ;;  %v1522_v29 = vld [vmem:[%s2417_s2 + $0xc8] sm:$0xf]  ;;  %v1499_v31 = vor.u32 %v1605_v24, %v1498_v23 }
  0xab   : > { %748 = vmatpush.bf16.msra.mxu1 %v1311_v49  ;;  %760 = vmatpush.bf16.msra.mxu2 %v1331_v53  ;;  %v1610_v30 = vld [vmem:[%s2417_s2 + $0xd4] sm:$0xf0]  ;;  %v1604_v32 = vld [vmem:[%s2417_s2 + $0xac] sm:$0xf]  ;;  %v1508_v33 = vld [vmem:[%s2417_s2 + $0xb8] sm:$0xf0]  ;;  %v1503_v34 = vor.u32 %v1603_v25, %v1500_v26 }
  0xac   : > { %v1482_v35 = vld [vmem:[%s2417_s2 + $0x80] sm:$0xf]  ;;  %v1601_v36 = vld [vmem:[%s2417_s2 + $0x8c] sm:$0xf0]  ;;  %v1599_v37 = vld [vmem:[%s2417_s2 + $0x84] sm:$0xf]  ;;  %v1523_v39 = vor.u32 %v1610_v30, %v1522_v29  ;;  %v1511_v40 = vor.u32 %v1604_v32, %v1508_v33 }
  0xad   : > { %774 = vmatpush.bf16.msra.mxu3 %v1319_v58  ;;  %v1484_v38 = vld [vmem:[%s2417_s2 + $0x90] sm:$0xf0]  ;;  %v1506_v41 = vld [vmem:[%s2417_s2 + $0xa8] sm:$0xf]  ;;  %v1606_v42 = vld [vmem:[%s2417_s2 + $0xb4] sm:$0xf0]  ;;  %v1483_v43 = vor.u32 %v1601_v36, %v1482_v35 }
  0xae   : > { %736 = vmatpush.bf16.msra.mxu0 %v1291_v61  ;;  %v1600_v44 = vld [vmem:[%s2417_s2 + $0x8c] sm:$0xf]  ;;  %v1492_v45 = vld [vmem:[%s2417_s2 + $0x98] sm:$0xf0]  ;;  %v1487_v46 = vor.u32 %v1599_v37, %v1484_v38  ;;  %v1466_v47 = vld [vmem:[%s2417_s2 + $0x60] sm:$0xf]  ;;  %v1507_v51 = vor.u32 %v1606_v42, %v1506_v41 }
  0xaf   : > { %749 = vmatpush.bf16.msra.mxu1 %v1295_v1  ;;  %761 = vmatpush.bf16.msra.mxu2 %v1315_v6  ;;  %v1597_v48 = vld [vmem:[%s2417_s2 + $0x6c] sm:$0xf0]  ;;  %v1595_v49 = vld [vmem:[%s2417_s2 + $0x64] sm:$0xf]  ;;  %v1468_v50 = vld [vmem:[%s2417_s2 + $0x70] sm:$0xf0]  ;;  %v1495_v52 = vor.u32 %v1600_v44, %v1492_v45 }
  0xb0   : > { %v1490_v53 = vld [vmem:[%s2417_s2 + $0x88] sm:$0xf]  ;;  %v1602_v54 = vld [vmem:[%s2417_s2 + $0x94] sm:$0xf0]  ;;  %v1467_v55 = vor.u32 %v1597_v48, %v1466_v47  ;;  %v1596_v56 = vld [vmem:[%s2417_s2 + $0x6c] sm:$0xf]  ;;  %v1471_v58 = vor.u32 %v1595_v49, %v1468_v50 }
  0xb1   : > { %775 = vmatpush.bf16.msra.mxu3 %v1303_v11  ;;  %737 = vmatmul.bf16.vlgmr.msra.gmra.mxu0 %v568_v12  ;;  %v1476_v57 = vld [vmem:[%s2417_s2 + $0x78] sm:$0xf0]  ;;  %v1450_v59 = vld [vmem:[%s2417_s2 + $0x40] sm:$0xf]  ;;  %v1593_v60 = vld [vmem:[%s2417_s2 + $0x4c] sm:$0xf0]  ;;  %v1491_v63 = vor.u32 %v1602_v54, %v1490_v53 }
  0xb2   : > { %941 = vmatpush.bf16.msrb.mxu0 %v1531_v2  ;;  %750 = vmatmul.bf16.vlgmr.msra.gmra.mxu1 %v568_v12  ;;  %v1591_v61 = vld [vmem:[%s2417_s2 + $0x44] sm:$0xf]  ;;  %v1452_v62 = vld [vmem:[%s2417_s2 + $0x50] sm:$0xf0]  ;;  %v1479_v1 = vor.u32 %v1596_v56, %v1476_v57  ;;  %v1474_v2 = vld [vmem:[%s2417_s2 + $0x68] sm:$0xf]  ;;  %v1451_v4 = vor.u32 %v1593_v60, %v1450_v59 }
  0xb3   : > { %954 = vmatpush.bf16.msrb.mxu1 %v1535_v5  ;;  %762 = vmatpush.bf16.msra.mxu2 %v1299_v22  ;;  %v1598_v3 = vld [vmem:[%s2417_s2 + $0x74] sm:$0xf0]  ;;  %v1592_v5 = vld [vmem:[%s2417_s2 + $0x4c] sm:$0xf]  ;;  %v1460_v6 = vld [vmem:[%s2417_s2 + $0x58] sm:$0xf0]  ;;  %v1455_v7 = vor.u32 %v1591_v61, %v1452_v62 }
  0xb4   : > { %776 = vmatmul.bf16.vlgmr.msra.gmra.mxu3 %v568_v12  ;;  %v1434_v8 = vld [vmem:[%s2417_s2 + $0x20] sm:$0xf]  ;;  %v1589_v9 = vld [vmem:[%s2417_s2 + $0x2c] sm:$0xf0]  ;;  %v1587_v10 = vld [vmem:[%s2417_s2 + $0x24] sm:$0xf]  ;;  %v1463_v13 = vor.u32 %v1592_v5, %v1460_v6 }
  0xb5   : > { %980 = vmatpush.bf16.msrb.mxu3 %v1543_v15  ;;  %v1436_v11 = vld [vmem:[%s2417_s2 + $0x30] sm:$0xf0]  ;;  %v1458_v14 = vld [vmem:[%s2417_s2 + $0x48] sm:$0xf]  ;;  %v1594_v15 = vld [vmem:[%s2417_s2 + $0x54] sm:$0xf0]  ;;  %v1435_v16 = vor.u32 %v1589_v9, %v1434_v8 }
  0xb6   : > { %942 = vmatpush.bf16.msrb.mxu0 %v1515_v18  ;;  %763 = vmatmul.bf16.vlgmr.msra.gmra.mxu2 %v568_v12  ;;  %v1475_v12 = vor.u32 %v1598_v3, %v1474_v2  ;;  %v1588_v17 = vld [vmem:[%s2417_s2 + $0x2c] sm:$0xf]  ;;  %v1444_v18 = vld [vmem:[%s2417_s2 + $0x38] sm:$0xf0]  ;;  %v1439_v19 = vor.u32 %v1587_v10, %v1436_v11  ;;  %v1418_v20 = vld [vmem:[%s2417_s2] sm:$0xf]  ;;  %v1459_v24 = vor.u32 %v1594_v15, %v1458_v14 }
  0xb7   : > { %955 = vmatpush.bf16.msrb.mxu1 %v1519_v21  ;;  %967 = vmatpush.bf16.msrb.mxu2 %v1539_v27  ;;  %v1585_v21 = vld [vmem:[%s2417_s2 + $0xc] sm:$0xf0]  ;;  %v1583_v22 = vld [vmem:[%s2417_s2 + $0x4] sm:$0xf]  ;;  %v1420_v23 = vld [vmem:[%s2417_s2 + $0x10] sm:$0xf0]  ;;  %v1447_v25 = vor.u32 %v1588_v17, %v1444_v18 }
  0xb8   : > { %v1442_v26 = vld [vmem:[%s2417_s2 + $0x28] sm:$0xf]  ;;  %v1590_v27 = vld [vmem:[%s2417_s2 + $0x34] sm:$0xf0]  ;;  %v500_v29 = vld [vmem:[#allocation2] sm:$0xff]  ;;  %v1423_v32 = vor.u32 %v1583_v22, %v1420_v23 }
  0xb9   : > { %981 = vmatpush.bf16.msrb.mxu3 %v1527_v28  ;;  %v1419_v28 = vor.u32 %v1585_v21, %v1418_v20  ;;  %v1584_v30 = vld [vmem:[%s2417_s2 + $0xc] sm:$0xf]  ;;  %v1443_v33 = vor.u32 %v1590_v27, %v1442_v26  ;;  %v1426_v36 = vld [vmem:[%s2417_s2 + $0x8] sm:$0xf]  ;;  %v1586_v37 = vld [vmem:[%s2417_s2 + $0x14] sm:$0xf0] }
  0xba   : > { %943 = vmatpush.bf16.msrb.mxu0 %v1499_v31  ;;  %v1428_v31 = vld [vmem:[%s2417_s2 + $0x18] sm:$0xf0]  ;;  %v1427_v38 = vor.u32 %v1586_v37, %v1426_v36  ;;  %v567_v47 = vld [vmem:[%s2419_s4] sm:$0xf] }
  0xbb   : > { %956 = vmatpush.bf16.msrb.mxu1 %v1503_v34  ;;  %968 = vmatpush.bf16.msrb.mxu2 %v1523_v39  ;;  %v501_v34 = vpack.c.bf16 %v500_v29, %v500_v29  ;;  %v1431_v35 = vor.u32 %v1584_v30, %v1428_v31  ;;  %v994_v48 = vperm.slane %v567_v47, 0  ;;  %v995_v50 = vperm.slane %v567_v47, 1 }
  0xbc   : > { %v997_v11 = vperm.slane %v567_v47, 3 }
  0xbd   : > { %982 = vmatpush.bf16.msrb.mxu3 %v1511_v40 }
  0xbe   : > { %944 = vmatpush.bf16.msrb.mxu0 %v1483_v43 }
  0xbf   : > { %957 = vmatpush.bf16.msrb.mxu1 %v1487_v46  ;;  %969 = vmatpush.bf16.msrb.mxu2 %v1507_v51 }
  0xc1   : > { %983 = vmatpush.bf16.msrb.mxu3 %v1495_v52 }
  0xc2   : > { %945 = vmatpush.bf16.msrb.mxu0 %v1467_v55 }
  0xc3   : > { %958 = vmatpush.bf16.msrb.mxu1 %v1471_v58  ;;  %970 = vmatpush.bf16.msrb.mxu2 %v1491_v63 }
  0xc5   : > { %984 = vmatpush.bf16.msrb.mxu3 %v1479_v1 }
  0xc6   : > { %946 = vmatpush.bf16.msrb.mxu0 %v1451_v4 }
  0xc7   : > { %959 = vmatpush.bf16.msrb.mxu1 %v1455_v7  ;;  %971 = vmatpush.bf16.msrb.mxu2 %v1475_v12 }
  0xc9   : > { %985 = vmatpush.bf16.msrb.mxu3 %v1463_v13 }
  0xca   : > { %947 = vmatpush.bf16.msrb.mxu0 %v1435_v16 }
  0xcb   : > { %960 = vmatpush.bf16.msrb.mxu1 %v1439_v19  ;;  %972 = vmatpush.bf16.msrb.mxu2 %v1459_v24  ;;  %v996_v19 = vperm.slane %v567_v47, 2 }
  0xcd   : > { %986 = vmatpush.bf16.msrb.mxu3 %v1447_v25 }
  0xce   : > { %948 = vmatpush.bf16.msrb.mxu0 %v1419_v28 }
  0xcf   : > { %961 = vmatpush.bf16.msrb.mxu1 %v1423_v32  ;;  %973 = vmatpush.bf16.msrb.mxu2 %v1443_v33 }
  0xd1   : > { %949 = vmatmul.bf16.vlgmr.msrb.gmra.mxu0 %v501_v34  ;;  %987 = vmatpush.bf16.msrb.mxu3 %v1431_v35 }
  0xd2   : > { %962 = vmatmul.bf16.vlgmr.msrb.gmra.mxu1 %v501_v34 }
  0xd3   : > { %974 = vmatpush.bf16.msrb.mxu2 %v1427_v38 }
  0xd4   : > { %988 = vmatmul.bf16.vlgmr.msrb.gmra.mxu3 %v501_v34 }
  0xd6   : > { %975 = vmatmul.bf16.vlgmr.msrb.gmra.mxu2 %v501_v34 }
 0x12e   : > { %v738_v39 = vpop.f32.mrf.mxu0 }
 0x12f   : > { %v751_v40 = vpop.f32.mrf.mxu1 }
 0x136   : > { %v740_v41 = vpop.f32.mrf.mxu0 }
 0x137   : > { %v753_v42 = vpop.f32.mrf.mxu1  ;;  %v777_v43 = vpop.f32.mrf.mxu3 }
 0x139   : > { %v764_v44 = vpop.f32.mrf.mxu2 }
 0x13f   : > { %v779_v45 = vpop.f32.mrf.mxu3 }
 0x141   : > { %v766_v46 = vpop.f32.mrf.mxu2 }
 0x14e   : > { %v950_v49 = vpop.f32.mrf.mxu0 }
 0x14f   : > { %v951_v51 = vadd.f32 %v950_v49, %v738_v39  ;;  %v963_v52 = vpop.f32.mrf.mxu1 }
 0x150   : > { %v964_v53 = vadd.f32 %v963_v52, %v751_v40 }
 0x151   : > { %v1002_v54 = vadd.f32 %v994_v48, %v951_v51 }
 0x152   : > { %v1003_v55 = vadd.f32 %v995_v50, %v964_v53 }
 0x153   : > { %v1544_v56 = vmul.f32 -1.442695, %v1002_v54 }
 0x154   : > { %v1545_v57 = vmul.f32 -1.442695, %v1003_v55 }
 0x155   : > { %1733 = vpow2.f32 %v1544_v56 }
 0x156   : > { %1735 = vpow2.f32 %v1545_v57  ;;  %v952_v58 = vpop.f32.mrf.mxu0 }
 0x157   : > { %v965_v59 = vpop.f32.mrf.mxu1  ;;  %v989_v60 = vpop.f32.mrf.mxu3 }
 0x158   : > { %v990_v13 = vadd.f32 %v989_v60, %v777_v43 }
 0x159   : > { %v976_v61 = vpop.f32.mrf.mxu2 }
 0x15a   : > { %v977_v18 = vadd.f32 %v976_v61, %v764_v44  ;;  %v1005_v21 = vadd.f32 %v997_v11, %v990_v13 }
 0x15b   : > { %v1734_v62 = vpop.eup %1733 }
 0x15c   : > { %v1736_v63 = vpop.eup %1735  ;;  %v1009_v1 = vadd.f32 1.0, %v1734_v62  ;;  %v1004_v27 = vadd.f32 %v996_v19, %v977_v18 }
 0x15d   : > { %v1028_v2 = vadd.f32 1.0, %v1736_v63 }
 0x15e   : > { %1737 = vrcp.f32 %v1009_v1  ;;  %v1021_v12 = vand.u32 2147483648, %v1009_v1  ;;  %v1019_v15 = vand.u32 2147483647, %v1009_v1  ;;  %vm1015_vm1 = vweird.f32 %v1009_v1 }
 0x15f   : > { %1739 = vrcp.f32 %v1028_v2  ;;  %v991_v3 = vpop.f32.mrf.mxu3  ;;  %v1040_v25 = vand.u32 2147483648, %v1028_v2  ;;  %vm1034_vm5 = vweird.f32 %v1028_v2  ;;  %v1038_v28 = vand.u32 2147483647, %v1028_v2 }
 0x160   : > { %v1022_v20 = vor.u32 1.1754944e-38, %v1021_v12  ;;  %vm1020_vm3 = vcmp.eq.f32.partialorder %v1019_v15, 8.507059e+37 }
 0x161   : > { %v978_v4 = vpop.f32.mrf.mxu2  ;;  %v1041_v31 = vor.u32 1.1754944e-38, %v1040_v25  ;;  %vm1039_vm7 = vcmp.eq.f32.partialorder %v1038_v28, 8.507059e+37 }
 0x164   : > { %v1738_v5 = vpop.eup %1737 }
 0x165   : > { %v1740_v6 = vpop.eup %1739  ;;  %v1011_v7 = vmul.f32 %v1738_v5, %v1009_v1  ;;  %vm1016_vm0 = vweird.f32 %v1738_v5 }
 0x166   : > { %v1030_v8 = vmul.f32 %v1740_v6, %v1028_v2  ;;  %vm1017_vm2 = vmor %vm1015_vm1, %vm1016_vm0  ;;  %vm1035_vm4 = vweird.f32 %v1740_v6 }
 0x167   : > { %v1012_v9 = vsub.f32 1.0, %v1011_v7  ;;  %vm1036_vm6 = vmor %vm1034_vm5, %vm1035_vm4 }
 0x168   : > { %v1031_v10 = vsub.f32 1.0, %v1030_v8 }
 0x169   : > { %v1013_v14 = vmul.f32 %v1738_v5, %v1012_v9 }
 0x16a   : > { %v1032_v16 = vmul.f32 %v1740_v6, %v1031_v10 }
 0x16b   : > { %v1014_v17 = vadd.f32 %v1738_v5, %v1013_v14 }
 0x16c   : > { %v1033_v24 = vadd.f32 %v1740_v6, %v1032_v16 }
 0x16d   : > { %v1018_v22 = vsel %vm1017_vm2, %v1738_v5, %v1014_v17 }
 0x16e   : > { %v1023_v23 = vsel %vm1020_vm3, %v1022_v20, %v1018_v22  ;;  %v1037_v30 = vsel %vm1036_vm6, %v1740_v6, %v1033_v24 }
 0x16f   : > { %v1044_v26 = vmul.f32 %v1023_v23, %v1005_v21  ;;  %v1042_v32 = vsel %vm1039_vm7, %v1041_v31, %v1037_v30 }
 0x170   : > { %v1047_v33 = vsub.f32 1.0, %v1042_v32  ;;  %v1049_v36 = vmul.f32 %v1042_v32, %v2179_v0 }
 0x171   : > { %v1045_v29 = vadd.f32 %v1044_v26, %v1004_v27 }
 0x173   : > { %1741 = vtanh.f32 %v1045_v29 }
 0x179   : > { %v1742_v34 = vpop.eup %1741 }
 0x17a   : > { %v1048_v35 = vmul.f32 %v1742_v34, %v1047_v33 }
 0x17c   : > { %v1050_v37 = vadd.f32 %v1049_v36, %v1048_v35 }
 0x17e   : > { %1051 = vst [vmem:[#allocation3] sm:$0xff] %v1050_v37 }
 0x17f   : > { %1052 = vst [vmem:[%s2423_s8] sm:$0xff] %v1050_v37 }
 0x180 PF: > { %v1654_v38 = vld [vmem:[%s1943_s24 + $0x38] sm:$0xff]  ;;  %v1653_v39 = vld [vmem:[%s1943_s24 + $0x30] sm:$0xff]  ;;  %v1652_v0 = vld [vmem:[%s1943_s24 + $0x28] sm:$0xff]  ;;  %s2431_s22 = scalar_lea.vmem %s2421_s6, %s1927_s26  ;;  %v1137_v51 = vlaneseq }
 0x181   : > { %1123 = vmatpush.bf16.msra.mxu0 %v1654_v38  ;;  %v1651_v40 = vld [vmem:[%s1943_s24 + $0x20] sm:$0xff]  ;;  %v1650_v41 = vld [vmem:[%s1943_s24 + $0x18] sm:$0xff]  ;;  %v1649_v42 = vld [vmem:[%s1943_s24 + $0x10] sm:$0xff] }
 0x182   : > { %v1648_v43 = vld [vmem:[%s1943_s24 + $0x8] sm:$0xff]  ;;  %v1647_v44 = vld [vmem:[%s1943_s24] sm:$0xff]  ;;  %v1138_v52 = vand.u32 127, %v1137_v51  ;;  %s1578_s24 = sshll.u32 %s1782_s29, 7 }
 0x183   : > { %v1743_v47 = vld [vmem:[%s2431_s22] ss:$0 sm:$0xff]  ;;  %v1148_v59 = vstv %s1578_s24 }
 0x184   : > { %v1139_v53 = vcvt.s32.f32 %v1138_v52 }
 0x185   : > { %1124 = vmatpush.bf16.msra.mxu0 %v1653_v39  ;;  %v1053_v45 = vld [vmem:[#allocation3] sm:$0xff] }
 0x186   : > { %v1054_v46 = vpack.c.bf16 %v1053_v45, %v1053_v45 }
 0x189   : > { %1125 = vmatpush.bf16.msra.mxu0 %v1652_v0 }
 0x18d   : > { %1126 = vmatpush.bf16.msra.mxu0 %v1651_v40 }
 0x191   : > { %1127 = vmatpush.bf16.msra.mxu0 %v1650_v41 }
 0x195   : > { %1128 = vmatpush.bf16.msra.mxu0 %v1649_v42 }
 0x199   : > { %1129 = vmatpush.bf16.msra.mxu0 %v1648_v43 }
 0x19d   : > { %1130 = vmatpush.bf16.msra.mxu0 %v1647_v44 }
 0x1a0   : > { %1131 = vmatmul.bf16.vlgmr.msra.gmra.mxu0 %v1054_v46 }
 0x21d   : > { %v1132_v48 = vpop.f32.mrf.mxu0 }
 0x21e   : > { %v1133_v49 = vadd.f32 %v1743_v47, %v1132_v48 }
 0x220   : > { %1136 = vst [vmem:[%s1941_s23] sm:$0xff] %v1133_v49  ;;  %1140 = vmax.xlane.f32.xlu0 %v1133_v49 }
 0x225   : > { %v1134_v50 = vpop.f32.mrf.mxu0 }
 0x293   : > { %v1141_v54 = vpop.xlane.xlu0 %1140 }
 0x294   : > { %vm1142_vm8 = vcmp.eq.f32.partialorder %v1133_v49, %v1141_v54 }
 0x295   : > { %v1143_v55 = vsel %vm1142_vm8, %v1139_v53, 128.0 }
 0x296   : > { %1144 = vmin.xlane.f32.xlu0 %v1143_v55 }
 0x309   : > { %v1145_v56 = vpop.xlane.xlu0 %1144 }
 0x30a   : > { %vm1671_vm9 = vcmp.lt.s32.totalorder %v1145_v56, 0  ;;  %v1672_v57 = vceil.f32 %v1145_v56  ;;  %v1673_v58 = vfloor.f32 %v1145_v56 }
 0x30b   : > { %1152 = sbr.rel (%p1287_p3) target bundleno = 787 (0x313), region = 105 }
 0x30c   : > { %v1674_v60 = vsel %vm1671_vm9, %v1672_v57, %v1673_v58 }
 0x30d   : > { %v1675_v61 = vcvt.f32.s32 %v1674_v60 }
 0x30f   : > { %v1149_v62 = vadd.s32 %v1675_v61, %v1148_v59 }
 0x310   : > { %vm1153_vm10 = vcmask 7168  }
 0x311   : > { %1154 = vst.msk [vmem:[#allocation4] sm:$0xff] %vm1153_vm10, %v1141_v54 }
 0x312   : > { %1155 = vst.msk [vmem:[#allocation5] sm:$0xff] %vm1153_vm10, %v1149_v62 }
 0x313 PF: > { %p1580_p4 = scmp.le.s32.totalorder %s1782_s29, 0 }
 0x315   : > { %1159 = sbr.rel (%p1580_p4) target bundleno = 799 (0x31f), region = 109 }
 0x31a   : > { %v1160_v63 = vld [vmem:[#allocation4] sm:$0xff]  ;;  %vm1163_vm11 = vcmask 7168   ;;  %v1165_v1 = vld [vmem:[#allocation5] sm:$0xff] }
 0x31b   : > { %vm1161_vm12 = vcmp.gt.f32.partialorder %v1141_v54, %v1160_v63 }
 0x31c   : > { %v1162_v2 = vsel %vm1161_vm12, %v1141_v54, %v1160_v63  ;;  %v1166_v3 = vsel %vm1161_vm12, %v1149_v62, %v1165_v1 }
 0x31d   : > { %1164 = vst.msk [vmem:[#allocation4] sm:$0xff] %vm1163_vm11, %v1162_v2 }
 0x31e   : > { %1167 = vst.msk [vmem:[#allocation5] sm:$0xff] %vm1163_vm11, %v1166_v3 }
 0x31f PF: > { %s19_s11 = sadd.s32 1, %s1798_s11   ;;  %s2432_s26 = sld [smem:[#allocation7_spill]] }
 0x320   : > { %p16_p5 = scmp.ge.s32.totalorder %s19_s11, 14   ;;  %s2433_s27 = smov %s1778_s28 }
 0x321   : > { %s2434_s28 = smov %s1894_s16  ;;  %s2435_s29 = smov %s1790_s9 }
 0x322   : > { %s2436_s30 = smov %s1794_s10  ;;  %s2437_s9 = smov %s2440_s12 }
 0x323   :  { %18 = sbr.rel (!%p16_p5) target bundleno = 8 (0x8), region = 163 }
 0x325   : > { %s2438_s10 = smov %s2432_s26 }

// kernel: seq2seq_greedy_forward.2
= control target key start
LH: loop header
LB: loop body
LE: loop exit
PB: predicated region body
PF: predicated region fallthrough
CT: control target
= control target key end

     0   :  { %s2640_s15 = smov 0   ;;  %s2642_s16 = smov 0   ;;  %s3593_s0 = inlined_call_operand.vmem [shape: bf16[2,16,8,128], index: 0, kind: input, shape index: {}]   ;;  %s3594_s1 = inlined_call_operand.vmem [shape: bf16[2,128,512], index: 1, kind: input, shape index: {}]   ;;  %s3595_s2 = inlined_call_operand.vmem [shape: bf16[2,128,512], index: 2, kind: input, shape index: {}]   ;;  %s3596_s3 = inlined_call_operand.vmem [shape: f32[2,1,512], index: 3, kind: input, shape index: {}]   ;;  %s3597_s4 = inlined_call_operand.vmem [shape: f32[2,8,128], index: 4, kind: output, shape index: {}]  }
   0x1   :  { %s2644_s17 = smov 0   ;;  %s2646_s18 = smov 0  }
   0x2   :  { %s2648_s19 = smov 0  }
   0x3 LB: > { %s23_s20 = sadd.s32 1, %s2604_s17  ;;  %s26_s21 = sadd.s32 1, %s2608_s18  ;;  %s2612_s19 = sphi %s2648_s19, %s14_s19   ;;  %s2608_s18 = sphi %s2646_s18, %s3868_s18   ;;  %s2604_s17 = sphi %s2644_s17, %s3867_s17   ;;  %s2600_s16 = sphi %s2642_s16, %s3866_s16   ;;  %s2596_s15 = sphi %s2640_s15, %s3865_s15  }
   0x4   : > { %p24_p0 = scmp.ge.s32.totalorder %s23_s20, 2  ;;  %p2093_p1 = scmp.ge.s32.totalorder %s2612_s19, 1 }
   0x5   : > { %p210_p2 = scmp.lt.s32.totalorder %s2612_s19, 5 }
   0x6   : > { %s3870_s20 = smov (%p24_p0, %s23_s20), 0  ;;  %s3872_s21 = smov (!%p24_p0, %s26_s21), %s2608_s18 }
   0x7   : > { %p211_p3 = pnand %p2093_p1, %p210_p2  ;;  %p28_p4 = scmp.ge.s32.totalorder %s3872_s21, 2 }
   0x9   : > { %s3874_s21 = smov (%p28_p4, %s3872_s21), 0  ;;  %214 = sbr.rel (%p211_p3) target bundleno = 1623 (0x657), region = 36 }
   0xe   : > { %s2673_s22 = sshll.u32 %s2596_s15, 3  ;;  %p254_p5 = scmp.lt.s32.totalorder %s2600_s16, 1 }
   0xf   : > { %p256_p6 = scmp.lt.s32.totalorder %s2673_s22, 15  ;;  %p2103_p7 = scmp.ne.s32.totalorder %s2596_s15, 0 }
  0x10   : > { %s3876_s16 = smov (!%p254_p5, %s2600_s16), 1 }
  0x11   : > { %s257_s23 = scalar_select %p256_p6, %s2673_s22, 15 }
  0x12   : > { %s2095_s24 = sshll.u32 %s3876_s16, 4  ;;  %s2387_s25 = sshll.u32 %s3876_s16, 8 }
  0x13   : > { %s259_s26 = sadd.s32 %s2095_s24, %s257_s23  ;;  %s2680_s29 = scalar_lea.vmem %s3594_s1, %s2387_s25 }
  0x14   : > { %s2096_s30 = sshll.u32 %s259_s26, 2  ;;  %s2685_s7 = scalar_lea.vmem %s3595_s2, %s2387_s25 }
  0x15   : > { %s2690_s10 = scalar_lea.vmem %s3593_s0, %s2096_s30  ;;  %s2101_s11 = sshll.u32 %s3876_s16, 2 }
  0x16   : > { %s2695_s14 = scalar_lea.vmem %s3596_s3, %s2101_s11  ;;  %s2102_s23 = sshll.u32 %s3876_s16, 3 }
  0x17   : > { %s2700_s26 = scalar_lea.vmem %s3597_s4, %s2102_s23  ;;  %284 = sbr.rel (%p2103_p7) target bundleno = 30 (0x1e), region = 40 }
  0x1c   : > { %v2614_v0 = vmov 0.0  }
  0x1d   : > { %285 = vst [vmem:[#allocation2] sm:$0xff] %v2614_v0 }
  0x1e PF: > { %v2218_v1 = vld [vmem:[%s2685_s7 + $0xe0] sm:$0xf]  ;;  %v2451_v2 = vld [vmem:[%s2685_s7 + $0xec] sm:$0xf0]  ;;  %v2449_v3 = vld [vmem:[%s2685_s7 + $0xe4] sm:$0xf] }
  0x1f   : > { %v2706_v4 = vor.u32 %v2451_v2, %v2218_v1  ;;  %v2220_v5 = vld [vmem:[%s2685_s7 + $0xf0] sm:$0xf0]  ;;  %v2202_v6 = vld [vmem:[%s2685_s7 + $0xc0] sm:$0xf]  ;;  %v2447_v7 = vld [vmem:[%s2685_s7 + $0xcc] sm:$0xf0] }
  0x20   : > { %v2711_v8 = vor.u32 %v2449_v3, %v2220_v5  ;;  %v2445_v9 = vld [vmem:[%s2685_s7 + $0xc4] sm:$0xf]  ;;  %v2204_v10 = vld [vmem:[%s2685_s7 + $0xd0] sm:$0xf0]  ;;  %v2450_v11 = vld [vmem:[%s2685_s7 + $0xec] sm:$0xf]  ;;  %v2717_v12 = vor.u32 %v2447_v7, %v2202_v6 }
  0x21   : > { %514 = vmatpush.bf16.msra.mxu0 %v2706_v4  ;;  %v2228_v13 = vld [vmem:[%s2685_s7 + $0xf8] sm:$0xf0]  ;;  %v2186_v14 = vld [vmem:[%s2685_s7 + $0xa0] sm:$0xf]  ;;  %v2443_v15 = vld [vmem:[%s2685_s7 + $0xac] sm:$0xf0]  ;;  %v2723_v16 = vor.u32 %v2445_v9, %v2204_v10 }
  0x22   : > { %527 = vmatpush.bf16.msra.mxu1 %v2711_v8  ;;  %v2725_v17 = vor.u32 %v2450_v11, %v2228_v13  ;;  %v2441_v18 = vld [vmem:[%s2685_s7 + $0xa4] sm:$0xf]  ;;  %v2188_v19 = vld [vmem:[%s2685_s7 + $0xb0] sm:$0xf0]  ;;  %v2226_v20 = vld [vmem:[%s2685_s7 + $0xe8] sm:$0xf]  ;;  %v2739_v26 = vor.u32 %v2443_v15, %v2186_v14 }
  0x23   : > { %v2452_v21 = vld [vmem:[%s2685_s7 + $0xf4] sm:$0xf0]  ;;  %v2446_v22 = vld [vmem:[%s2685_s7 + $0xcc] sm:$0xf]  ;;  %v2212_v23 = vld [vmem:[%s2685_s7 + $0xd8] sm:$0xf0]  ;;  %v2745_v30 = vor.u32 %v2441_v18, %v2188_v19 }
  0x24   : > { %553 = vmatpush.bf16.msra.mxu3 %v2725_v17  ;;  %v2734_v24 = vor.u32 %v2452_v21, %v2226_v20  ;;  %v2736_v25 = vor.u32 %v2446_v22, %v2212_v23  ;;  %v2170_v27 = vld [vmem:[%s2685_s7 + $0x80] sm:$0xf]  ;;  %v2210_v28 = vld [vmem:[%s2685_s7 + $0xc8] sm:$0xf]  ;;  %v2448_v29 = vld [vmem:[%s2685_s7 + $0xd4] sm:$0xf0] }
  0x25   : > { %515 = vmatpush.bf16.msra.mxu0 %v2717_v12  ;;  %v2439_v31 = vld [vmem:[%s2685_s7 + $0x8c] sm:$0xf0]  ;;  %v2749_v32 = vor.u32 %v2448_v29, %v2210_v28  ;;  %v2442_v33 = vld [vmem:[%s2685_s7 + $0xac] sm:$0xf]  ;;  %v2196_v34 = vld [vmem:[%s2685_s7 + $0xb8] sm:$0xf0] }
  0x26   : > { %528 = vmatpush.bf16.msra.mxu1 %v2723_v16  ;;  %540 = vmatpush.bf16.msra.mxu2 %v2734_v24  ;;  %v2437_v35 = vld [vmem:[%s2685_s7 + $0x84] sm:$0xf]  ;;  %v2172_v36 = vld [vmem:[%s2685_s7 + $0x90] sm:$0xf0]  ;;  %v2756_v37 = vor.u32 %v2442_v33, %v2196_v34  ;;  %v2194_v38 = vld [vmem:[%s2685_s7 + $0xa8] sm:$0xf]  ;;  %v2761_v40 = vor.u32 %v2439_v31, %v2170_v27 }
  0x27   : > { %v2444_v39 = vld [vmem:[%s2685_s7 + $0xb4] sm:$0xf0]  ;;  %v2438_v41 = vld [vmem:[%s2685_s7 + $0x8c] sm:$0xf]  ;;  %v2180_v42 = vld [vmem:[%s2685_s7 + $0x98] sm:$0xf0]  ;;  %v2766_v43 = vor.u32 %v2437_v35, %v2172_v36 }
  0x28   : > { %554 = vmatpush.bf16.msra.mxu3 %v2736_v25  ;;  %v2154_v44 = vld [vmem:[%s2685_s7 + $0x60] sm:$0xf]  ;;  %v2435_v45 = vld [vmem:[%s2685_s7 + $0x6c] sm:$0xf0]  ;;  %v2433_v46 = vld [vmem:[%s2685_s7 + $0x64] sm:$0xf]  ;;  %v2772_v47 = vor.u32 %v2444_v39, %v2194_v38  ;;  %v2778_v51 = vor.u32 %v2438_v41, %v2180_v42 }
  0x29   : > { %516 = vmatpush.bf16.msra.mxu0 %v2739_v26  ;;  %v2156_v48 = vld [vmem:[%s2685_s7 + $0x70] sm:$0xf0]  ;;  %v2178_v49 = vld [vmem:[%s2685_s7 + $0x88] sm:$0xf]  ;;  %v2440_v50 = vld [vmem:[%s2685_s7 + $0x94] sm:$0xf0]  ;;  %v2781_v52 = vor.u32 %v2435_v45, %v2154_v44 }
  0x2a   : > { %529 = vmatpush.bf16.msra.mxu1 %v2745_v30  ;;  %541 = vmatpush.bf16.msra.mxu2 %v2749_v32  ;;  %v2434_v53 = vld [vmem:[%s2685_s7 + $0x6c] sm:$0xf]  ;;  %v2164_v54 = vld [vmem:[%s2685_s7 + $0x78] sm:$0xf0]  ;;  %v2786_v55 = vor.u32 %v2433_v46, %v2156_v48  ;;  %v2138_v56 = vld [vmem:[%s2685_s7 + $0x40] sm:$0xf]  ;;  %v2792_v59 = vor.u32 %v2440_v50, %v2178_v49 }
  0x2b   : > { %v2431_v57 = vld [vmem:[%s2685_s7 + $0x4c] sm:$0xf0]  ;;  %v2429_v58 = vld [vmem:[%s2685_s7 + $0x44] sm:$0xf]  ;;  %v2140_v60 = vld [vmem:[%s2685_s7 + $0x50] sm:$0xf0]  ;;  %v2798_v63 = vor.u32 %v2434_v53, %v2164_v54 }
  0x2c   : > { %555 = vmatpush.bf16.msra.mxu3 %v2756_v37  ;;  %v2162_v61 = vld [vmem:[%s2685_s7 + $0x68] sm:$0xf]  ;;  %v2436_v62 = vld [vmem:[%s2685_s7 + $0x74] sm:$0xf0]  ;;  %v2801_v0 = vor.u32 %v2431_v57, %v2138_v56  ;;  %v2430_v1 = vld [vmem:[%s2685_s7 + $0x4c] sm:$0xf]  ;;  %v2806_v3 = vor.u32 %v2429_v58, %v2140_v60 }
  0x2d   : > { %517 = vmatpush.bf16.msra.mxu0 %v2761_v40  ;;  %v2148_v2 = vld [vmem:[%s2685_s7 + $0x58] sm:$0xf0]  ;;  %v2122_v5 = vld [vmem:[%s2685_s7 + $0x20] sm:$0xf]  ;;  %v2427_v6 = vld [vmem:[%s2685_s7 + $0x2c] sm:$0xf0]  ;;  %v2812_v9 = vor.u32 %v2436_v62, %v2162_v61 }
  0x2e   : > { %530 = vmatpush.bf16.msra.mxu1 %v2766_v43  ;;  %542 = vmatpush.bf16.msra.mxu2 %v2772_v47  ;;  %v2425_v7 = vld [vmem:[%s2685_s7 + $0x24] sm:$0xf]  ;;  %v2124_v10 = vld [vmem:[%s2685_s7 + $0x30] sm:$0xf0]  ;;  %v2146_v11 = vld [vmem:[%s2685_s7 + $0x48] sm:$0xf]  ;;  %v2818_v14 = vor.u32 %v2430_v1, %v2148_v2  ;;  %v2821_v15 = vor.u32 %v2427_v6, %v2122_v5 }
  0x2f   : > { %v2432_v13 = vld [vmem:[%s2685_s7 + $0x54] sm:$0xf0]  ;;  %v2106_v18 = vld [vmem:[%s2685_s7] sm:$0xf]  ;;  %v2426_v19 = vld [vmem:[%s2685_s7 + $0x2c] sm:$0xf]  ;;  %v2827_v21 = vor.u32 %v2425_v7, %v2124_v10 }
  0x30   : > { %556 = vmatpush.bf16.msra.mxu3 %v2778_v51  ;;  %v2132_v20 = vld [vmem:[%s2685_s7 + $0x38] sm:$0xf0]  ;;  %v2423_v22 = vld [vmem:[%s2685_s7 + $0xc] sm:$0xf0]  ;;  %v2421_v23 = vld [vmem:[%s2685_s7 + $0x4] sm:$0xf]  ;;  %v2833_v28 = vor.u32 %v2432_v13, %v2146_v11 }
  0x31   : > { %518 = vmatpush.bf16.msra.mxu0 %v2781_v52  ;;  %v2108_v27 = vld [vmem:[%s2685_s7 + $0x10] sm:$0xf0]  ;;  %v2346_v29 = vld [vmem:[%s2680_s29 + $0xe0] sm:$0xf]  ;;  %v2419_v31 = vld [vmem:[%s2680_s29 + $0xec] sm:$0xf0]  ;;  %v2840_v35 = vor.u32 %v2426_v19, %v2132_v20  ;;  %v2845_v39 = vor.u32 %v2423_v22, %v2106_v18 }
  0x32   : > { %531 = vmatpush.bf16.msra.mxu1 %v2786_v55  ;;  %543 = vmatpush.bf16.msra.mxu2 %v2792_v59  ;;  %v2417_v33 = vld [vmem:[%s2680_s29 + $0xe4] sm:$0xf]  ;;  %v2348_v34 = vld [vmem:[%s2680_s29 + $0xf0] sm:$0xf0]  ;;  %v2130_v36 = vld [vmem:[%s2685_s7 + $0x28] sm:$0xf]  ;;  %v2852_v45 = vor.u32 %v2421_v23, %v2108_v27  ;;  %v2855_v46 = vor.u32 %v2419_v31, %v2346_v29 }
  0x33   : > { %v2428_v38 = vld [vmem:[%s2685_s7 + $0x34] sm:$0xf0]  ;;  %v2422_v41 = vld [vmem:[%s2685_s7 + $0xc] sm:$0xf]  ;;  %v2116_v42 = vld [vmem:[%s2685_s7 + $0x18] sm:$0xf0]  ;;  %v2859_v50 = vor.u32 %v2417_v33, %v2348_v34 }
  0x34   : > { %557 = vmatpush.bf16.msra.mxu3 %v2798_v63  ;;  %v2849_v44 = vld [vmem:[#allocation2] sm:$0xff]  ;;  %v2418_v48 = vld [vmem:[%s2680_s29 + $0xec] sm:$0xf]  ;;  %v2356_v49 = vld [vmem:[%s2680_s29 + $0xf8] sm:$0xf0]  ;;  %v2861_v53 = vor.u32 %v2428_v38, %v2130_v36  ;;  %v2868_v60 = vor.u32 %v2422_v41, %v2116_v42  ;;  %p837_p8 = scmp.lt.s32.totalorder %s2673_s22, 12 }
  0x35   : > { %519 = vmatpush.bf16.msra.mxu0 %v2801_v0  ;;  %3658 = vst [vmem:[#allocation3_spill] sm:$0xff] %v2849_v44  ;;  %v2330_v54 = vld [vmem:[%s2680_s29 + $0xc0] sm:$0xf]  ;;  %v2415_v56 = vld [vmem:[%s2680_s29 + $0xcc] sm:$0xf0]  ;;  %v353_v61 = vpack.c.bf16 %v2849_v44, %v2849_v44  ;;  %v2875_v2 = vor.u32 %v2418_v48, %v2356_v49  ;;  %s998_s25 = sadd.s32 1, %s2673_s22 }
  0x36   : > { %532 = vmatpush.bf16.msra.mxu1 %v2806_v3  ;;  %544 = vmatpush.bf16.msra.mxu2 %v2812_v9  ;;  %v2413_v57 = vld [vmem:[%s2680_s29 + $0xc4] sm:$0xf]  ;;  %v2332_v58 = vld [vmem:[%s2680_s29 + $0xd0] sm:$0xf0]  ;;  %v2114_v62 = vld [vmem:[%s2685_s7 + $0x8] sm:$0xf]  ;;  %v2881_v7 = vor.u32 %v2415_v56, %v2330_v54 }
  0x37   : > { %v2424_v1 = vld [vmem:[%s2685_s7 + $0x14] sm:$0xf0]  ;;  %v2354_v5 = vld [vmem:[%s2680_s29 + $0xe8] sm:$0xf]  ;;  %v2414_v10 = vld [vmem:[%s2680_s29 + $0xcc] sm:$0xf]  ;;  %v2887_v13 = vor.u32 %v2413_v57, %v2332_v58 }
  0x38   : > { %558 = vmatpush.bf16.msra.mxu3 %v2818_v14  ;;  %v2420_v6 = vld [vmem:[%s2680_s29 + $0xf4] sm:$0xf0]  ;;  %v2340_v11 = vld [vmem:[%s2680_s29 + $0xd8] sm:$0xf0]  ;;  %v2889_v18 = vor.u32 %v2424_v1, %v2114_v62  ;;  %v2314_v19 = vld [vmem:[%s2680_s29 + $0xa0] sm:$0xf] }
  0x39   : > { %520 = vmatpush.bf16.msra.mxu0 %v2821_v15  ;;  %3659 = vst [vmem:[#allocation4_spill] sm:$0xff] %v2887_v13  ;;  %v2411_v20 = vld [vmem:[%s2680_s29 + $0xac] sm:$0xf0]  ;;  %v2409_v22 = vld [vmem:[%s2680_s29 + $0xa4] sm:$0xf]  ;;  %v2896_v27 = vor.u32 %v2420_v6, %v2354_v5  ;;  %v2899_v29 = vor.u32 %v2414_v10, %v2340_v11  ;;  %p999_p9 = scmp.lt.s32.totalorder %s998_s25, 12 }
  0x3a   : > { %533 = vmatpush.bf16.msra.mxu1 %v2827_v21  ;;  %545 = vmatpush.bf16.msra.mxu2 %v2833_v28  ;;  %v2316_v23 = vld [vmem:[%s2680_s29 + $0xb0] sm:$0xf0]  ;;  %v2338_v31 = vld [vmem:[%s2680_s29 + $0xc8] sm:$0xf]  ;;  %v2416_v33 = vld [vmem:[%s2680_s29 + $0xd4] sm:$0xf0]  ;;  %v2904_v34 = vor.u32 %v2411_v20, %v2314_v19 }
  0x3b   : > { %3660 = vst [vmem:[#allocation5_spill] sm:$0xff] %v2899_v29  ;;  %v2410_v36 = vld [vmem:[%s2680_s29 + $0xac] sm:$0xf]  ;;  %v2324_v38 = vld [vmem:[%s2680_s29 + $0xb8] sm:$0xf0]  ;;  %v2910_v41 = vor.u32 %v2409_v22, %v2316_v23  ;;  %v2917_v56 = vor.u32 %v2416_v33, %v2338_v31  ;;  %s1322_s5 = sadd.s32 3, %s2673_s22 }
  0x3c   : > { %559 = vmatpush.bf16.msra.mxu3 %v2840_v35  ;;  %3661 = vst [vmem:[#allocation6_spill] sm:$0xff] %v2904_v34  ;;  %v2298_v42 = vld [vmem:[%s2680_s29 + $0x80] sm:$0xf]  ;;  %v2407_v48 = vld [vmem:[%s2680_s29 + $0x8c] sm:$0xf0]  ;;  %v2920_v57 = vor.u32 %v2410_v36, %v2324_v38  ;;  %p1323_p11 = scmp.lt.s32.totalorder %s1322_s5, 12 }
  0x3d   : > { %521 = vmatpush.bf16.msra.mxu0 %v2845_v39  ;;  %3662 = vst [vmem:[#allocation7_spill] sm:$0xff] %v2910_v41  ;;  %v2405_v49 = vld [vmem:[%s2680_s29 + $0x84] sm:$0xf]  ;;  %v2300_v54 = vld [vmem:[%s2680_s29 + $0x90] sm:$0xf0]  ;;  %v2925_v1 = vor.u32 %v2407_v48, %v2298_v42  ;;  %s1484_s7 = sadd.s32 4, %s2673_s22 }
  0x3e   : > { %534 = vmatpush.bf16.msra.mxu1 %v2852_v45  ;;  %546 = vmatpush.bf16.msra.mxu2 %v2861_v53  ;;  %3663 = vst [vmem:[#allocation8_spill] sm:$0xff] %v2917_v56  ;;  %v2322_v58 = vld [vmem:[%s2680_s29 + $0xa8] sm:$0xf]  ;;  %v2412_v62 = vld [vmem:[%s2680_s29 + $0xb4] sm:$0xf0]  ;;  %v2930_v10 = vor.u32 %v2405_v49, %v2300_v54  ;;  %p1485_p12 = scmp.lt.s32.totalorder %s1484_s7, 12 }
  0x3f   : > { %3664 = vst [vmem:[#allocation9_spill] sm:$0xff] %v2920_v57  ;;  %v2406_v5 = vld [vmem:[%s2680_s29 + $0x8c] sm:$0xf]  ;;  %v2308_v6 = vld [vmem:[%s2680_s29 + $0x98] sm:$0xf0]  ;;  %v2937_v23 = vor.u32 %v2412_v62, %v2322_v58  ;;  %s1646_s9 = sadd.s32 5, %s2673_s22 }
  0x40   : > { %560 = vmatpush.bf16.msra.mxu3 %v2868_v60  ;;  %522 = vmatmul.bf16.vlgmr.msra.gmra.mxu0 %v353_v61  ;;  %3665 = vst [vmem:[#allocation10_spill] sm:$0xff] %v2925_v1  ;;  %v2282_v11 = vld [vmem:[%s2680_s29 + $0x60] sm:$0xf]  ;;  %v2403_v19 = vld [vmem:[%s2680_s29 + $0x6c] sm:$0xf0]  ;;  %p1647_p13 = scmp.lt.s32.totalorder %s1646_s9, 12 }
  0x41   : > { %726 = vmatpush.bf16.msrb.mxu0 %v2855_v46  ;;  %535 = vmatmul.bf16.vlgmr.msra.gmra.mxu1 %v353_v61  ;;  %3666 = vst [vmem:[#allocation11_spill] sm:$0xff] %v2930_v10  ;;  %v2401_v20 = vld [vmem:[%s2680_s29 + $0x64] sm:$0xf]  ;;  %v2284_v22 = vld [vmem:[%s2680_s29 + $0x70] sm:$0xf0]  ;;  %v2945_v36 = vor.u32 %v2403_v19, %v2282_v11  ;;  %s1808_s12 = sadd.s32 6, %s2673_s22 }
  0x42   : > { %739 = vmatpush.bf16.msrb.mxu1 %v2859_v50  ;;  %547 = vmatpush.bf16.msra.mxu2 %v2889_v18  ;;  %3667 = vst [vmem:[#allocation12_spill] sm:$0xff] %v2937_v23  ;;  %v2306_v31 = vld [vmem:[%s2680_s29 + $0x88] sm:$0xf]  ;;  %v2408_v33 = vld [vmem:[%s2680_s29 + $0x94] sm:$0xf0]  ;;  %v2950_v48 = vor.u32 %v2401_v20, %v2284_v22  ;;  %p1809_p0 = scmp.lt.s32.totalorder %s1808_s12, 12 }
  0x43   : > { %561 = vmatmul.bf16.vlgmr.msra.gmra.mxu3 %v353_v61  ;;  %3669 = vst [vmem:[#allocation14_spill] sm:$0xff] %v2945_v36  ;;  %v2402_v38 = vld [vmem:[%s2680_s29 + $0x6c] sm:$0xf]  ;;  %v2292_v42 = vld [vmem:[%s2680_s29 + $0x78] sm:$0xf0]  ;;  %p2384_p2 = scmp.ne.s32.totalorder %s2596_s15, 1 }
  0x44   : > { %765 = vmatpush.bf16.msrb.mxu3 %v2875_v2  ;;  %3670 = vst [vmem:[#allocation15_spill] sm:$0xff] %v2950_v48  ;;  %v2266_v49 = vld [vmem:[%s2680_s29 + $0x40] sm:$0xf]  ;;  %v2399_v54 = vld [vmem:[%s2680_s29 + $0x4c] sm:$0xf0] }
  0x45   : > { %727 = vmatpush.bf16.msrb.mxu0 %v2881_v7  ;;  %548 = vmatmul.bf16.vlgmr.msra.gmra.mxu2 %v353_v61  ;;  %v2940_v61 = vor.u32 %v2406_v5, %v2308_v6  ;;  %v2397_v58 = vld [vmem:[%s2680_s29 + $0x44] sm:$0xf]  ;;  %v2268_v62 = vld [vmem:[%s2680_s29 + $0x50] sm:$0xf0]  ;;  %v2957_v5 = vor.u32 %v2408_v33, %v2306_v31  ;;  %v2960_v6 = vor.u32 %v2402_v38, %v2292_v42  ;;  %v2290_v11 = vld [vmem:[%s2680_s29 + $0x68] sm:$0xf] }
  0x46   : > { %740 = vmatpush.bf16.msrb.mxu1 %v2887_v13  ;;  %752 = vmatpush.bf16.msrb.mxu2 %v2896_v27  ;;  %v2404_v19 = vld [vmem:[%s2680_s29 + $0x74] sm:$0xf0]  ;;  %v2965_v20 = vor.u32 %v2399_v54, %v2266_v49  ;;  %v2398_v22 = vld [vmem:[%s2680_s29 + $0x4c] sm:$0xf]  ;;  %v2276_v44 = vld [vmem:[%s2680_s29 + $0x58] sm:$0xf0]  ;;  %v2970_v31 = vor.u32 %v2397_v58, %v2268_v62 }
  0x47   : > { %3668 = vst [vmem:[#allocation13_spill] sm:$0xff] %v2940_v61  ;;  %v2250_v33 = vld [vmem:[%s2680_s29 + $0x20] sm:$0xf]  ;;  %v2395_v38 = vld [vmem:[%s2680_s29 + $0x2c] sm:$0xf0]  ;;  %v2977_v49 = vor.u32 %v2404_v19, %v2290_v11  ;;  %v2980_v54 = vor.u32 %v2398_v22, %v2276_v44 }
  0x48   : > { %766 = vmatpush.bf16.msrb.mxu3 %v2899_v29  ;;  %3671 = vst [vmem:[#allocation16_spill] sm:$0xff] %v2957_v5  ;;  %v2393_v42 = vld [vmem:[%s2680_s29 + $0x24] sm:$0xf]  ;;  %v2400_v58 = vld [vmem:[%s2680_s29 + $0x54] sm:$0xf0]  ;;  %v2985_v62 = vor.u32 %v2395_v38, %v2250_v33 }
  0x49   : > { %728 = vmatpush.bf16.msrb.mxu0 %v2904_v34  ;;  %3672 = vst [vmem:[#allocation17_spill] sm:$0xff] %v2960_v6  ;;  %v2234_v19 = vld [vmem:[%s2680_s29] sm:$0xf]  ;;  %v2389_v44 = vld [vmem:[%s2680_s29 + $0x4] sm:$0xf] }
  0x4a   : > { %741 = vmatpush.bf16.msrb.mxu1 %v2910_v41  ;;  %753 = vmatpush.bf16.msrb.mxu2 %v2917_v56  ;;  %3673 = vst [vmem:[#allocation18_spill] sm:$0xff] %v2965_v20  ;;  %v2236_v22 = vld [vmem:[%s2680_s29 + $0x10] sm:$0xf0]  ;;  %v2258_v38 = vld [vmem:[%s2680_s29 + $0x28] sm:$0xf] }
  0x4b   : > { %3674 = vst [vmem:[#allocation19_spill] sm:$0xff] %v2970_v31  ;;  %s838_s16 = scalar_select %p837_p8, 1, 0 }
  0x4c   : > { %767 = vmatpush.bf16.msrb.mxu3 %v2920_v57  ;;  %3675 = vst [vmem:[#allocation20_spill] sm:$0xff] %v2977_v49  ;;  %s1000_s28 = scalar_select %p999_p9, 1, 0 }
  0x4d   : > { %729 = vmatpush.bf16.msrb.mxu0 %v2925_v1  ;;  %3676 = vst [vmem:[#allocation21_spill] sm:$0xff] %v2980_v54  ;;  %s1324_s6 = scalar_select %p1323_p11, 1, 0 }
  0x4e   : > { %742 = vmatpush.bf16.msrb.mxu1 %v2930_v10  ;;  %754 = vmatpush.bf16.msrb.mxu2 %v2937_v23  ;;  %3677 = vst [vmem:[#allocation22_spill] sm:$0xff] %v2985_v62  ;;  %s1486_s8 = scalar_select %p1485_p12, 1, 0 }
  0x4f   : > { %s1648_s11 = scalar_select %p1647_p13, 1, 0 }
  0x50   : > { %768 = vmatpush.bf16.msrb.mxu3 %v2940_v61  ;;  %v2252_v61 = vld [vmem:[%s2680_s29 + $0x30] sm:$0xf0]  ;;  %s1810_s13 = scalar_select %p1809_p0, 1, 0 }
  0x51   : > { %730 = vmatpush.bf16.msrb.mxu0 %v2945_v36  ;;  %v2274_v36 = vld [vmem:[%s2680_s29 + $0x48] sm:$0xf]  ;;  %v2990_v11 = vor.u32 %v2393_v42, %v2252_v61  ;;  %v2390_v42 = vld [vmem:[%s2680_s29 + $0xc] sm:$0xf] }
  0x52   : > { %743 = vmatpush.bf16.msrb.mxu1 %v2950_v48  ;;  %755 = vmatpush.bf16.msrb.mxu2 %v2957_v5  ;;  %v2394_v48 = vld [vmem:[%s2680_s29 + $0x2c] sm:$0xf]  ;;  %v2260_v5 = vld [vmem:[%s2680_s29 + $0x38] sm:$0xf0]  ;;  %v2997_v10 = vor.u32 %v2400_v58, %v2274_v36  ;;  %v2392_v58 = vld [vmem:[%s2680_s29 + $0x14] sm:$0xf0] }
  0x53   : > { %3678 = vst [vmem:[#allocation23_spill] sm:$0xff] %v2990_v11  ;;  %v3000_v33 = vor.u32 %v2394_v48, %v2260_v5  ;;  %v2242_v5 = vld [vmem:[%s2680_s29 + $0x8] sm:$0xf] }
  0x54   : > { %769 = vmatpush.bf16.msrb.mxu3 %v2960_v6  ;;  %v2391_v6 = vld [vmem:[%s2680_s29 + $0xc] sm:$0xf0]  ;;  %3679 = vst [vmem:[#allocation24_spill] sm:$0xff] %v2997_v10 }
  0x55   : > { %731 = vmatpush.bf16.msrb.mxu0 %v2965_v20  ;;  %3680 = vst [vmem:[#allocation25_spill] sm:$0xff] %v3000_v33  ;;  %v2396_v20 = vld [vmem:[%s2680_s29 + $0x34] sm:$0xf0]  ;;  %v3005_v61 = vor.u32 %v2391_v6, %v2234_v19  ;;  %v352_v6 = vld [vmem:[%s2690_s10] sm:$0xf]  ;;  %v3025_v19 = vor.u32 %v2392_v58, %v2242_v5  ;;  %v3693_v58 = vld [vmem:[#allocation20_spill] sm:$0xff] }
  0x56   : > { %744 = vmatpush.bf16.msrb.mxu1 %v2970_v31  ;;  %756 = vmatpush.bf16.msrb.mxu2 %v2977_v49  ;;  %v2244_v31 = vld [vmem:[%s2680_s29 + $0x18] sm:$0xf0]  ;;  %v3010_v49 = vor.u32 %v2389_v44, %v2236_v22  ;;  %v3013_v36 = vor.u32 %v2396_v20, %v2258_v38  ;;  %v3686_v20 = vld [vmem:[#allocation11_spill] sm:$0xff]  ;;  %v3688_v44 = vld [vmem:[#allocation14_spill] sm:$0xff]  ;;  %s1160_s29 = sadd.s32 2, %s2673_s22 }
  0x57   : > { %3681 = vst [vmem:[#allocation26_spill] sm:$0xff] %v3005_v61  ;;  %v3016_v48 = vor.u32 %v2390_v42, %v2244_v31  ;;  %v3687_v31 = vld [vmem:[#allocation13_spill] sm:$0xff]  ;;  %v3689_v22 = vld [vmem:[#allocation16_spill] sm:$0xff]  ;;  %v3690_v38 = vld [vmem:[#allocation15_spill] sm:$0xff]  ;;  %p1161_p10 = scmp.lt.s32.totalorder %s1160_s29, 12 }
  0x58   : > { %770 = vmatpush.bf16.msrb.mxu3 %v2980_v54  ;;  %3682 = vst [vmem:[#allocation27_spill] sm:$0xff] %v3010_v49  ;;  %v3691_v42 = vld [vmem:[#allocation17_spill] sm:$0xff]  ;;  %v3692_v5 = vld [vmem:[#allocation18_spill] sm:$0xff] }
  0x59   : > { %732 = vmatpush.bf16.msrb.mxu0 %v2985_v62  ;;  %3683 = vst [vmem:[#allocation28_spill] sm:$0xff] %v3013_v36  ;;  %s1162_s30 = scalar_select %p1161_p10, 1, 0 }
  0x5a   : > { %745 = vmatpush.bf16.msrb.mxu1 %v2990_v11  ;;  %757 = vmatpush.bf16.msrb.mxu2 %v2997_v10  ;;  %3684 = vst [vmem:[#allocation29_spill] sm:$0xff] %v3016_v48 }
  0x5b   : > { %3685 = vst [vmem:[#allocation30_spill] sm:$0xff] %v3025_v19 }
  0x5c   : > { %771 = vmatpush.bf16.msrb.mxu3 %v3000_v33 }
  0x5d   : > { %733 = vmatpush.bf16.msrb.mxu0 %v3005_v61 }
  0x5e   : > { %746 = vmatpush.bf16.msrb.mxu1 %v3010_v49  ;;  %758 = vmatpush.bf16.msrb.mxu2 %v3013_v36 }
  0x60   : > { %734 = vmatmul.bf16.vlgmr.msrb.gmra.mxu0 %v352_v6  ;;  %772 = vmatpush.bf16.msrb.mxu3 %v3016_v48 }
  0x61   : > { %845 = vmatpush.bf16.msra.mxu0 %v2706_v4  ;;  %747 = vmatmul.bf16.vlgmr.msrb.gmra.mxu1 %v352_v6 }
  0x62   : > { %858 = vmatpush.bf16.msra.mxu1 %v2711_v8  ;;  %759 = vmatpush.bf16.msrb.mxu2 %v3025_v19 }
  0x63   : > { %773 = vmatmul.bf16.vlgmr.msrb.gmra.mxu3 %v352_v6 }
  0x64   : > { %884 = vmatpush.bf16.msra.mxu3 %v2725_v17 }
  0x65   : > { %846 = vmatpush.bf16.msra.mxu0 %v2717_v12  ;;  %760 = vmatmul.bf16.vlgmr.msrb.gmra.mxu2 %v352_v6  ;;  %v3694_v6 = vld [vmem:[#allocation19_spill] sm:$0xff] }
  0x66   : > { %871 = vmatpush.bf16.msra.mxu2 %v2734_v24  ;;  %859 = vmatpush.bf16.msra.mxu1 %v2723_v16 }
  0x68   : > { %885 = vmatpush.bf16.msra.mxu3 %v2736_v25 }
  0x69   : > { %847 = vmatpush.bf16.msra.mxu0 %v2739_v26 }
  0x6a   : > { %872 = vmatpush.bf16.msra.mxu2 %v2749_v32  ;;  %860 = vmatpush.bf16.msra.mxu1 %v2745_v30 }
  0x6c   : > { %886 = vmatpush.bf16.msra.mxu3 %v2756_v37 }
  0x6d   : > { %848 = vmatpush.bf16.msra.mxu0 %v2761_v40 }
  0x6e   : > { %873 = vmatpush.bf16.msra.mxu2 %v2772_v47  ;;  %861 = vmatpush.bf16.msra.mxu1 %v2766_v43 }
  0x70   : > { %887 = vmatpush.bf16.msra.mxu3 %v2778_v51 }
  0x71   : > { %849 = vmatpush.bf16.msra.mxu0 %v2781_v52 }
  0x72   : > { %874 = vmatpush.bf16.msra.mxu2 %v2792_v59  ;;  %862 = vmatpush.bf16.msra.mxu1 %v2786_v55 }
  0x74   : > { %888 = vmatpush.bf16.msra.mxu3 %v2798_v63 }
  0x75   : > { %850 = vmatpush.bf16.msra.mxu0 %v2801_v0 }
  0x76   : > { %875 = vmatpush.bf16.msra.mxu2 %v2812_v9  ;;  %863 = vmatpush.bf16.msra.mxu1 %v2806_v3 }
  0x78   : > { %889 = vmatpush.bf16.msra.mxu3 %v2818_v14 }
  0x79   : > { %851 = vmatpush.bf16.msra.mxu0 %v2821_v15 }
  0x7a   : > { %876 = vmatpush.bf16.msra.mxu2 %v2833_v28  ;;  %864 = vmatpush.bf16.msra.mxu1 %v2827_v21 }
  0x7c   : > { %890 = vmatpush.bf16.msra.mxu3 %v2840_v35 }
  0x7d   : > { %852 = vmatpush.bf16.msra.mxu0 %v2845_v39 }
  0x7e   : > { %877 = vmatpush.bf16.msra.mxu2 %v2861_v53  ;;  %865 = vmatpush.bf16.msra.mxu1 %v2852_v45 }
  0x80   : > { %891 = vmatpush.bf16.msra.mxu3 %v2868_v60 }
  0x81   : > { %897 = vmatpush.bf16.msrb.mxu0 %v2855_v46 }
  0x82   : > { %910 = vmatpush.bf16.msrb.mxu1 %v2859_v50  ;;  %878 = vmatpush.bf16.msra.mxu2 %v2889_v18 }
  0x84   : > { %936 = vmatpush.bf16.msrb.mxu3 %v2875_v2 }
  0x85   : > { %898 = vmatpush.bf16.msrb.mxu0 %v2881_v7 }
  0x86   : > { %923 = vmatpush.bf16.msrb.mxu2 %v2896_v27  ;;  %911 = vmatpush.bf16.msrb.mxu1 %v2887_v13 }
  0x88   : > { %937 = vmatpush.bf16.msrb.mxu3 %v2899_v29 }
  0x89   : > { %899 = vmatpush.bf16.msrb.mxu0 %v2904_v34 }
  0x8a   : > { %924 = vmatpush.bf16.msrb.mxu2 %v2917_v56  ;;  %912 = vmatpush.bf16.msrb.mxu1 %v2910_v41 }
  0x8c   : > { %938 = vmatpush.bf16.msrb.mxu3 %v2920_v57 }
  0x8d   : > { %900 = vmatpush.bf16.msrb.mxu0 %v2925_v1 }
  0x8e   : > { %925 = vmatpush.bf16.msrb.mxu2 %v2937_v23  ;;  %913 = vmatpush.bf16.msrb.mxu1 %v3686_v20 }
  0x90   : > { %939 = vmatpush.bf16.msrb.mxu3 %v3687_v31 }
  0x91   : > { %901 = vmatpush.bf16.msrb.mxu0 %v3688_v44 }
  0x92   : > { %926 = vmatpush.bf16.msrb.mxu2 %v3689_v22  ;;  %914 = vmatpush.bf16.msrb.mxu1 %v3690_v38  ;;  %v350_v38 = vld [vmem:[%s2695_s14] sm:$0xf] }
  0x93   : > { %v3095_v44 = vperm.slane %v350_v38, 1 }
  0x94   : > { %940 = vmatpush.bf16.msrb.mxu3 %v3691_v42 }
  0x95   : > { %902 = vmatpush.bf16.msrb.mxu0 %v3692_v5  ;;  %3696 = vst [vmem:[#allocation32_spill] sm:$0xff] %v3095_v44 }
  0x96   : > { %927 = vmatpush.bf16.msrb.mxu2 %v3693_v58  ;;  %915 = vmatpush.bf16.msrb.mxu1 %v3694_v6 }
  0x98   : > { %941 = vmatpush.bf16.msrb.mxu3 %v2980_v54 }
  0x99   : > { %903 = vmatpush.bf16.msrb.mxu0 %v2985_v62 }
  0x9a   : > { %928 = vmatpush.bf16.msrb.mxu2 %v2997_v10  ;;  %916 = vmatpush.bf16.msrb.mxu1 %v2990_v11 }
  0x9c   : > { %942 = vmatpush.bf16.msrb.mxu3 %v3000_v33  ;;  %v3093_v33 = vperm.slane %v350_v38, 0 }
  0x9d   : > { %904 = vmatpush.bf16.msrb.mxu0 %v3005_v61 }
  0x9e   : > { %929 = vmatpush.bf16.msrb.mxu2 %v3013_v36  ;;  %917 = vmatpush.bf16.msrb.mxu1 %v3010_v49  ;;  %3695 = vst [vmem:[#allocation31_spill] sm:$0xff] %v3093_v33 }
  0xa0   : > { %943 = vmatpush.bf16.msrb.mxu3 %v3016_v48 }
  0xa2   : > { %930 = vmatpush.bf16.msrb.mxu2 %v3025_v19 }
  0xbd   : > { %v523_v54 = vpop.f32.mrf.mxu0 }
  0xbe   : > { %v536_v6 = vpop.f32.mrf.mxu1 }
  0xc5   : > { %v525_v62 = vpop.f32.mrf.mxu0 }
  0xc6   : > { %v538_v5 = vpop.f32.mrf.mxu1  ;;  %v562_v10 = vpop.f32.mrf.mxu3 }
  0xc8   : > { %v549_v42 = vpop.f32.mrf.mxu2 }
  0xce   : > { %v564_v58 = vpop.f32.mrf.mxu3 }
  0xd0   : > { %v551_v11 = vpop.f32.mrf.mxu2 }
  0xdd   : > { %v735_v61 = vpop.f32.mrf.mxu0 }
  0xde   : > { %v736_v36 = vadd.f32 %v735_v61, %v523_v54  ;;  %v748_v49 = vpop.f32.mrf.mxu1 }
  0xdf   : > { %v749_v31 = vadd.f32 %v748_v49, %v536_v6 }
  0xe0   : > { %v787_v48 = vadd.f32 %v3093_v33, %v736_v36 }
  0xe1   : > { %v788_v19 = vadd.f32 %v3095_v44, %v749_v31 }
  0xe2   : > { %v2360_v22 = vmul.f32 -1.442695, %v787_v48 }
  0xe3   : > { %v2361_v62 = vmul.f32 -1.442695, %v788_v19 }
  0xe4   : > { %2494 = vpow2.f32 %v2360_v22  ;;  %v3099_v22 = vperm.slane %v350_v38, 3 }
  0xe5   : > { %2496 = vpow2.f32 %v2361_v62  ;;  %v737_v5 = vpop.f32.mrf.mxu0 }
  0xe6   : > { %v750_v58 = vpop.f32.mrf.mxu1  ;;  %v774_v11 = vpop.f32.mrf.mxu3 }
  0xe7   : > { %v775_v5 = vadd.f32 %v774_v11, %v562_v10 }
  0xe8   : > { %v761_v20 = vpop.f32.mrf.mxu2 }
  0xe9   : > { %v790_v34 = vadd.f32 %v3099_v22, %v775_v5 }
  0xea   : > { %v2495_v1 = vpop.eup %2494 }
  0xeb   : > { %v2497_v57 = vpop.eup %2496  ;;  %v794_v23 = vadd.f32 1.0, %v2495_v1 }
  0xec   : > { %v813_v41 = vadd.f32 1.0, %v2497_v57  ;;  %v762_v57 = vadd.f32 %v761_v20, %v549_v42 }
  0xed   : > { %2498 = vrcp.f32 %v794_v23  ;;  %v806_v62 = vand.u32 2147483648, %v794_v23  ;;  %v804_v44 = vand.u32 2147483647, %v794_v23  ;;  %vm800_vm1 = vweird.f32 %v794_v23 }
  0xee   : > { %2500 = vrcp.f32 %v813_v41  ;;  %v776_v54 = vpop.f32.mrf.mxu3  ;;  %v825_v10 = vand.u32 2147483648, %v813_v41  ;;  %vm819_vm5 = vweird.f32 %v813_v41 }
  0xef   : > { %v3101_v54 = vperm.slane %v350_v38, 2  ;;  %vm805_vm3 = vcmp.eq.f32.partialorder %v804_v44, 8.507059e+37  ;;  %v839_v44 = vstv %s838_s16 }
  0xf0   : > { %v763_v49 = vpop.f32.mrf.mxu2  ;;  %v826_v38 = vor.u32 1.1754944e-38, %v825_v10  ;;  %vm840_vm8 = vcmp.eq.s32.totalorder %v839_v44, 1  ;;  %v3703_v10 = vld [vmem:[#allocation10_spill] sm:$0xff]  ;;  %v3712_v44 = vld [vmem:[#allocation19_spill] sm:$0xff] }
  0xf1   : > { %v807_v49 = vor.u32 1.1754944e-38, %v806_v62 }
  0xf3   : > { %v2499_v61 = vpop.eup %2498 }
  0xf4   : > { %v2501_v36 = vpop.eup %2500  ;;  %v796_v6 = vmul.f32 %v2499_v61, %v794_v23  ;;  %vm801_vm0 = vweird.f32 %v2499_v61 }
  0xf5   : > { %v815_v31 = vmul.f32 %v2501_v36, %v813_v41  ;;  %vm802_vm2 = vmor %vm800_vm1, %vm801_vm0  ;;  %vm820_vm4 = vweird.f32 %v2501_v36 }
  0xf6   : > { %v797_v48 = vsub.f32 1.0, %v796_v6  ;;  %vm821_vm6 = vmor %vm819_vm5, %vm820_vm4 }
  0xf7   : > { %v816_v19 = vsub.f32 1.0, %v815_v31 }
  0xf8   : > { %v798_v58 = vmul.f32 %v2499_v61, %v797_v48  ;;  %v789_v48 = vadd.f32 %v3101_v54, %v762_v57  ;;  %v3699_v57 = vld [vmem:[#allocation6_spill] sm:$0xff] }
  0xf9   : > { %v817_v33 = vmul.f32 %v2501_v36, %v816_v19  ;;  %v823_v19 = vand.u32 2147483647, %v813_v41 }
  0xfa   : > { %v799_v1 = vadd.f32 %v2499_v61, %v798_v58 }
  0xfb   : > { %v818_v29 = vadd.f32 %v2501_v36, %v817_v33  ;;  %vm824_vm7 = vcmp.eq.f32.partialorder %v823_v19, 8.507059e+37  ;;  %v3697_v33 = vld [vmem:[#allocation3_spill] sm:$0xff]  ;;  %v3706_v19 = vld [vmem:[#allocation13_spill] sm:$0xff] }
  0xfc   : > { %v803_v6 = vsel %vm802_vm2, %v2499_v61, %v799_v1 }
  0xfd   : > { %v808_v31 = vsel %vm805_vm3, %v807_v49, %v803_v6  ;;  %v822_v20 = vsel %vm821_vm6, %v2501_v36, %v818_v29  ;;  %v2363_v29 = vld [vmem:[%s2690_s10 + $0x4] sm:$0xf]  ;;  %v3698_v36 = vld [vmem:[#allocation5_spill] sm:$0xff]  ;;  %v3700_v49 = vld [vmem:[#allocation7_spill] sm:$0xff] }
  0xfe   : > { %v829_v11 = vmul.f32 %v808_v31, %v790_v34  ;;  %v827_v42 = vsel %vm824_vm7, %v826_v38, %v822_v20  ;;  %v3701_v6 = vld [vmem:[#allocation12_spill] sm:$0xff]  ;;  %v3702_v31 = vld [vmem:[#allocation9_spill] sm:$0xff]  ;;  %v3708_v20 = vld [vmem:[#allocation15_spill] sm:$0xff] }
  0xff   : > { %v832_v61 = vsub.f32 1.0, %v827_v42  ;;  %v834_v58 = vmul.f32 %v827_v42, %v3697_v33  ;;  %v3709_v38 = vld [vmem:[#allocation20_spill] sm:$0xff]  ;;  %v3710_v42 = vld [vmem:[#allocation17_spill] sm:$0xff] }
 0x100   : > { %v830_v23 = vadd.f32 %v829_v11, %v789_v48  ;;  %v3704_v11 = vld [vmem:[#allocation11_spill] sm:$0xff]  ;;  %v3705_v48 = vld [vmem:[#allocation16_spill] sm:$0xff] }
 0x102   : > { %2502 = vtanh.f32 %v830_v23  ;;  %v3707_v23 = vld [vmem:[#allocation14_spill] sm:$0xff] }
 0x108   : > { %v2503_v62 = vpop.eup %2502 }
 0x109   : > { %v833_v5 = vmul.f32 %v2503_v62, %v832_v61  ;;  %v3711_v61 = vld [vmem:[#allocation18_spill] sm:$0xff]  ;;  %v3713_v62 = vld [vmem:[#allocation24_spill] sm:$0xff] }
 0x10b   : > { %v835_v34 = vadd.f32 %v834_v58, %v833_v5  ;;  %v3714_v5 = vld [vmem:[#allocation21_spill] sm:$0xff]  ;;  %v3716_v58 = vld [vmem:[#allocation23_spill] sm:$0xff] }
 0x10d   : > { %v3108_v1 = vsel %vm840_vm8, %v835_v34, %v3697_v33  ;;  %v3715_v33 = vld [vmem:[#allocation22_spill] sm:$0xff]  ;;  %v3717_v34 = vld [vmem:[#allocation28_spill] sm:$0xff] }
 0x10e   : > { %v844_v41 = vpack.c.bf16 %v3108_v1, %v3108_v1 }
 0x110   : > { %853 = vmatmul.bf16.vlgmr.msra.gmra.mxu0 %v844_v41  ;;  %866 = vmatmul.bf16.vlgmr.msra.gmra.mxu1 %v844_v41 }
 0x111   : > { %879 = vmatmul.bf16.vlgmr.msra.gmra.mxu2 %v844_v41  ;;  %892 = vmatmul.bf16.vlgmr.msra.gmra.mxu3 %v844_v41  ;;  %v3718_v41 = vld [vmem:[#allocation25_spill] sm:$0xff] }
 0x112   : > { %1007 = vmatpush.bf16.msra.mxu0 %v2706_v4  ;;  %1020 = vmatpush.bf16.msra.mxu1 %v2711_v8 }
 0x113   : > { %1033 = vmatpush.bf16.msra.mxu2 %v2734_v24  ;;  %1046 = vmatpush.bf16.msra.mxu3 %v2725_v17 }
 0x116   : > { %1008 = vmatpush.bf16.msra.mxu0 %v2717_v12  ;;  %1021 = vmatpush.bf16.msra.mxu1 %v2723_v16 }
 0x117   : > { %1034 = vmatpush.bf16.msra.mxu2 %v2749_v32  ;;  %1047 = vmatpush.bf16.msra.mxu3 %v2736_v25 }
 0x11a   : > { %1009 = vmatpush.bf16.msra.mxu0 %v2739_v26  ;;  %1022 = vmatpush.bf16.msra.mxu1 %v2745_v30 }
 0x11b   : > { %1035 = vmatpush.bf16.msra.mxu2 %v2772_v47  ;;  %1048 = vmatpush.bf16.msra.mxu3 %v2756_v37 }
 0x11e   : > { %1010 = vmatpush.bf16.msra.mxu0 %v2761_v40  ;;  %1023 = vmatpush.bf16.msra.mxu1 %v2766_v43 }
 0x11f   : > { %1036 = vmatpush.bf16.msra.mxu2 %v2792_v59  ;;  %1049 = vmatpush.bf16.msra.mxu3 %v2778_v51 }
 0x120   : > { %905 = vmatmul.bf16.vlgmr.msrb.gmra.mxu0 %v2363_v29  ;;  %918 = vmatmul.bf16.vlgmr.msrb.gmra.mxu1 %v2363_v29 }
 0x121   : > { %931 = vmatmul.bf16.vlgmr.msrb.gmra.mxu2 %v2363_v29  ;;  %944 = vmatmul.bf16.vlgmr.msrb.gmra.mxu3 %v2363_v29  ;;  %v3719_v29 = vld [vmem:[#allocation26_spill] sm:$0xff] }
 0x122   : > { %1011 = vmatpush.bf16.msra.mxu0 %v2781_v52  ;;  %1024 = vmatpush.bf16.msra.mxu1 %v2786_v55 }
 0x123   : > { %1037 = vmatpush.bf16.msra.mxu2 %v2812_v9  ;;  %1050 = vmatpush.bf16.msra.mxu3 %v2798_v63 }
 0x126   : > { %1012 = vmatpush.bf16.msra.mxu0 %v2801_v0  ;;  %1025 = vmatpush.bf16.msra.mxu1 %v2806_v3 }
 0x127   : > { %1038 = vmatpush.bf16.msra.mxu2 %v2833_v28  ;;  %1051 = vmatpush.bf16.msra.mxu3 %v2818_v14 }
 0x12a   : > { %1013 = vmatpush.bf16.msra.mxu0 %v2821_v15  ;;  %1026 = vmatpush.bf16.msra.mxu1 %v2827_v21 }
 0x12b   : > { %1039 = vmatpush.bf16.msra.mxu2 %v2861_v53  ;;  %1052 = vmatpush.bf16.msra.mxu3 %v2840_v35 }
 0x12e   : > { %1014 = vmatpush.bf16.msra.mxu0 %v2845_v39  ;;  %1027 = vmatpush.bf16.msra.mxu1 %v2852_v45 }
 0x12f   : > { %1040 = vmatpush.bf16.msra.mxu2 %v2889_v18  ;;  %1053 = vmatpush.bf16.msra.mxu3 %v2868_v60 }
 0x132   : > { %1059 = vmatpush.bf16.msrb.mxu0 %v2855_v46  ;;  %1072 = vmatpush.bf16.msrb.mxu1 %v2859_v50 }
 0x133   : > { %1085 = vmatpush.bf16.msrb.mxu2 %v2896_v27  ;;  %1098 = vmatpush.bf16.msrb.mxu3 %v2875_v2 }
 0x136   : > { %1060 = vmatpush.bf16.msrb.mxu0 %v2881_v7  ;;  %1073 = vmatpush.bf16.msrb.mxu1 %v2887_v13 }
 0x137   : > { %1086 = vmatpush.bf16.msrb.mxu2 %v2917_v56  ;;  %1099 = vmatpush.bf16.msrb.mxu3 %v3698_v36 }
 0x13a   : > { %1061 = vmatpush.bf16.msrb.mxu0 %v3699_v57  ;;  %1074 = vmatpush.bf16.msrb.mxu1 %v3700_v49 }
 0x13b   : > { %1087 = vmatpush.bf16.msrb.mxu2 %v3701_v6  ;;  %1100 = vmatpush.bf16.msrb.mxu3 %v3702_v31  ;;  %v3724_v31 = vld [vmem:[#allocation32_spill] sm:$0xff] }
 0x13e   : > { %1062 = vmatpush.bf16.msrb.mxu0 %v3703_v10  ;;  %1075 = vmatpush.bf16.msrb.mxu1 %v3704_v11  ;;  %v3723_v10 = vld [vmem:[#allocation31_spill] sm:$0xff] }
 0x13f   : > { %1088 = vmatpush.bf16.msrb.mxu2 %v3705_v48  ;;  %1101 = vmatpush.bf16.msrb.mxu3 %v3706_v19 }
 0x142   : > { %1063 = vmatpush.bf16.msrb.mxu0 %v3707_v23  ;;  %1076 = vmatpush.bf16.msrb.mxu1 %v3708_v20 }
 0x143   : > { %1089 = vmatpush.bf16.msrb.mxu2 %v3709_v38  ;;  %1102 = vmatpush.bf16.msrb.mxu3 %v3710_v42  ;;  %v3720_v38 = vld [vmem:[#allocation27_spill] sm:$0xff]  ;;  %v3721_v42 = vld [vmem:[#allocation30_spill] sm:$0xff] }
 0x146   : > { %1064 = vmatpush.bf16.msrb.mxu0 %v3711_v61  ;;  %1077 = vmatpush.bf16.msrb.mxu1 %v3712_v44  ;;  %v3722_v61 = vld [vmem:[#allocation29_spill] sm:$0xff] }
 0x147   : > { %1090 = vmatpush.bf16.msrb.mxu2 %v3713_v62  ;;  %1103 = vmatpush.bf16.msrb.mxu3 %v3714_v5 }
 0x14a   : > { %1065 = vmatpush.bf16.msrb.mxu0 %v3715_v33  ;;  %1078 = vmatpush.bf16.msrb.mxu1 %v3716_v58 }
 0x14b   : > { %1091 = vmatpush.bf16.msrb.mxu2 %v3717_v34  ;;  %1104 = vmatpush.bf16.msrb.mxu3 %v3718_v41 }
 0x14e   : > { %1066 = vmatpush.bf16.msrb.mxu0 %v3719_v29  ;;  %1079 = vmatpush.bf16.msrb.mxu1 %v3720_v38 }
 0x14f   : > { %1092 = vmatpush.bf16.msrb.mxu2 %v3721_v42  ;;  %1105 = vmatpush.bf16.msrb.mxu3 %v3722_v61 }
 0x18d   : > { %v854_v44 = vpop.f32.mrf.mxu0  ;;  %v867_v62 = vpop.f32.mrf.mxu1 }
 0x194   : > { %v880_v20 = vpop.f32.mrf.mxu2  ;;  %v893_v5 = vpop.f32.mrf.mxu3 }
 0x195   : > { %v856_v23 = vpop.f32.mrf.mxu0  ;;  %v869_v33 = vpop.f32.mrf.mxu1 }
 0x19c   : > { %v882_v19 = vpop.f32.mrf.mxu2  ;;  %v895_v58 = vpop.f32.mrf.mxu3 }
 0x19d   : > { %v906_v48 = vpop.f32.mrf.mxu0  ;;  %v919_v34 = vpop.f32.mrf.mxu1 }
 0x19e   : > { %v907_v11 = vadd.f32 %v906_v48, %v854_v44  ;;  %v920_v41 = vadd.f32 %v919_v34, %v867_v62 }
 0x1a0   : > { %v949_v29 = vadd.f32 %v907_v11, %v3723_v10  ;;  %v950_v38 = vadd.f32 %v920_v41, %v3724_v31 }
 0x1a2   : > { %v2364_v6 = vmul.f32 -1.442695, %v949_v29  ;;  %v2365_v42 = vmul.f32 -1.442695, %v950_v38 }
 0x1a4   : > { %2504 = vpow2.f32 %v2364_v6  ;;  %v932_v61 = vpop.f32.mrf.mxu2  ;;  %v945_v49 = vpop.f32.mrf.mxu3 }
 0x1a5   : > { %2506 = vpow2.f32 %v2365_v42  ;;  %v908_v57 = vpop.f32.mrf.mxu0  ;;  %v921_v36 = vpop.f32.mrf.mxu1  ;;  %v946_v41 = vadd.f32 %v945_v49, %v893_v5  ;;  %v933_v29 = vadd.f32 %v932_v61, %v880_v20 }
 0x1a7   : > { %v951_v49 = vadd.f32 %v933_v29, %v3101_v54 }
 0x1aa   : > { %v2505_v23 = vpop.eup %2504 }
 0x1ab   : > { %v2507_v33 = vpop.eup %2506  ;;  %v956_v19 = vadd.f32 1.0, %v2505_v23 }
 0x1ac   : > { %v975_v58 = vadd.f32 1.0, %v2507_v33  ;;  %v947_v56 = vpop.f32.mrf.mxu3  ;;  %v934_v13 = vpop.f32.mrf.mxu2 }
 0x1ad   : > { %2508 = vrcp.f32 %v956_v19  ;;  %v968_v38 = vand.u32 2147483648, %v956_v19  ;;  %v966_v36 = vand.u32 2147483647, %v956_v19  ;;  %vm962_vm10 = vweird.f32 %v956_v19 }
 0x1ae   : > { %2510 = vrcp.f32 %v975_v58  ;;  %v952_v56 = vadd.f32 %v946_v41, %v3099_v22  ;;  %vm981_vm14 = vweird.f32 %v975_v58 }
 0x1af   : > { %v969_v13 = vor.u32 1.1754944e-38, %v968_v38  ;;  %vm967_vm12 = vcmp.eq.f32.partialorder %v966_v36, 8.507059e+37  ;;  %v1001_v38 = vstv %s1000_s28 }
 0x1b0   : > { %vm1002_vm1 = vcmp.eq.s32.totalorder %v1001_v38, 1  ;;  %v3741_v38 = vld [vmem:[#allocation19_spill] sm:$0xff] }
 0x1b3   : > { %v2509_v48 = vpop.eup %2508 }
 0x1b4   : > { %v2511_v11 = vpop.eup %2510  ;;  %v958_v44 = vmul.f32 %v2509_v48, %v956_v19  ;;  %vm963_vm9 = vweird.f32 %v2509_v48 }
 0x1b5   : > { %v977_v62 = vmul.f32 %v2511_v11, %v975_v58  ;;  %vm964_vm11 = vmor %vm962_vm10, %vm963_vm9  ;;  %vm982_vm13 = vweird.f32 %v2511_v11 }
 0x1b6   : > { %v959_v34 = vsub.f32 1.0, %v958_v44  ;;  %vm983_vm15 = vmor %vm981_vm14, %vm982_vm13 }
 0x1b7   : > { %v978_v6 = vsub.f32 1.0, %v977_v62  ;;  %v987_v62 = vand.u32 2147483648, %v975_v58 }
 0x1b8   : > { %v960_v42 = vmul.f32 %v2509_v48, %v959_v34  ;;  %v985_v34 = vand.u32 2147483647, %v975_v58 }
 0x1b9   : > { %v979_v57 = vmul.f32 %v2511_v11, %v978_v6  ;;  %v988_v19 = vor.u32 1.1754944e-38, %v987_v62  ;;  %v3732_v62 = vld [vmem:[#allocation10_spill] sm:$0xff] }
 0x1ba   : > { %v961_v23 = vadd.f32 %v2509_v48, %v960_v42  ;;  %vm986_vm0 = vcmp.eq.f32.partialorder %v985_v34, 8.507059e+37  ;;  %v3735_v34 = vld [vmem:[#allocation13_spill] sm:$0xff] }
 0x1bb   : > { %v980_v31 = vadd.f32 %v2511_v11, %v979_v57 }
 0x1bc   : > { %v965_v33 = vsel %vm964_vm11, %v2509_v48, %v961_v23  ;;  %v3727_v23 = vld [vmem:[#allocation5_spill] sm:$0xff] }
 0x1bd   : > { %v970_v44 = vsel %vm967_vm12, %v969_v13, %v965_v33  ;;  %v984_v61 = vsel %vm983_vm15, %v2511_v11, %v980_v31  ;;  %v3725_v31 = vld [vmem:[#allocation4_spill] sm:$0xff]  ;;  %v3728_v13 = vld [vmem:[#allocation6_spill] sm:$0xff] }
 0x1be   : > { %v991_v5 = vmul.f32 %v970_v44, %v952_v56  ;;  %v989_v48 = vsel %vm986_vm0, %v988_v19, %v984_v61  ;;  %v3726_v11 = vld [vmem:[#allocation8_spill] sm:$0xff]  ;;  %v3729_v56 = vld [vmem:[#allocation7_spill] sm:$0xff]  ;;  %v3731_v44 = vld [vmem:[#allocation9_spill] sm:$0xff] }
 0x1bf   : > { %v994_v6 = vsub.f32 1.0, %v989_v48  ;;  %v996_v36 = vmul.f32 %v989_v48, %v3108_v1  ;;  %v3730_v33 = vld [vmem:[#allocation12_spill] sm:$0xff]  ;;  %v3737_v61 = vld [vmem:[#allocation15_spill] sm:$0xff]  ;;  %v3739_v48 = vld [vmem:[#allocation17_spill] sm:$0xff] }
 0x1c0   : > { %v992_v20 = vadd.f32 %v991_v5, %v951_v49  ;;  %v3733_v49 = vld [vmem:[#allocation11_spill] sm:$0xff]  ;;  %v3734_v5 = vld [vmem:[#allocation16_spill] sm:$0xff] }
 0x1c1   : > { %v3738_v19 = vld [vmem:[#allocation20_spill] sm:$0xff] }
 0x1c2   : > { %2512 = vtanh.f32 %v992_v20  ;;  %v3736_v20 = vld [vmem:[#allocation14_spill] sm:$0xff] }
 0x1c8   : > { %v2513_v41 = vpop.eup %2512 }
 0x1c9   : > { %v995_v42 = vmul.f32 %v2513_v41, %v994_v6  ;;  %v3740_v6 = vld [vmem:[#allocation18_spill] sm:$0xff]  ;;  %v3742_v41 = vld [vmem:[#allocation24_spill] sm:$0xff] }
 0x1cb   : > { %v997_v57 = vadd.f32 %v996_v36, %v995_v42  ;;  %v3743_v42 = vld [vmem:[#allocation21_spill] sm:$0xff]  ;;  %v3744_v36 = vld [vmem:[#allocation22_spill] sm:$0xff] }
 0x1cd   : > { %v3184_v29 = vsel %vm1002_vm1, %v997_v57, %v3108_v1  ;;  %v2366_v1 = vld [vmem:[%s2690_s10 + $0x8] sm:$0xf] }
 0x1ce   : > { %v1006_v58 = vpack.c.bf16 %v3184_v29, %v3184_v29  ;;  %v3745_v57 = vld [vmem:[#allocation23_spill] sm:$0xff] }
 0x1d0   : > { %1015 = vmatmul.bf16.vlgmr.msra.gmra.mxu0 %v1006_v58  ;;  %1028 = vmatmul.bf16.vlgmr.msra.gmra.mxu1 %v1006_v58 }
 0x1d1   : > { %1041 = vmatmul.bf16.vlgmr.msra.gmra.mxu2 %v1006_v58  ;;  %1054 = vmatmul.bf16.vlgmr.msra.gmra.mxu3 %v1006_v58  ;;  %v3746_v58 = vld [vmem:[#allocation28_spill] sm:$0xff] }
 0x1d2   : > { %1169 = vmatpush.bf16.msra.mxu0 %v2706_v4  ;;  %1182 = vmatpush.bf16.msra.mxu1 %v2711_v8 }
 0x1d3   : > { %1195 = vmatpush.bf16.msra.mxu2 %v2734_v24  ;;  %1208 = vmatpush.bf16.msra.mxu3 %v2725_v17 }
 0x1d6   : > { %1170 = vmatpush.bf16.msra.mxu0 %v2717_v12  ;;  %1183 = vmatpush.bf16.msra.mxu1 %v2723_v16 }
 0x1d7   : > { %1196 = vmatpush.bf16.msra.mxu2 %v2749_v32  ;;  %1209 = vmatpush.bf16.msra.mxu3 %v2736_v25 }
 0x1da   : > { %1171 = vmatpush.bf16.msra.mxu0 %v2739_v26  ;;  %1184 = vmatpush.bf16.msra.mxu1 %v2745_v30 }
 0x1db   : > { %1197 = vmatpush.bf16.msra.mxu2 %v2772_v47  ;;  %1210 = vmatpush.bf16.msra.mxu3 %v2756_v37 }
 0x1de   : > { %1172 = vmatpush.bf16.msra.mxu0 %v2761_v40  ;;  %1185 = vmatpush.bf16.msra.mxu1 %v2766_v43 }
 0x1df   : > { %1198 = vmatpush.bf16.msra.mxu2 %v2792_v59  ;;  %1211 = vmatpush.bf16.msra.mxu3 %v2778_v51 }
 0x1e0   : > { %1067 = vmatmul.bf16.vlgmr.msrb.gmra.mxu0 %v2366_v1  ;;  %1080 = vmatmul.bf16.vlgmr.msrb.gmra.mxu1 %v2366_v1 }
 0x1e1   : > { %1093 = vmatmul.bf16.vlgmr.msrb.gmra.mxu2 %v2366_v1  ;;  %1106 = vmatmul.bf16.vlgmr.msrb.gmra.mxu3 %v2366_v1  ;;  %v3747_v1 = vld [vmem:[#allocation25_spill] sm:$0xff] }
 0x1e2   : > { %1173 = vmatpush.bf16.msra.mxu0 %v2781_v52  ;;  %1186 = vmatpush.bf16.msra.mxu1 %v2786_v55 }
 0x1e3   : > { %1199 = vmatpush.bf16.msra.mxu2 %v2812_v9  ;;  %1212 = vmatpush.bf16.msra.mxu3 %v2798_v63 }
 0x1e6   : > { %1174 = vmatpush.bf16.msra.mxu0 %v2801_v0  ;;  %1187 = vmatpush.bf16.msra.mxu1 %v2806_v3 }
 0x1e7   : > { %1200 = vmatpush.bf16.msra.mxu2 %v2833_v28  ;;  %1213 = vmatpush.bf16.msra.mxu3 %v2818_v14 }
 0x1ea   : > { %1175 = vmatpush.bf16.msra.mxu0 %v2821_v15  ;;  %1188 = vmatpush.bf16.msra.mxu1 %v2827_v21 }
 0x1eb   : > { %1201 = vmatpush.bf16.msra.mxu2 %v2861_v53  ;;  %1214 = vmatpush.bf16.msra.mxu3 %v2840_v35 }
 0x1ee   : > { %1176 = vmatpush.bf16.msra.mxu0 %v2845_v39  ;;  %1189 = vmatpush.bf16.msra.mxu1 %v2852_v45 }
 0x1ef   : > { %1202 = vmatpush.bf16.msra.mxu2 %v2889_v18  ;;  %1215 = vmatpush.bf16.msra.mxu3 %v2868_v60 }
 0x1f2   : > { %1221 = vmatpush.bf16.msrb.mxu0 %v2855_v46  ;;  %1234 = vmatpush.bf16.msrb.mxu1 %v2859_v50 }
 0x1f3   : > { %1247 = vmatpush.bf16.msrb.mxu2 %v2896_v27  ;;  %1260 = vmatpush.bf16.msrb.mxu3 %v2875_v2 }
 0x1f6   : > { %1222 = vmatpush.bf16.msrb.mxu0 %v2881_v7  ;;  %1235 = vmatpush.bf16.msrb.mxu1 %v3725_v31 }
 0x1f7   : > { %1248 = vmatpush.bf16.msrb.mxu2 %v3726_v11  ;;  %1261 = vmatpush.bf16.msrb.mxu3 %v3727_v23 }
 0x1fa   : > { %1223 = vmatpush.bf16.msrb.mxu0 %v3728_v13  ;;  %1236 = vmatpush.bf16.msrb.mxu1 %v3729_v56 }
 0x1fb   : > { %1249 = vmatpush.bf16.msrb.mxu2 %v3730_v33  ;;  %1262 = vmatpush.bf16.msrb.mxu3 %v3731_v44  ;;  %v3752_v44 = vld [vmem:[#allocation32_spill] sm:$0xff] }
 0x1fe   : > { %1224 = vmatpush.bf16.msrb.mxu0 %v3732_v62  ;;  %1237 = vmatpush.bf16.msrb.mxu1 %v3733_v49 }
 0x1ff   : > { %1250 = vmatpush.bf16.msrb.mxu2 %v3734_v5  ;;  %1263 = vmatpush.bf16.msrb.mxu3 %v3735_v34 }
 0x202   : > { %1225 = vmatpush.bf16.msrb.mxu0 %v3736_v20  ;;  %1238 = vmatpush.bf16.msrb.mxu1 %v3737_v61  ;;  %v3748_v61 = vld [vmem:[#allocation26_spill] sm:$0xff] }
 0x203   : > { %1251 = vmatpush.bf16.msrb.mxu2 %v3738_v19  ;;  %1264 = vmatpush.bf16.msrb.mxu3 %v3739_v48  ;;  %v3749_v19 = vld [vmem:[#allocation27_spill] sm:$0xff]  ;;  %v3750_v48 = vld [vmem:[#allocation30_spill] sm:$0xff] }
 0x206   : > { %1226 = vmatpush.bf16.msrb.mxu0 %v3740_v6  ;;  %1239 = vmatpush.bf16.msrb.mxu1 %v3741_v38  ;;  %v3751_v6 = vld [vmem:[#allocation29_spill] sm:$0xff] }
 0x207   : > { %1252 = vmatpush.bf16.msrb.mxu2 %v3742_v41  ;;  %1265 = vmatpush.bf16.msrb.mxu3 %v3743_v42 }
 0x20a   : > { %1227 = vmatpush.bf16.msrb.mxu0 %v3744_v36  ;;  %1240 = vmatpush.bf16.msrb.mxu1 %v3745_v57 }
 0x20b   : > { %1253 = vmatpush.bf16.msrb.mxu2 %v3746_v58  ;;  %1266 = vmatpush.bf16.msrb.mxu3 %v3747_v1 }
 0x20e   : > { %1228 = vmatpush.bf16.msrb.mxu0 %v3748_v61  ;;  %1241 = vmatpush.bf16.msrb.mxu1 %v3749_v19 }
 0x20f   : > { %1254 = vmatpush.bf16.msrb.mxu2 %v3750_v48  ;;  %1267 = vmatpush.bf16.msrb.mxu3 %v3751_v6 }
 0x24d   : > { %v1016_v38 = vpop.f32.mrf.mxu0  ;;  %v1029_v41 = vpop.f32.mrf.mxu1 }
 0x254   : > { %v1042_v20 = vpop.f32.mrf.mxu2  ;;  %v1055_v42 = vpop.f32.mrf.mxu3 }
 0x255   : > { %v1018_v34 = vpop.f32.mrf.mxu0  ;;  %v1031_v36 = vpop.f32.mrf.mxu1 }
 0x25c   : > { %v1044_v5 = vpop.f32.mrf.mxu2  ;;  %v1057_v57 = vpop.f32.mrf.mxu3 }
 0x25d   : > { %v1068_v49 = vpop.f32.mrf.mxu0  ;;  %v1081_v58 = vpop.f32.mrf.mxu1 }
 0x25e   : > { %v1069_v62 = vadd.f32 %v1068_v49, %v1016_v38  ;;  %v1082_v1 = vadd.f32 %v1081_v58, %v1029_v41 }
 0x260   : > { %v1111_v61 = vadd.f32 %v1069_v62, %v3723_v10  ;;  %v1112_v19 = vadd.f32 %v1082_v1, %v3752_v44 }
 0x262   : > { %v2367_v33 = vmul.f32 -1.442695, %v1111_v61  ;;  %v2368_v48 = vmul.f32 -1.442695, %v1112_v19 }
 0x264   : > { %2514 = vpow2.f32 %v2367_v33  ;;  %v1094_v6 = vpop.f32.mrf.mxu2  ;;  %v1107_v56 = vpop.f32.mrf.mxu3 }
 0x265   : > { %2516 = vpow2.f32 %v2368_v48  ;;  %v1070_v13 = vpop.f32.mrf.mxu0  ;;  %v1083_v23 = vpop.f32.mrf.mxu1  ;;  %v1108_v58 = vadd.f32 %v1107_v56, %v1055_v42  ;;  %v1095_v1 = vadd.f32 %v1094_v6, %v1042_v20 }
 0x267   : > { %v1113_v56 = vadd.f32 %v1095_v1, %v3101_v54 }
 0x26a   : > { %v2515_v34 = vpop.eup %2514 }
 0x26b   : > { %v2517_v36 = vpop.eup %2516  ;;  %v1118_v5 = vadd.f32 1.0, %v2515_v34 }
 0x26c   : > { %v1137_v57 = vadd.f32 1.0, %v2517_v36  ;;  %v1109_v11 = vpop.f32.mrf.mxu3  ;;  %v1096_v31 = vpop.f32.mrf.mxu2 }
 0x26d   : > { %2518 = vrcp.f32 %v1118_v5  ;;  %v1130_v19 = vand.u32 2147483648, %v1118_v5  ;;  %v1128_v23 = vand.u32 2147483647, %v1118_v5  ;;  %vm1124_vm3 = vweird.f32 %v1118_v5 }
 0x26e   : > { %2520 = vrcp.f32 %v1137_v57  ;;  %v1114_v11 = vadd.f32 %v1108_v58, %v3099_v22  ;;  %vm1143_vm7 = vweird.f32 %v1137_v57 }
 0x26f   : > { %v1131_v31 = vor.u32 1.1754944e-38, %v1130_v19  ;;  %vm1129_vm5 = vcmp.eq.f32.partialorder %v1128_v23, 8.507059e+37  ;;  %v1163_v19 = vstv %s1162_s30 }
 0x270   : > { %vm1164_vm10 = vcmp.eq.s32.totalorder %v1163_v19, 1  ;;  %v3769_v19 = vld [vmem:[#allocation19_spill] sm:$0xff] }
 0x273   : > { %v2519_v49 = vpop.eup %2518 }
 0x274   : > { %v2521_v62 = vpop.eup %2520  ;;  %v1120_v38 = vmul.f32 %v2519_v49, %v1118_v5  ;;  %vm1125_vm2 = vweird.f32 %v2519_v49 }
 0x275   : > { %v1139_v41 = vmul.f32 %v2521_v62, %v1137_v57  ;;  %vm1126_vm4 = vmor %vm1124_vm3, %vm1125_vm2  ;;  %vm1144_vm6 = vweird.f32 %v2521_v62 }
 0x276   : > { %v1121_v61 = vsub.f32 1.0, %v1120_v38  ;;  %vm1145_vm8 = vmor %vm1143_vm7, %vm1144_vm6 }
 0x277   : > { %v1140_v33 = vsub.f32 1.0, %v1139_v41  ;;  %v1149_v41 = vand.u32 2147483648, %v1137_v57 }
 0x278   : > { %v1122_v48 = vmul.f32 %v2519_v49, %v1121_v61  ;;  %v1147_v61 = vand.u32 2147483647, %v1137_v57 }
 0x279   : > { %v1141_v13 = vmul.f32 %v2521_v62, %v1140_v33  ;;  %v1150_v5 = vor.u32 1.1754944e-38, %v1149_v41  ;;  %v3760_v41 = vld [vmem:[#allocation10_spill] sm:$0xff] }
 0x27a   : > { %v1123_v34 = vadd.f32 %v2519_v49, %v1122_v48  ;;  %vm1148_vm9 = vcmp.eq.f32.partialorder %v1147_v61, 8.507059e+37  ;;  %v3763_v61 = vld [vmem:[#allocation13_spill] sm:$0xff] }
 0x27b   : > { %v1142_v44 = vadd.f32 %v2521_v62, %v1141_v13 }
 0x27c   : > { %v1127_v36 = vsel %vm1126_vm4, %v2519_v49, %v1123_v34  ;;  %v3755_v34 = vld [vmem:[#allocation5_spill] sm:$0xff] }
 0x27d   : > { %v1132_v38 = vsel %vm1129_vm5, %v1131_v31, %v1127_v36  ;;  %v1146_v6 = vsel %vm1145_vm8, %v2521_v62, %v1142_v44  ;;  %v3753_v44 = vld [vmem:[#allocation4_spill] sm:$0xff]  ;;  %v3756_v31 = vld [vmem:[#allocation6_spill] sm:$0xff] }
 0x27e   : > { %v1153_v42 = vmul.f32 %v1132_v38, %v1114_v11  ;;  %v1151_v49 = vsel %vm1148_vm9, %v1150_v5, %v1146_v6  ;;  %v3754_v62 = vld [vmem:[#allocation8_spill] sm:$0xff]  ;;  %v3757_v11 = vld [vmem:[#allocation7_spill] sm:$0xff]  ;;  %v3759_v38 = vld [vmem:[#allocation9_spill] sm:$0xff] }
 0x27f   : > { %v1156_v33 = vsub.f32 1.0, %v1151_v49  ;;  %v1158_v23 = vmul.f32 %v1151_v49, %v3184_v29  ;;  %v3758_v36 = vld [vmem:[#allocation12_spill] sm:$0xff]  ;;  %v3765_v6 = vld [vmem:[#allocation15_spill] sm:$0xff]  ;;  %v3767_v49 = vld [vmem:[#allocation17_spill] sm:$0xff] }
 0x280   : > { %v1154_v20 = vadd.f32 %v1153_v42, %v1113_v56  ;;  %v3761_v56 = vld [vmem:[#allocation11_spill] sm:$0xff]  ;;  %v3762_v42 = vld [vmem:[#allocation16_spill] sm:$0xff] }
 0x281   : > { %v3766_v5 = vld [vmem:[#allocation20_spill] sm:$0xff] }
 0x282   : > { %2522 = vtanh.f32 %v1154_v20  ;;  %v3764_v20 = vld [vmem:[#allocation14_spill] sm:$0xff] }
 0x288   : > { %v2523_v58 = vpop.eup %2522 }
 0x289   : > { %v1157_v48 = vmul.f32 %v2523_v58, %v1156_v33  ;;  %v3768_v33 = vld [vmem:[#allocation18_spill] sm:$0xff]  ;;  %v3770_v58 = vld [vmem:[#allocation24_spill] sm:$0xff] }
 0x28b   : > { %v1159_v13 = vadd.f32 %v1158_v23, %v1157_v48  ;;  %v3771_v48 = vld [vmem:[#allocation21_spill] sm:$0xff]  ;;  %v3772_v23 = vld [vmem:[#allocation22_spill] sm:$0xff] }
 0x28d   : > { %v3260_v1 = vsel %vm1164_vm10, %v1159_v13, %v3184_v29  ;;  %v2369_v29 = vld [vmem:[%s2690_s10 + $0xc] sm:$0xf] }
 0x28e   : > { %v1168_v57 = vpack.c.bf16 %v3260_v1, %v3260_v1  ;;  %v3773_v13 = vld [vmem:[#allocation23_spill] sm:$0xff] }
 0x290   : > { %1177 = vmatmul.bf16.vlgmr.msra.gmra.mxu0 %v1168_v57  ;;  %1190 = vmatmul.bf16.vlgmr.msra.gmra.mxu1 %v1168_v57 }
 0x291   : > { %1203 = vmatmul.bf16.vlgmr.msra.gmra.mxu2 %v1168_v57  ;;  %1216 = vmatmul.bf16.vlgmr.msra.gmra.mxu3 %v1168_v57  ;;  %v3774_v57 = vld [vmem:[#allocation28_spill] sm:$0xff] }
 0x292   : > { %1331 = vmatpush.bf16.msra.mxu0 %v2706_v4  ;;  %1344 = vmatpush.bf16.msra.mxu1 %v2711_v8 }
 0x293   : > { %1357 = vmatpush.bf16.msra.mxu2 %v2734_v24  ;;  %1370 = vmatpush.bf16.msra.mxu3 %v2725_v17 }
 0x296   : > { %1332 = vmatpush.bf16.msra.mxu0 %v2717_v12  ;;  %1345 = vmatpush.bf16.msra.mxu1 %v2723_v16 }
 0x297   : > { %1358 = vmatpush.bf16.msra.mxu2 %v2749_v32  ;;  %1371 = vmatpush.bf16.msra.mxu3 %v2736_v25 }
 0x29a   : > { %1333 = vmatpush.bf16.msra.mxu0 %v2739_v26  ;;  %1346 = vmatpush.bf16.msra.mxu1 %v2745_v30 }
 0x29b   : > { %1359 = vmatpush.bf16.msra.mxu2 %v2772_v47  ;;  %1372 = vmatpush.bf16.msra.mxu3 %v2756_v37 }
 0x29e   : > { %1334 = vmatpush.bf16.msra.mxu0 %v2761_v40  ;;  %1347 = vmatpush.bf16.msra.mxu1 %v2766_v43 }
 0x29f   : > { %1360 = vmatpush.bf16.msra.mxu2 %v2792_v59  ;;  %1373 = vmatpush.bf16.msra.mxu3 %v2778_v51 }
 0x2a0   : > { %1229 = vmatmul.bf16.vlgmr.msrb.gmra.mxu0 %v2369_v29  ;;  %1242 = vmatmul.bf16.vlgmr.msrb.gmra.mxu1 %v2369_v29 }
 0x2a1   : > { %1255 = vmatmul.bf16.vlgmr.msrb.gmra.mxu2 %v2369_v29  ;;  %1268 = vmatmul.bf16.vlgmr.msrb.gmra.mxu3 %v2369_v29  ;;  %v3775_v29 = vld [vmem:[#allocation25_spill] sm:$0xff] }
 0x2a2   : > { %1335 = vmatpush.bf16.msra.mxu0 %v2781_v52  ;;  %1348 = vmatpush.bf16.msra.mxu1 %v2786_v55 }
 0x2a3   : > { %1361 = vmatpush.bf16.msra.mxu2 %v2812_v9  ;;  %1374 = vmatpush.bf16.msra.mxu3 %v2798_v63 }
 0x2a6   : > { %1336 = vmatpush.bf16.msra.mxu0 %v2801_v0  ;;  %1349 = vmatpush.bf16.msra.mxu1 %v2806_v3 }
 0x2a7   : > { %1362 = vmatpush.bf16.msra.mxu2 %v2833_v28  ;;  %1375 = vmatpush.bf16.msra.mxu3 %v2818_v14 }
 0x2aa   : > { %1337 = vmatpush.bf16.msra.mxu0 %v2821_v15  ;;  %1350 = vmatpush.bf16.msra.mxu1 %v2827_v21 }
 0x2ab   : > { %1363 = vmatpush.bf16.msra.mxu2 %v2861_v53  ;;  %1376 = vmatpush.bf16.msra.mxu3 %v2840_v35 }
 0x2ae   : > { %1338 = vmatpush.bf16.msra.mxu0 %v2845_v39  ;;  %1351 = vmatpush.bf16.msra.mxu1 %v2852_v45 }
 0x2af   : > { %1364 = vmatpush.bf16.msra.mxu2 %v2889_v18  ;;  %1377 = vmatpush.bf16.msra.mxu3 %v2868_v60 }
 0x2b2   : > { %1383 = vmatpush.bf16.msrb.mxu0 %v2855_v46  ;;  %1396 = vmatpush.bf16.msrb.mxu1 %v2859_v50 }
 0x2b3   : > { %1409 = vmatpush.bf16.msrb.mxu2 %v2896_v27  ;;  %1422 = vmatpush.bf16.msrb.mxu3 %v2875_v2 }
 0x2b6   : > { %1384 = vmatpush.bf16.msrb.mxu0 %v2881_v7  ;;  %1397 = vmatpush.bf16.msrb.mxu1 %v3753_v44 }
 0x2b7   : > { %1410 = vmatpush.bf16.msrb.mxu2 %v3754_v62  ;;  %1423 = vmatpush.bf16.msrb.mxu3 %v3755_v34 }
 0x2ba   : > { %1385 = vmatpush.bf16.msrb.mxu0 %v3756_v31  ;;  %1398 = vmatpush.bf16.msrb.mxu1 %v3757_v11 }
 0x2bb   : > { %1411 = vmatpush.bf16.msrb.mxu2 %v3758_v36  ;;  %1424 = vmatpush.bf16.msrb.mxu3 %v3759_v38  ;;  %v3780_v38 = vld [vmem:[#allocation32_spill] sm:$0xff] }
 0x2be   : > { %1386 = vmatpush.bf16.msrb.mxu0 %v3760_v41  ;;  %1399 = vmatpush.bf16.msrb.mxu1 %v3761_v56 }
 0x2bf   : > { %1412 = vmatpush.bf16.msrb.mxu2 %v3762_v42  ;;  %1425 = vmatpush.bf16.msrb.mxu3 %v3763_v61 }
 0x2c2   : > { %1387 = vmatpush.bf16.msrb.mxu0 %v3764_v20  ;;  %1400 = vmatpush.bf16.msrb.mxu1 %v3765_v6  ;;  %v3776_v6 = vld [vmem:[#allocation26_spill] sm:$0xff] }
 0x2c3   : > { %1413 = vmatpush.bf16.msrb.mxu2 %v3766_v5  ;;  %1426 = vmatpush.bf16.msrb.mxu3 %v3767_v49  ;;  %v3777_v5 = vld [vmem:[#allocation27_spill] sm:$0xff]  ;;  %v3778_v49 = vld [vmem:[#allocation30_spill] sm:$0xff] }
 0x2c6   : > { %1388 = vmatpush.bf16.msrb.mxu0 %v3768_v33  ;;  %1401 = vmatpush.bf16.msrb.mxu1 %v3769_v19  ;;  %v3779_v33 = vld [vmem:[#allocation29_spill] sm:$0xff] }
 0x2c7   : > { %1414 = vmatpush.bf16.msrb.mxu2 %v3770_v58  ;;  %1427 = vmatpush.bf16.msrb.mxu3 %v3771_v48 }
 0x2ca   : > { %1389 = vmatpush.bf16.msrb.mxu0 %v3772_v23  ;;  %1402 = vmatpush.bf16.msrb.mxu1 %v3773_v13 }
 0x2cb   : > { %1415 = vmatpush.bf16.msrb.mxu2 %v3774_v57  ;;  %1428 = vmatpush.bf16.msrb.mxu3 %v3775_v29 }
 0x2ce   : > { %1390 = vmatpush.bf16.msrb.mxu0 %v3776_v6  ;;  %1403 = vmatpush.bf16.msrb.mxu1 %v3777_v5 }
 0x2cf   : > { %1416 = vmatpush.bf16.msrb.mxu2 %v3778_v49  ;;  %1429 = vmatpush.bf16.msrb.mxu3 %v3779_v33 }
 0x30d   : > { %v1178_v19 = vpop.f32.mrf.mxu0  ;;  %v1191_v58 = vpop.f32.mrf.mxu1 }
 0x314   : > { %v1204_v20 = vpop.f32.mrf.mxu2  ;;  %v1217_v48 = vpop.f32.mrf.mxu3 }
 0x315   : > { %v1180_v61 = vpop.f32.mrf.mxu0  ;;  %v1193_v23 = vpop.f32.mrf.mxu1 }
 0x31c   : > { %v1206_v42 = vpop.f32.mrf.mxu2  ;;  %v1219_v13 = vpop.f32.mrf.mxu3 }
 0x31d   : > { %v1230_v56 = vpop.f32.mrf.mxu0  ;;  %v1243_v57 = vpop.f32.mrf.mxu1 }
 0x31e   : > { %v1231_v41 = vadd.f32 %v1230_v56, %v1178_v19  ;;  %v1244_v29 = vadd.f32 %v1243_v57, %v1191_v58 }
 0x320   : > { %v1273_v6 = vadd.f32 %v1231_v41, %v3723_v10  ;;  %v1274_v5 = vadd.f32 %v1244_v29, %v3780_v38 }
 0x322   : > { %v2370_v36 = vmul.f32 -1.442695, %v1273_v6  ;;  %v2371_v49 = vmul.f32 -1.442695, %v1274_v5 }
 0x324   : > { %2524 = vpow2.f32 %v2370_v36  ;;  %v1256_v33 = vpop.f32.mrf.mxu2  ;;  %v1269_v11 = vpop.f32.mrf.mxu3 }
 0x325   : > { %2526 = vpow2.f32 %v2371_v49  ;;  %v1232_v31 = vpop.f32.mrf.mxu0  ;;  %v1245_v34 = vpop.f32.mrf.mxu1  ;;  %v1270_v57 = vadd.f32 %v1269_v11, %v1217_v48  ;;  %v1257_v29 = vadd.f32 %v1256_v33, %v1204_v20 }
 0x327   : > { %v1275_v11 = vadd.f32 %v1257_v29, %v3101_v54 }
 0x32a   : > { %v2525_v61 = vpop.eup %2524 }
 0x32b   : > { %v2527_v23 = vpop.eup %2526  ;;  %v1280_v42 = vadd.f32 1.0, %v2525_v61 }
 0x32c   : > { %v1299_v13 = vadd.f32 1.0, %v2527_v23  ;;  %v1271_v62 = vpop.f32.mrf.mxu3  ;;  %v1258_v44 = vpop.f32.mrf.mxu2 }
 0x32d   : > { %2528 = vrcp.f32 %v1280_v42  ;;  %v1292_v5 = vand.u32 2147483648, %v1280_v42  ;;  %v1290_v34 = vand.u32 2147483647, %v1280_v42  ;;  %vm1286_vm12 = vweird.f32 %v1280_v42 }
 0x32e   : > { %2530 = vrcp.f32 %v1299_v13  ;;  %v1276_v62 = vadd.f32 %v1270_v57, %v3099_v22  ;;  %vm1305_vm0 = vweird.f32 %v1299_v13 }
 0x32f   : > { %v1293_v44 = vor.u32 1.1754944e-38, %v1292_v5  ;;  %vm1291_vm14 = vcmp.eq.f32.partialorder %v1290_v34, 8.507059e+37  ;;  %v1325_v5 = vstv %s1324_s6 }
 0x330   : > { %vm1326_vm3 = vcmp.eq.s32.totalorder %v1325_v5, 1  ;;  %v3797_v5 = vld [vmem:[#allocation19_spill] sm:$0xff] }
 0x333   : > { %v2529_v56 = vpop.eup %2528 }
 0x334   : > { %v2531_v41 = vpop.eup %2530  ;;  %v1282_v19 = vmul.f32 %v2529_v56, %v1280_v42  ;;  %vm1287_vm11 = vweird.f32 %v2529_v56 }
 0x335   : > { %v1301_v58 = vmul.f32 %v2531_v41, %v1299_v13  ;;  %vm1288_vm13 = vmor %vm1286_vm12, %vm1287_vm11  ;;  %vm1306_vm15 = vweird.f32 %v2531_v41 }
 0x336   : > { %v1283_v6 = vsub.f32 1.0, %v1282_v19  ;;  %vm1307_vm1 = vmor %vm1305_vm0, %vm1306_vm15 }
 0x337   : > { %v1302_v36 = vsub.f32 1.0, %v1301_v58  ;;  %v1311_v58 = vand.u32 2147483648, %v1299_v13 }
 0x338   : > { %v1284_v49 = vmul.f32 %v2529_v56, %v1283_v6  ;;  %v1309_v6 = vand.u32 2147483647, %v1299_v13 }
 0x339   : > { %v1303_v31 = vmul.f32 %v2531_v41, %v1302_v36  ;;  %v1312_v42 = vor.u32 1.1754944e-38, %v1311_v58  ;;  %v3788_v58 = vld [vmem:[#allocation10_spill] sm:$0xff] }
 0x33a   : > { %v1285_v61 = vadd.f32 %v2529_v56, %v1284_v49  ;;  %vm1310_vm2 = vcmp.eq.f32.partialorder %v1309_v6, 8.507059e+37  ;;  %v3791_v6 = vld [vmem:[#allocation13_spill] sm:$0xff] }
 0x33b   : > { %v1304_v38 = vadd.f32 %v2531_v41, %v1303_v31 }
 0x33c   : > { %v1289_v23 = vsel %vm1288_vm13, %v2529_v56, %v1285_v61  ;;  %v3783_v61 = vld [vmem:[#allocation5_spill] sm:$0xff] }
 0x33d   : > { %v1294_v19 = vsel %vm1291_vm14, %v1293_v44, %v1289_v23  ;;  %v1308_v33 = vsel %vm1307_vm1, %v2531_v41, %v1304_v38  ;;  %v3781_v38 = vld [vmem:[#allocation4_spill] sm:$0xff]  ;;  %v3784_v44 = vld [vmem:[#allocation6_spill] sm:$0xff] }
 0x33e   : > { %v1315_v48 = vmul.f32 %v1294_v19, %v1276_v62  ;;  %v1313_v56 = vsel %vm1310_vm2, %v1312_v42, %v1308_v33  ;;  %v3782_v41 = vld [vmem:[#allocation8_spill] sm:$0xff]  ;;  %v3785_v62 = vld [vmem:[#allocation7_spill] sm:$0xff]  ;;  %v3787_v19 = vld [vmem:[#allocation9_spill] sm:$0xff] }
 0x33f   : > { %v1318_v36 = vsub.f32 1.0, %v1313_v56  ;;  %v1320_v34 = vmul.f32 %v1313_v56, %v3260_v1  ;;  %v3786_v23 = vld [vmem:[#allocation12_spill] sm:$0xff]  ;;  %v3793_v33 = vld [vmem:[#allocation15_spill] sm:$0xff]  ;;  %v3795_v56 = vld [vmem:[#allocation17_spill] sm:$0xff] }
 0x340   : > { %v1316_v20 = vadd.f32 %v1315_v48, %v1275_v11  ;;  %v3789_v11 = vld [vmem:[#allocation11_spill] sm:$0xff]  ;;  %v3790_v48 = vld [vmem:[#allocation16_spill] sm:$0xff] }
 0x341   : > { %v3794_v42 = vld [vmem:[#allocation20_spill] sm:$0xff] }
 0x342   : > { %2532 = vtanh.f32 %v1316_v20  ;;  %v3792_v20 = vld [vmem:[#allocation14_spill] sm:$0xff] }
 0x348   : > { %v2533_v57 = vpop.eup %2532 }
 0x349   : > { %v1319_v49 = vmul.f32 %v2533_v57, %v1318_v36  ;;  %v3796_v36 = vld [vmem:[#allocation18_spill] sm:$0xff]  ;;  %v3798_v57 = vld [vmem:[#allocation24_spill] sm:$0xff] }
 0x34b   : > { %v1321_v31 = vadd.f32 %v1320_v34, %v1319_v49  ;;  %v3799_v49 = vld [vmem:[#allocation21_spill] sm:$0xff]  ;;  %v3800_v34 = vld [vmem:[#allocation22_spill] sm:$0xff] }
 0x34d   : > { %v3336_v29 = vsel %vm1326_vm3, %v1321_v31, %v3260_v1  ;;  %v2372_v1 = vld [vmem:[%s2690_s10 + $0x10] sm:$0xf]  ;;  %v3801_v31 = vld [vmem:[#allocation23_spill] sm:$0xff] }
 0x34e   : > { %v1330_v13 = vpack.c.bf16 %v3336_v29, %v3336_v29 }
 0x350   : > { %1339 = vmatmul.bf16.vlgmr.msra.gmra.mxu0 %v1330_v13  ;;  %1352 = vmatmul.bf16.vlgmr.msra.gmra.mxu1 %v1330_v13 }
 0x351   : > { %1365 = vmatmul.bf16.vlgmr.msra.gmra.mxu2 %v1330_v13  ;;  %1378 = vmatmul.bf16.vlgmr.msra.gmra.mxu3 %v1330_v13  ;;  %v3802_v13 = vld [vmem:[#allocation28_spill] sm:$0xff] }
 0x352   : > { %1493 = vmatpush.bf16.msra.mxu0 %v2706_v4  ;;  %1506 = vmatpush.bf16.msra.mxu1 %v2711_v8 }
 0x353   : > { %1519 = vmatpush.bf16.msra.mxu2 %v2734_v24  ;;  %1532 = vmatpush.bf16.msra.mxu3 %v2725_v17 }
 0x356   : > { %1494 = vmatpush.bf16.msra.mxu0 %v2717_v12  ;;  %1507 = vmatpush.bf16.msra.mxu1 %v2723_v16 }
 0x357   : > { %1520 = vmatpush.bf16.msra.mxu2 %v2749_v32  ;;  %1533 = vmatpush.bf16.msra.mxu3 %v2736_v25 }
 0x35a   : > { %1495 = vmatpush.bf16.msra.mxu0 %v2739_v26  ;;  %1508 = vmatpush.bf16.msra.mxu1 %v2745_v30 }
 0x35b   : > { %1521 = vmatpush.bf16.msra.mxu2 %v2772_v47  ;;  %1534 = vmatpush.bf16.msra.mxu3 %v2756_v37 }
 0x35e   : > { %1496 = vmatpush.bf16.msra.mxu0 %v2761_v40  ;;  %1509 = vmatpush.bf16.msra.mxu1 %v2766_v43 }
 0x35f   : > { %1522 = vmatpush.bf16.msra.mxu2 %v2792_v59  ;;  %1535 = vmatpush.bf16.msra.mxu3 %v2778_v51 }
 0x360   : > { %1391 = vmatmul.bf16.vlgmr.msrb.gmra.mxu0 %v2372_v1  ;;  %1404 = vmatmul.bf16.vlgmr.msrb.gmra.mxu1 %v2372_v1 }
 0x361   : > { %1417 = vmatmul.bf16.vlgmr.msrb.gmra.mxu2 %v2372_v1  ;;  %1430 = vmatmul.bf16.vlgmr.msrb.gmra.mxu3 %v2372_v1  ;;  %v3803_v1 = vld [vmem:[#allocation25_spill] sm:$0xff] }
 0x362   : > { %1497 = vmatpush.bf16.msra.mxu0 %v2781_v52  ;;  %1510 = vmatpush.bf16.msra.mxu1 %v2786_v55 }
 0x363   : > { %1523 = vmatpush.bf16.msra.mxu2 %v2812_v9  ;;  %1536 = vmatpush.bf16.msra.mxu3 %v2798_v63 }
 0x366   : > { %1498 = vmatpush.bf16.msra.mxu0 %v2801_v0  ;;  %1511 = vmatpush.bf16.msra.mxu1 %v2806_v3 }
 0x367   : > { %1524 = vmatpush.bf16.msra.mxu2 %v2833_v28  ;;  %1537 = vmatpush.bf16.msra.mxu3 %v2818_v14 }
 0x36a   : > { %1499 = vmatpush.bf16.msra.mxu0 %v2821_v15  ;;  %1512 = vmatpush.bf16.msra.mxu1 %v2827_v21 }
 0x36b   : > { %1525 = vmatpush.bf16.msra.mxu2 %v2861_v53  ;;  %1538 = vmatpush.bf16.msra.mxu3 %v2840_v35 }
 0x36e   : > { %1500 = vmatpush.bf16.msra.mxu0 %v2845_v39  ;;  %1513 = vmatpush.bf16.msra.mxu1 %v2852_v45 }
 0x36f   : > { %1526 = vmatpush.bf16.msra.mxu2 %v2889_v18  ;;  %1539 = vmatpush.bf16.msra.mxu3 %v2868_v60 }
 0x372   : > { %1545 = vmatpush.bf16.msrb.mxu0 %v2855_v46  ;;  %1558 = vmatpush.bf16.msrb.mxu1 %v2859_v50 }
 0x373   : > { %1571 = vmatpush.bf16.msrb.mxu2 %v2896_v27  ;;  %1584 = vmatpush.bf16.msrb.mxu3 %v2875_v2 }
 0x376   : > { %1546 = vmatpush.bf16.msrb.mxu0 %v2881_v7  ;;  %1559 = vmatpush.bf16.msrb.mxu1 %v3781_v38 }
 0x377   : > { %1572 = vmatpush.bf16.msrb.mxu2 %v3782_v41  ;;  %1585 = vmatpush.bf16.msrb.mxu3 %v3783_v61 }
 0x37a   : > { %1547 = vmatpush.bf16.msrb.mxu0 %v3784_v44  ;;  %1560 = vmatpush.bf16.msrb.mxu1 %v3785_v62 }
 0x37b   : > { %1573 = vmatpush.bf16.msrb.mxu2 %v3786_v23  ;;  %1586 = vmatpush.bf16.msrb.mxu3 %v3787_v19  ;;  %v3808_v19 = vld [vmem:[#allocation32_spill] sm:$0xff] }
 0x37e   : > { %1548 = vmatpush.bf16.msrb.mxu0 %v3788_v58  ;;  %1561 = vmatpush.bf16.msrb.mxu1 %v3789_v11 }
 0x37f   : > { %1574 = vmatpush.bf16.msrb.mxu2 %v3790_v48  ;;  %1587 = vmatpush.bf16.msrb.mxu3 %v3791_v6 }
 0x382   : > { %1549 = vmatpush.bf16.msrb.mxu0 %v3792_v20  ;;  %1562 = vmatpush.bf16.msrb.mxu1 %v3793_v33  ;;  %v3804_v33 = vld [vmem:[#allocation26_spill] sm:$0xff] }
 0x383   : > { %1575 = vmatpush.bf16.msrb.mxu2 %v3794_v42  ;;  %1588 = vmatpush.bf16.msrb.mxu3 %v3795_v56  ;;  %v3805_v42 = vld [vmem:[#allocation27_spill] sm:$0xff]  ;;  %v3806_v56 = vld [vmem:[#allocation30_spill] sm:$0xff] }
 0x386   : > { %1550 = vmatpush.bf16.msrb.mxu0 %v3796_v36  ;;  %1563 = vmatpush.bf16.msrb.mxu1 %v3797_v5  ;;  %v3807_v36 = vld [vmem:[#allocation29_spill] sm:$0xff] }
 0x387   : > { %1576 = vmatpush.bf16.msrb.mxu2 %v3798_v57  ;;  %1589 = vmatpush.bf16.msrb.mxu3 %v3799_v49 }
 0x38a   : > { %1551 = vmatpush.bf16.msrb.mxu0 %v3800_v34  ;;  %1564 = vmatpush.bf16.msrb.mxu1 %v3801_v31 }
 0x38b   : > { %1577 = vmatpush.bf16.msrb.mxu2 %v3802_v13  ;;  %1590 = vmatpush.bf16.msrb.mxu3 %v3803_v1 }
 0x38e   : > { %1552 = vmatpush.bf16.msrb.mxu0 %v3804_v33  ;;  %1565 = vmatpush.bf16.msrb.mxu1 %v3805_v42 }
 0x38f   : > { %1578 = vmatpush.bf16.msrb.mxu2 %v3806_v56  ;;  %1591 = vmatpush.bf16.msrb.mxu3 %v3807_v36 }
 0x3cd   : > { %v1340_v5 = vpop.f32.mrf.mxu0  ;;  %v1353_v57 = vpop.f32.mrf.mxu1 }
 0x3d4   : > { %v1366_v20 = vpop.f32.mrf.mxu2  ;;  %v1379_v49 = vpop.f32.mrf.mxu3 }
 0x3d5   : > { %v1342_v6 = vpop.f32.mrf.mxu0  ;;  %v1355_v34 = vpop.f32.mrf.mxu1 }
 0x3dc   : > { %v1368_v48 = vpop.f32.mrf.mxu2  ;;  %v1381_v31 = vpop.f32.mrf.mxu3 }
 0x3dd   : > { %v1392_v11 = vpop.f32.mrf.mxu0  ;;  %v1405_v13 = vpop.f32.mrf.mxu1 }
 0x3de   : > { %v1393_v58 = vadd.f32 %v1392_v11, %v1340_v5  ;;  %v1406_v1 = vadd.f32 %v1405_v13, %v1353_v57 }
 0x3e0   : > { %v1435_v33 = vadd.f32 %v1393_v58, %v3723_v10  ;;  %v1436_v42 = vadd.f32 %v1406_v1, %v3808_v19 }
 0x3e2   : > { %v2373_v23 = vmul.f32 -1.442695, %v1435_v33  ;;  %v2374_v56 = vmul.f32 -1.442695, %v1436_v42 }
 0x3e4   : > { %2534 = vpow2.f32 %v2373_v23  ;;  %v1418_v36 = vpop.f32.mrf.mxu2  ;;  %v1431_v62 = vpop.f32.mrf.mxu3 }
 0x3e5   : > { %2536 = vpow2.f32 %v2374_v56  ;;  %v1394_v44 = vpop.f32.mrf.mxu0  ;;  %v1407_v61 = vpop.f32.mrf.mxu1  ;;  %v1432_v13 = vadd.f32 %v1431_v62, %v1379_v49  ;;  %v1419_v1 = vadd.f32 %v1418_v36, %v1366_v20 }
 0x3e7   : > { %v1437_v62 = vadd.f32 %v1419_v1, %v3101_v54 }
 0x3ea   : > { %v2535_v6 = vpop.eup %2534 }
 0x3eb   : > { %v2537_v34 = vpop.eup %2536  ;;  %v1442_v48 = vadd.f32 1.0, %v2535_v6 }
 0x3ec   : > { %v1461_v31 = vadd.f32 1.0, %v2537_v34  ;;  %v1433_v41 = vpop.f32.mrf.mxu3  ;;  %v1420_v38 = vpop.f32.mrf.mxu2 }
 0x3ed   : > { %2538 = vrcp.f32 %v1442_v48  ;;  %v1454_v42 = vand.u32 2147483648, %v1442_v48  ;;  %v1452_v61 = vand.u32 2147483647, %v1442_v48  ;;  %vm1448_vm5 = vweird.f32 %v1442_v48 }
 0x3ee   : > { %2540 = vrcp.f32 %v1461_v31  ;;  %v1438_v41 = vadd.f32 %v1432_v13, %v3099_v22  ;;  %vm1467_vm9 = vweird.f32 %v1461_v31 }
 0x3ef   : > { %v1455_v38 = vor.u32 1.1754944e-38, %v1454_v42  ;;  %vm1453_vm7 = vcmp.eq.f32.partialorder %v1452_v61, 8.507059e+37  ;;  %v1487_v42 = vstv %s1486_s8 }
 0x3f0   : > { %vm1488_vm12 = vcmp.eq.s32.totalorder %v1487_v42, 1  ;;  %v3825_v42 = vld [vmem:[#allocation19_spill] sm:$0xff] }
 0x3f3   : > { %v2539_v11 = vpop.eup %2538 }
 0x3f4   : > { %v2541_v58 = vpop.eup %2540  ;;  %v1444_v5 = vmul.f32 %v2539_v11, %v1442_v48  ;;  %vm1449_vm4 = vweird.f32 %v2539_v11 }
 0x3f5   : > { %v1463_v57 = vmul.f32 %v2541_v58, %v1461_v31  ;;  %vm1450_vm6 = vmor %vm1448_vm5, %vm1449_vm4  ;;  %vm1468_vm8 = vweird.f32 %v2541_v58 }
 0x3f6   : > { %v1445_v33 = vsub.f32 1.0, %v1444_v5  ;;  %vm1469_vm10 = vmor %vm1467_vm9, %vm1468_vm8 }
 0x3f7   : > { %v1464_v23 = vsub.f32 1.0, %v1463_v57  ;;  %v1473_v57 = vand.u32 2147483648, %v1461_v31 }
 0x3f8   : > { %v1446_v56 = vmul.f32 %v2539_v11, %v1445_v33  ;;  %v1471_v33 = vand.u32 2147483647, %v1461_v31 }
 0x3f9   : > { %v1465_v44 = vmul.f32 %v2541_v58, %v1464_v23  ;;  %v1474_v48 = vor.u32 1.1754944e-38, %v1473_v57  ;;  %v3816_v57 = vld [vmem:[#allocation10_spill] sm:$0xff] }
 0x3fa   : > { %v1447_v6 = vadd.f32 %v2539_v11, %v1446_v56  ;;  %vm1472_vm11 = vcmp.eq.f32.partialorder %v1471_v33, 8.507059e+37  ;;  %v3819_v33 = vld [vmem:[#allocation13_spill] sm:$0xff] }
 0x3fb   : > { %v1466_v19 = vadd.f32 %v2541_v58, %v1465_v44 }
 0x3fc   : > { %v1451_v34 = vsel %vm1450_vm6, %v2539_v11, %v1447_v6  ;;  %v3811_v6 = vld [vmem:[#allocation5_spill] sm:$0xff] }
 0x3fd   : > { %v1456_v5 = vsel %vm1453_vm7, %v1455_v38, %v1451_v34  ;;  %v1470_v36 = vsel %vm1469_vm10, %v2541_v58, %v1466_v19  ;;  %v3809_v19 = vld [vmem:[#allocation4_spill] sm:$0xff]  ;;  %v3812_v38 = vld [vmem:[#allocation6_spill] sm:$0xff] }
 0x3fe   : > { %v1477_v49 = vmul.f32 %v1456_v5, %v1438_v41  ;;  %v1475_v11 = vsel %vm1472_vm11, %v1474_v48, %v1470_v36  ;;  %v3810_v58 = vld [vmem:[#allocation8_spill] sm:$0xff]  ;;  %v3813_v41 = vld [vmem:[#allocation7_spill] sm:$0xff]  ;;  %v3815_v5 = vld [vmem:[#allocation9_spill] sm:$0xff] }
 0x3ff   : > { %v1480_v23 = vsub.f32 1.0, %v1475_v11  ;;  %v1482_v61 = vmul.f32 %v1475_v11, %v3336_v29  ;;  %v3814_v34 = vld [vmem:[#allocation12_spill] sm:$0xff]  ;;  %v3821_v36 = vld [vmem:[#allocation15_spill] sm:$0xff]  ;;  %v3823_v11 = vld [vmem:[#allocation17_spill] sm:$0xff] }
 0x400   : > { %v1478_v20 = vadd.f32 %v1477_v49, %v1437_v62  ;;  %v3817_v62 = vld [vmem:[#allocation11_spill] sm:$0xff]  ;;  %v3818_v49 = vld [vmem:[#allocation16_spill] sm:$0xff] }
 0x401   : > { %v3822_v48 = vld [vmem:[#allocation20_spill] sm:$0xff] }
 0x402   : > { %2542 = vtanh.f32 %v1478_v20  ;;  %v3820_v20 = vld [vmem:[#allocation14_spill] sm:$0xff] }
 0x408   : > { %v2543_v13 = vpop.eup %2542 }
 0x409   : > { %v1481_v56 = vmul.f32 %v2543_v13, %v1480_v23  ;;  %v3824_v23 = vld [vmem:[#allocation18_spill] sm:$0xff]  ;;  %v3826_v13 = vld [vmem:[#allocation24_spill] sm:$0xff] }
 0x40b   : > { %v1483_v44 = vadd.f32 %v1482_v61, %v1481_v56  ;;  %v3827_v56 = vld [vmem:[#allocation21_spill] sm:$0xff]  ;;  %v3828_v61 = vld [vmem:[#allocation22_spill] sm:$0xff] }
 0x40d   : > { %v3412_v1 = vsel %vm1488_vm12, %v1483_v44, %v3336_v29  ;;  %v2375_v29 = vld [vmem:[%s2690_s10 + $0x14] sm:$0xf]  ;;  %v3829_v44 = vld [vmem:[#allocation23_spill] sm:$0xff] }
 0x40e   : > { %v1492_v31 = vpack.c.bf16 %v3412_v1, %v3412_v1 }
 0x410   : > { %1501 = vmatmul.bf16.vlgmr.msra.gmra.mxu0 %v1492_v31  ;;  %1514 = vmatmul.bf16.vlgmr.msra.gmra.mxu1 %v1492_v31 }
 0x411   : > { %1527 = vmatmul.bf16.vlgmr.msra.gmra.mxu2 %v1492_v31  ;;  %1540 = vmatmul.bf16.vlgmr.msra.gmra.mxu3 %v1492_v31  ;;  %v3830_v31 = vld [vmem:[#allocation28_spill] sm:$0xff] }
 0x412   : > { %1655 = vmatpush.bf16.msra.mxu0 %v2706_v4  ;;  %1668 = vmatpush.bf16.msra.mxu1 %v2711_v8 }
 0x413   : > { %1681 = vmatpush.bf16.msra.mxu2 %v2734_v24  ;;  %1694 = vmatpush.bf16.msra.mxu3 %v2725_v17 }
 0x416   : > { %1656 = vmatpush.bf16.msra.mxu0 %v2717_v12  ;;  %1669 = vmatpush.bf16.msra.mxu1 %v2723_v16 }
 0x417   : > { %1682 = vmatpush.bf16.msra.mxu2 %v2749_v32  ;;  %1695 = vmatpush.bf16.msra.mxu3 %v2736_v25 }
 0x41a   : > { %1657 = vmatpush.bf16.msra.mxu0 %v2739_v26  ;;  %1670 = vmatpush.bf16.msra.mxu1 %v2745_v30 }
 0x41b   : > { %1683 = vmatpush.bf16.msra.mxu2 %v2772_v47  ;;  %1696 = vmatpush.bf16.msra.mxu3 %v2756_v37 }
 0x41e   : > { %1658 = vmatpush.bf16.msra.mxu0 %v2761_v40  ;;  %1671 = vmatpush.bf16.msra.mxu1 %v2766_v43 }
 0x41f   : > { %1684 = vmatpush.bf16.msra.mxu2 %v2792_v59  ;;  %1697 = vmatpush.bf16.msra.mxu3 %v2778_v51 }
 0x420   : > { %1553 = vmatmul.bf16.vlgmr.msrb.gmra.mxu0 %v2375_v29  ;;  %1566 = vmatmul.bf16.vlgmr.msrb.gmra.mxu1 %v2375_v29 }
 0x421   : > { %1579 = vmatmul.bf16.vlgmr.msrb.gmra.mxu2 %v2375_v29  ;;  %1592 = vmatmul.bf16.vlgmr.msrb.gmra.mxu3 %v2375_v29  ;;  %v3831_v29 = vld [vmem:[#allocation25_spill] sm:$0xff] }
 0x422   : > { %1659 = vmatpush.bf16.msra.mxu0 %v2781_v52  ;;  %1672 = vmatpush.bf16.msra.mxu1 %v2786_v55 }
 0x423   : > { %1685 = vmatpush.bf16.msra.mxu2 %v2812_v9  ;;  %1698 = vmatpush.bf16.msra.mxu3 %v2798_v63 }
 0x426   : > { %1660 = vmatpush.bf16.msra.mxu0 %v2801_v0  ;;  %1673 = vmatpush.bf16.msra.mxu1 %v2806_v3 }
 0x427   : > { %1686 = vmatpush.bf16.msra.mxu2 %v2833_v28  ;;  %1699 = vmatpush.bf16.msra.mxu3 %v2818_v14 }
 0x42a   : > { %1661 = vmatpush.bf16.msra.mxu0 %v2821_v15  ;;  %1674 = vmatpush.bf16.msra.mxu1 %v2827_v21 }
 0x42b   : > { %1687 = vmatpush.bf16.msra.mxu2 %v2861_v53  ;;  %1700 = vmatpush.bf16.msra.mxu3 %v2840_v35 }
 0x42e   : > { %1662 = vmatpush.bf16.msra.mxu0 %v2845_v39  ;;  %1675 = vmatpush.bf16.msra.mxu1 %v2852_v45 }
 0x42f   : > { %1688 = vmatpush.bf16.msra.mxu2 %v2889_v18  ;;  %1701 = vmatpush.bf16.msra.mxu3 %v2868_v60 }
 0x432   : > { %1707 = vmatpush.bf16.msrb.mxu0 %v2855_v46  ;;  %1720 = vmatpush.bf16.msrb.mxu1 %v2859_v50 }
 0x433   : > { %1733 = vmatpush.bf16.msrb.mxu2 %v2896_v27  ;;  %1746 = vmatpush.bf16.msrb.mxu3 %v2875_v2 }
 0x436   : > { %1708 = vmatpush.bf16.msrb.mxu0 %v2881_v7  ;;  %1721 = vmatpush.bf16.msrb.mxu1 %v3809_v19 }
 0x437   : > { %1734 = vmatpush.bf16.msrb.mxu2 %v3810_v58  ;;  %1747 = vmatpush.bf16.msrb.mxu3 %v3811_v6 }
 0x43a   : > { %1709 = vmatpush.bf16.msrb.mxu0 %v3812_v38  ;;  %1722 = vmatpush.bf16.msrb.mxu1 %v3813_v41 }
 0x43b   : > { %1735 = vmatpush.bf16.msrb.mxu2 %v3814_v34  ;;  %1748 = vmatpush.bf16.msrb.mxu3 %v3815_v5  ;;  %v3836_v5 = vld [vmem:[#allocation32_spill] sm:$0xff] }
 0x43e   : > { %1710 = vmatpush.bf16.msrb.mxu0 %v3816_v57  ;;  %1723 = vmatpush.bf16.msrb.mxu1 %v3817_v62 }
 0x43f   : > { %1736 = vmatpush.bf16.msrb.mxu2 %v3818_v49  ;;  %1749 = vmatpush.bf16.msrb.mxu3 %v3819_v33 }
 0x442   : > { %1711 = vmatpush.bf16.msrb.mxu0 %v3820_v20  ;;  %1724 = vmatpush.bf16.msrb.mxu1 %v3821_v36  ;;  %v3832_v36 = vld [vmem:[#allocation26_spill] sm:$0xff] }
 0x443   : > { %1737 = vmatpush.bf16.msrb.mxu2 %v3822_v48  ;;  %1750 = vmatpush.bf16.msrb.mxu3 %v3823_v11  ;;  %v3833_v48 = vld [vmem:[#allocation27_spill] sm:$0xff]  ;;  %v3834_v11 = vld [vmem:[#allocation30_spill] sm:$0xff] }
 0x446   : > { %1712 = vmatpush.bf16.msrb.mxu0 %v3824_v23  ;;  %1725 = vmatpush.bf16.msrb.mxu1 %v3825_v42  ;;  %v3835_v23 = vld [vmem:[#allocation29_spill] sm:$0xff] }
 0x447   : > { %1738 = vmatpush.bf16.msrb.mxu2 %v3826_v13  ;;  %1751 = vmatpush.bf16.msrb.mxu3 %v3827_v56 }
 0x44a   : > { %1713 = vmatpush.bf16.msrb.mxu0 %v3828_v61  ;;  %1726 = vmatpush.bf16.msrb.mxu1 %v3829_v44 }
 0x44b   : > { %1739 = vmatpush.bf16.msrb.mxu2 %v3830_v31  ;;  %1752 = vmatpush.bf16.msrb.mxu3 %v3831_v29 }
 0x44e   : > { %1714 = vmatpush.bf16.msrb.mxu0 %v3832_v36  ;;  %1727 = vmatpush.bf16.msrb.mxu1 %v3833_v48 }
 0x44f   : > { %1740 = vmatpush.bf16.msrb.mxu2 %v3834_v11  ;;  %1753 = vmatpush.bf16.msrb.mxu3 %v3835_v23 }
 0x48d   : > { %v1502_v42 = vpop.f32.mrf.mxu0  ;;  %v1515_v13 = vpop.f32.mrf.mxu1 }
 0x494   : > { %v1528_v20 = vpop.f32.mrf.mxu2  ;;  %v1541_v56 = vpop.f32.mrf.mxu3 }
 0x495   : > { %v1504_v33 = vpop.f32.mrf.mxu0  ;;  %v1517_v61 = vpop.f32.mrf.mxu1 }
 0x49c   : > { %v1530_v49 = vpop.f32.mrf.mxu2  ;;  %v1543_v44 = vpop.f32.mrf.mxu3 }
 0x49d   : > { %v1554_v62 = vpop.f32.mrf.mxu0  ;;  %v1567_v31 = vpop.f32.mrf.mxu1 }
 0x49e   : > { %v1555_v57 = vadd.f32 %v1554_v62, %v1502_v42  ;;  %v1568_v29 = vadd.f32 %v1567_v31, %v1515_v13 }
 0x4a0   : > { %v1597_v36 = vadd.f32 %v1555_v57, %v3723_v10  ;;  %v1598_v48 = vadd.f32 %v1568_v29, %v3836_v5 }
 0x4a2   : > { %v2376_v34 = vmul.f32 -1.442695, %v1597_v36  ;;  %v2377_v11 = vmul.f32 -1.442695, %v1598_v48 }
 0x4a4   : > { %2544 = vpow2.f32 %v2376_v34  ;;  %v1580_v23 = vpop.f32.mrf.mxu2  ;;  %v1593_v41 = vpop.f32.mrf.mxu3 }
 0x4a5   : > { %2546 = vpow2.f32 %v2377_v11  ;;  %v1556_v38 = vpop.f32.mrf.mxu0  ;;  %v1569_v6 = vpop.f32.mrf.mxu1  ;;  %v1594_v31 = vadd.f32 %v1593_v41, %v1541_v56  ;;  %v1581_v29 = vadd.f32 %v1580_v23, %v1528_v20 }
 0x4a7   : > { %v1599_v41 = vadd.f32 %v1581_v29, %v3101_v54 }
 0x4aa   : > { %v2545_v33 = vpop.eup %2544 }
 0x4ab   : > { %v2547_v61 = vpop.eup %2546  ;;  %v1604_v49 = vadd.f32 1.0, %v2545_v33 }
 0x4ac   : > { %v1623_v44 = vadd.f32 1.0, %v2547_v61  ;;  %v1595_v58 = vpop.f32.mrf.mxu3  ;;  %v1582_v19 = vpop.f32.mrf.mxu2 }
 0x4ad   : > { %2548 = vrcp.f32 %v1604_v49  ;;  %v1616_v48 = vand.u32 2147483648, %v1604_v49  ;;  %v1614_v6 = vand.u32 2147483647, %v1604_v49  ;;  %vm1610_vm14 = vweird.f32 %v1604_v49 }
 0x4ae   : > { %2550 = vrcp.f32 %v1623_v44  ;;  %v1600_v58 = vadd.f32 %v1594_v31, %v3099_v22  ;;  %vm1629_vm2 = vweird.f32 %v1623_v44 }
 0x4af   : > { %v1617_v19 = vor.u32 1.1754944e-38, %v1616_v48  ;;  %vm1615_vm0 = vcmp.eq.f32.partialorder %v1614_v6, 8.507059e+37  ;;  %v1649_v48 = vstv %s1648_s11 }
 0x4b0   : > { %vm1650_vm5 = vcmp.eq.s32.totalorder %v1649_v48, 1 }
 0x4b3   : > { %v2549_v62 = vpop.eup %2548 }
 0x4b4   : > { %v2551_v57 = vpop.eup %2550  ;;  %v1606_v42 = vmul.f32 %v2549_v62, %v1604_v49  ;;  %vm1611_vm13 = vweird.f32 %v2549_v62 }
 0x4b5   : > { %v1625_v13 = vmul.f32 %v2551_v57, %v1623_v44  ;;  %vm1612_vm15 = vmor %vm1610_vm14, %vm1611_vm13  ;;  %vm1630_vm1 = vweird.f32 %v2551_v57 }
 0x4b6   : > { %v1607_v36 = vsub.f32 1.0, %v1606_v42  ;;  %vm1631_vm3 = vmor %vm1629_vm2, %vm1630_vm1 }
 0x4b7   : > { %v1626_v34 = vsub.f32 1.0, %v1625_v13  ;;  %v1635_v13 = vand.u32 2147483648, %v1623_v44 }
 0x4b8   : > { %v1608_v11 = vmul.f32 %v2549_v62, %v1607_v36  ;;  %v1633_v36 = vand.u32 2147483647, %v1623_v44 }
 0x4b9   : > { %v1627_v38 = vmul.f32 %v2551_v57, %v1626_v34  ;;  %v1636_v49 = vor.u32 1.1754944e-38, %v1635_v13 }
 0x4ba   : > { %v1609_v33 = vadd.f32 %v2549_v62, %v1608_v11  ;;  %vm1634_vm4 = vcmp.eq.f32.partialorder %v1633_v36, 8.507059e+37 }
 0x4bb   : > { %v1628_v5 = vadd.f32 %v2551_v57, %v1627_v38 }
 0x4bc   : > { %v1613_v61 = vsel %vm1612_vm15, %v2549_v62, %v1609_v33 }
 0x4bd   : > { %v1618_v42 = vsel %vm1615_vm0, %v1617_v19, %v1613_v61  ;;  %v1632_v23 = vsel %vm1631_vm3, %v2551_v57, %v1628_v5  ;;  %v3864_v19 = vld [vmem:[#allocation32_spill] sm:$0xff] }
 0x4be   : > { %v1639_v56 = vmul.f32 %v1618_v42, %v1600_v58  ;;  %v1637_v62 = vsel %vm1634_vm4, %v1636_v49, %v1632_v23 }
 0x4bf   : > { %v1642_v34 = vsub.f32 1.0, %v1637_v62  ;;  %v1644_v6 = vmul.f32 %v1637_v62, %v3412_v1 }
 0x4c0   : > { %v1640_v20 = vadd.f32 %v1639_v56, %v1599_v41 }
 0x4c2   : > { %2552 = vtanh.f32 %v1640_v20 }
 0x4c8   : > { %v2553_v31 = vpop.eup %2552 }
 0x4c9   : > { %v1643_v11 = vmul.f32 %v2553_v31, %v1642_v34 }
 0x4cb   : > { %v1645_v38 = vadd.f32 %v1644_v6, %v1643_v11 }
 0x4cd   : > { %v3488_v29 = vsel %vm1650_vm5, %v1645_v38, %v3412_v1 }
 0x4ce   : > { %v1654_v44 = vpack.c.bf16 %v3488_v29, %v3488_v29 }
 0x4d0   : > { %1663 = vmatmul.bf16.vlgmr.msra.gmra.mxu0 %v1654_v44  ;;  %1676 = vmatmul.bf16.vlgmr.msra.gmra.mxu1 %v1654_v44 }
 0x4d1   : > { %1689 = vmatmul.bf16.vlgmr.msra.gmra.mxu2 %v1654_v44  ;;  %1702 = vmatmul.bf16.vlgmr.msra.gmra.mxu3 %v1654_v44 }
 0x4d2   : > { %1817 = vmatpush.bf16.msra.mxu0 %v2706_v4  ;;  %1830 = vmatpush.bf16.msra.mxu1 %v2711_v8  ;;  %v2378_v4 = vld [vmem:[%s2690_s10 + $0x18] sm:$0xf]  ;;  %v3837_v8 = vld [vmem:[#allocation4_spill] sm:$0xff] }
 0x4d3   : > { %1843 = vmatpush.bf16.msra.mxu2 %v2734_v24  ;;  %1856 = vmatpush.bf16.msra.mxu3 %v2725_v17  ;;  %v3840_v17 = vld [vmem:[#allocation6_spill] sm:$0xff]  ;;  %v3841_v24 = vld [vmem:[#allocation7_spill] sm:$0xff] }
 0x4d6   : > { %1818 = vmatpush.bf16.msra.mxu0 %v2717_v12  ;;  %1831 = vmatpush.bf16.msra.mxu1 %v2723_v16  ;;  %v3838_v12 = vld [vmem:[#allocation8_spill] sm:$0xff]  ;;  %v3839_v16 = vld [vmem:[#allocation5_spill] sm:$0xff] }
 0x4d7   : > { %1844 = vmatpush.bf16.msra.mxu2 %v2749_v32  ;;  %1857 = vmatpush.bf16.msra.mxu3 %v2736_v25  ;;  %v3842_v25 = vld [vmem:[#allocation12_spill] sm:$0xff]  ;;  %v3845_v32 = vld [vmem:[#allocation11_spill] sm:$0xff] }
 0x4da   : > { %1819 = vmatpush.bf16.msra.mxu0 %v2739_v26  ;;  %1832 = vmatpush.bf16.msra.mxu1 %v2745_v30  ;;  %v3843_v26 = vld [vmem:[#allocation9_spill] sm:$0xff]  ;;  %v3844_v30 = vld [vmem:[#allocation10_spill] sm:$0xff] }
 0x4db   : > { %1845 = vmatpush.bf16.msra.mxu2 %v2772_v47  ;;  %1858 = vmatpush.bf16.msra.mxu3 %v2756_v37  ;;  %v3846_v37 = vld [vmem:[#allocation16_spill] sm:$0xff]  ;;  %v3849_v47 = vld [vmem:[#allocation15_spill] sm:$0xff] }
 0x4de   : > { %1820 = vmatpush.bf16.msra.mxu0 %v2761_v40  ;;  %1833 = vmatpush.bf16.msra.mxu1 %v2766_v43  ;;  %v3847_v40 = vld [vmem:[#allocation13_spill] sm:$0xff]  ;;  %v3848_v43 = vld [vmem:[#allocation14_spill] sm:$0xff] }
 0x4df   : > { %1846 = vmatpush.bf16.msra.mxu2 %v2792_v59  ;;  %1859 = vmatpush.bf16.msra.mxu3 %v2778_v51  ;;  %v3850_v51 = vld [vmem:[#allocation20_spill] sm:$0xff]  ;;  %v3853_v59 = vld [vmem:[#allocation19_spill] sm:$0xff] }
 0x4e0   : > { %1715 = vmatmul.bf16.vlgmr.msrb.gmra.mxu0 %v2378_v4  ;;  %1728 = vmatmul.bf16.vlgmr.msrb.gmra.mxu1 %v2378_v4 }
 0x4e1   : > { %1741 = vmatmul.bf16.vlgmr.msrb.gmra.mxu2 %v2378_v4  ;;  %1754 = vmatmul.bf16.vlgmr.msrb.gmra.mxu3 %v2378_v4 }
 0x4e2   : > { %1821 = vmatpush.bf16.msra.mxu0 %v2781_v52  ;;  %1834 = vmatpush.bf16.msra.mxu1 %v2786_v55  ;;  %v3851_v52 = vld [vmem:[#allocation17_spill] sm:$0xff]  ;;  %v3852_v55 = vld [vmem:[#allocation18_spill] sm:$0xff] }
 0x4e3   : > { %1847 = vmatpush.bf16.msra.mxu2 %v2812_v9  ;;  %1860 = vmatpush.bf16.msra.mxu3 %v2798_v63  ;;  %v3854_v63 = vld [vmem:[#allocation24_spill] sm:$0xff]  ;;  %v3857_v9 = vld [vmem:[#allocation23_spill] sm:$0xff] }
 0x4e6   : > { %1822 = vmatpush.bf16.msra.mxu0 %v2801_v0  ;;  %1835 = vmatpush.bf16.msra.mxu1 %v2806_v3  ;;  %v3855_v0 = vld [vmem:[#allocation21_spill] sm:$0xff]  ;;  %v3856_v3 = vld [vmem:[#allocation22_spill] sm:$0xff] }
 0x4e7   : > { %1848 = vmatpush.bf16.msra.mxu2 %v2833_v28  ;;  %1861 = vmatpush.bf16.msra.mxu3 %v2818_v14  ;;  %v3858_v14 = vld [vmem:[#allocation28_spill] sm:$0xff]  ;;  %v3861_v28 = vld [vmem:[#allocation27_spill] sm:$0xff] }
 0x4ea   : > { %1823 = vmatpush.bf16.msra.mxu0 %v2821_v15  ;;  %1836 = vmatpush.bf16.msra.mxu1 %v2827_v21  ;;  %v3859_v15 = vld [vmem:[#allocation25_spill] sm:$0xff]  ;;  %v3860_v21 = vld [vmem:[#allocation26_spill] sm:$0xff] }
 0x4eb   : > { %1849 = vmatpush.bf16.msra.mxu2 %v2861_v53  ;;  %1862 = vmatpush.bf16.msra.mxu3 %v2840_v35  ;;  %v3862_v35 = vld [vmem:[#allocation30_spill] sm:$0xff] }
 0x4ee   : > { %1824 = vmatpush.bf16.msra.mxu0 %v2845_v39  ;;  %1837 = vmatpush.bf16.msra.mxu1 %v2852_v45  ;;  %v3863_v39 = vld [vmem:[#allocation29_spill] sm:$0xff] }
 0x4ef   : > { %1850 = vmatpush.bf16.msra.mxu2 %v2889_v18  ;;  %1863 = vmatpush.bf16.msra.mxu3 %v2868_v60 }
 0x4f2   : > { %1869 = vmatpush.bf16.msrb.mxu0 %v2855_v46  ;;  %1882 = vmatpush.bf16.msrb.mxu1 %v2859_v50 }
 0x4f3   : > { %1895 = vmatpush.bf16.msrb.mxu2 %v2896_v27  ;;  %1908 = vmatpush.bf16.msrb.mxu3 %v2875_v2 }
 0x4f6   : > { %1870 = vmatpush.bf16.msrb.mxu0 %v2881_v7  ;;  %1883 = vmatpush.bf16.msrb.mxu1 %v3837_v8 }
 0x4f7   : > { %1896 = vmatpush.bf16.msrb.mxu2 %v3838_v12  ;;  %1909 = vmatpush.bf16.msrb.mxu3 %v3839_v16 }
 0x4fa   : > { %1871 = vmatpush.bf16.msrb.mxu0 %v3840_v17  ;;  %1884 = vmatpush.bf16.msrb.mxu1 %v3841_v24 }
 0x4fb   : > { %1897 = vmatpush.bf16.msrb.mxu2 %v3842_v25  ;;  %1910 = vmatpush.bf16.msrb.mxu3 %v3843_v26 }
 0x4fe   : > { %1872 = vmatpush.bf16.msrb.mxu0 %v3844_v30  ;;  %1885 = vmatpush.bf16.msrb.mxu1 %v3845_v32 }
 0x4ff   : > { %1898 = vmatpush.bf16.msrb.mxu2 %v3846_v37  ;;  %1911 = vmatpush.bf16.msrb.mxu3 %v3847_v40 }
 0x502   : > { %1873 = vmatpush.bf16.msrb.mxu0 %v3848_v43  ;;  %1886 = vmatpush.bf16.msrb.mxu1 %v3849_v47 }
 0x503   : > { %1899 = vmatpush.bf16.msrb.mxu2 %v3850_v51  ;;  %1912 = vmatpush.bf16.msrb.mxu3 %v3851_v52 }
 0x506   : > { %1874 = vmatpush.bf16.msrb.mxu0 %v3852_v55  ;;  %1887 = vmatpush.bf16.msrb.mxu1 %v3853_v59 }
 0x507   : > { %1900 = vmatpush.bf16.msrb.mxu2 %v3854_v63  ;;  %1913 = vmatpush.bf16.msrb.mxu3 %v3855_v0 }
 0x50a   : > { %1875 = vmatpush.bf16.msrb.mxu0 %v3856_v3  ;;  %1888 = vmatpush.bf16.msrb.mxu1 %v3857_v9 }
 0x50b   : > { %1901 = vmatpush.bf16.msrb.mxu2 %v3858_v14  ;;  %1914 = vmatpush.bf16.msrb.mxu3 %v3859_v15  ;;  %v1811_v14 = vstv %s1810_s13 }
 0x50c   : > { %vm1812_vm14 = vcmp.eq.s32.totalorder %v1811_v14, 1 }
 0x50e   : > { %1876 = vmatpush.bf16.msrb.mxu0 %v3860_v21  ;;  %1889 = vmatpush.bf16.msrb.mxu1 %v3861_v28 }
 0x50f   : > { %1902 = vmatpush.bf16.msrb.mxu2 %v3862_v35  ;;  %1915 = vmatpush.bf16.msrb.mxu3 %v3863_v39 }
 0x54d   : > { %v1664_v45 = vpop.f32.mrf.mxu0  ;;  %v1677_v46 = vpop.f32.mrf.mxu1 }
 0x554   : > { %v1690_v50 = vpop.f32.mrf.mxu2  ;;  %v1703_v53 = vpop.f32.mrf.mxu3 }
 0x555   : > { %v1666_v60 = vpop.f32.mrf.mxu0  ;;  %v1679_v2 = vpop.f32.mrf.mxu1 }
 0x55c   : > { %v1692_v7 = vpop.f32.mrf.mxu2  ;;  %v1705_v18 = vpop.f32.mrf.mxu3 }
 0x55d   : > { %v1716_v27 = vpop.f32.mrf.mxu0  ;;  %v1729_v1 = vpop.f32.mrf.mxu1 }
 0x55e   : > { %v1717_v5 = vadd.f32 %v1716_v27, %v1664_v45  ;;  %v1730_v57 = vadd.f32 %v1729_v1, %v1677_v46  ;;  %v2381_v46 = vld [vmem:[%s2690_s10 + $0x1c] sm:$0xf]  ;;  %s1970_s10 = sadd.s32 7, %s2673_s22 }
 0x55f   : > { %p1971_p1 = scmp.lt.s32.totalorder %s1970_s10, 12 }
 0x560   : > { %v1759_v33 = vadd.f32 %v1717_v5, %v3723_v10  ;;  %v1760_v58 = vadd.f32 %v1730_v57, %v3864_v19 }
 0x561   : > { %s1972_s14 = scalar_select %p1971_p1, 1, 0 }
 0x562   : > { %v2379_v61 = vmul.f32 -1.442695, %v1759_v33  ;;  %v2380_v42 = vmul.f32 -1.442695, %v1760_v58 }
 0x564   : > { %2554 = vpow2.f32 %v2379_v61  ;;  %v1742_v13 = vpop.f32.mrf.mxu2  ;;  %v1755_v41 = vpop.f32.mrf.mxu3 }
 0x565   : > { %2556 = vpow2.f32 %v2380_v42  ;;  %v1718_v56 = vpop.f32.mrf.mxu0  ;;  %v1731_v36 = vpop.f32.mrf.mxu1  ;;  %v1756_v12 = vadd.f32 %v1755_v41, %v1703_v53  ;;  %v1743_v25 = vadd.f32 %v1742_v13, %v1690_v50 }
 0x567   : > { %v1762_v32 = vadd.f32 %v1756_v12, %v3099_v22  ;;  %v1761_v51 = vadd.f32 %v1743_v25, %v3101_v54 }
 0x56a   : > { %v2555_v20 = vpop.eup %2554 }
 0x56b   : > { %v2557_v23 = vpop.eup %2556  ;;  %v1766_v49 = vadd.f32 1.0, %v2555_v20 }
 0x56c   : > { %v1785_v62 = vadd.f32 1.0, %v2557_v23  ;;  %v1757_v34 = vpop.f32.mrf.mxu3  ;;  %v1744_v48 = vpop.f32.mrf.mxu2 }
 0x56d   : > { %2558 = vrcp.f32 %v1766_v49  ;;  %v1778_v8 = vand.u32 2147483648, %v1766_v49  ;;  %v1776_v17 = vand.u32 2147483647, %v1766_v49  ;;  %vm1772_vm7 = vweird.f32 %v1766_v49 }
 0x56e   : > { %2560 = vrcp.f32 %v1785_v62  ;;  %v1797_v47 = vand.u32 2147483648, %v1785_v62  ;;  %vm1791_vm11 = vweird.f32 %v1785_v62  ;;  %v1795_v55 = vand.u32 2147483647, %v1785_v62 }
 0x56f   : > { %v1779_v30 = vor.u32 1.1754944e-38, %v1778_v8  ;;  %vm1777_vm9 = vcmp.eq.f32.partialorder %v1776_v17, 8.507059e+37 }
 0x570   : > { %v1798_v0 = vor.u32 1.1754944e-38, %v1797_v47  ;;  %vm1796_vm13 = vcmp.eq.f32.partialorder %v1795_v55, 8.507059e+37 }
 0x573   : > { %v2559_v31 = vpop.eup %2558 }
 0x574   : > { %v2561_v11 = vpop.eup %2560  ;;  %v1768_v6 = vmul.f32 %v2559_v31, %v1766_v49  ;;  %vm1773_vm6 = vweird.f32 %v2559_v31 }
 0x575   : > { %v1787_v38 = vmul.f32 %v2561_v11, %v1785_v62  ;;  %vm1774_vm8 = vmor %vm1772_vm7, %vm1773_vm6  ;;  %vm1792_vm10 = vweird.f32 %v2561_v11 }
 0x576   : > { %v1769_v44 = vsub.f32 1.0, %v1768_v6  ;;  %vm1793_vm12 = vmor %vm1791_vm11, %vm1792_vm10 }
 0x577   : > { %v1788_v4 = vsub.f32 1.0, %v1787_v38 }
 0x578   : > { %v1770_v16 = vmul.f32 %v2559_v31, %v1769_v44 }
 0x579   : > { %v1789_v24 = vmul.f32 %v2561_v11, %v1788_v4 }
 0x57a   : > { %v1771_v26 = vadd.f32 %v2559_v31, %v1770_v16 }
 0x57b   : > { %v1790_v40 = vadd.f32 %v2561_v11, %v1789_v24 }
 0x57c   : > { %v1775_v37 = vsel %vm1774_vm8, %v2559_v31, %v1771_v26 }
 0x57d   : > { %v1780_v43 = vsel %vm1777_vm9, %v1779_v30, %v1775_v37  ;;  %v1794_v63 = vsel %vm1793_vm12, %v2561_v11, %v1790_v40 }
 0x57e   : > { %v1801_v52 = vmul.f32 %v1780_v43, %v1762_v32  ;;  %v1799_v3 = vsel %vm1796_vm13, %v1798_v0, %v1794_v63 }
 0x57f   : > { %v1804_v9 = vsub.f32 1.0, %v1799_v3  ;;  %v1806_v28 = vmul.f32 %v1799_v3, %v3488_v29  ;;  %v1973_v3 = vstv %s1972_s14 }
 0x580   : > { %v1802_v59 = vadd.f32 %v1801_v52, %v1761_v51  ;;  %vm1974_vm7 = vcmp.eq.s32.totalorder %v1973_v3, 1 }
 0x582   : > { %2562 = vtanh.f32 %v1802_v59 }
 0x588   : > { %v2563_v15 = vpop.eup %2562 }
 0x589   : > { %v1805_v21 = vmul.f32 %v2563_v15, %v1804_v9 }
 0x58b   : > { %v1807_v35 = vadd.f32 %v1806_v28, %v1805_v21 }
 0x58d   : > { %v3564_v39 = vsel %vm1812_vm14, %v1807_v35, %v3488_v29 }
 0x58e   : > { %v1816_v45 = vpack.c.bf16 %v3564_v39, %v3564_v39 }
 0x590   : > { %1825 = vmatmul.bf16.vlgmr.msra.gmra.mxu0 %v1816_v45  ;;  %1838 = vmatmul.bf16.vlgmr.msra.gmra.mxu1 %v1816_v45 }
 0x591   : > { %1851 = vmatmul.bf16.vlgmr.msra.gmra.mxu2 %v1816_v45  ;;  %1864 = vmatmul.bf16.vlgmr.msra.gmra.mxu3 %v1816_v45 }
 0x5a0   : > { %1877 = vmatmul.bf16.vlgmr.msrb.gmra.mxu0 %v2381_v46  ;;  %1890 = vmatmul.bf16.vlgmr.msrb.gmra.mxu1 %v2381_v46 }
 0x5a1   : > { %1903 = vmatmul.bf16.vlgmr.msrb.gmra.mxu2 %v2381_v46  ;;  %1916 = vmatmul.bf16.vlgmr.msrb.gmra.mxu3 %v2381_v46 }
 0x60d   : > { %v1826_v50 = vpop.f32.mrf.mxu0  ;;  %v1839_v53 = vpop.f32.mrf.mxu1 }
 0x614   : > { %v1852_v60 = vpop.f32.mrf.mxu2  ;;  %v1865_v2 = vpop.f32.mrf.mxu3 }
 0x615   : > { %v1828_v7 = vpop.f32.mrf.mxu0  ;;  %v1841_v18 = vpop.f32.mrf.mxu1 }
 0x61c   : > { %v1854_v29 = vpop.f32.mrf.mxu2  ;;  %v1867_v27 = vpop.f32.mrf.mxu3 }
 0x61d   : > { %v1878_v1 = vpop.f32.mrf.mxu0  ;;  %v1891_v5 = vpop.f32.mrf.mxu1 }
 0x61e   : > { %v1879_v57 = vadd.f32 %v1878_v1, %v1826_v50  ;;  %v1892_v33 = vadd.f32 %v1891_v5, %v1839_v53 }
 0x620   : > { %v1921_v58 = vadd.f32 %v1879_v57, %v3723_v10  ;;  %v1922_v61 = vadd.f32 %v1892_v33, %v3864_v19 }
 0x622   : > { %v2382_v42 = vmul.f32 -1.442695, %v1921_v58  ;;  %v2383_v13 = vmul.f32 -1.442695, %v1922_v61 }
 0x624   : > { %2564 = vpow2.f32 %v2382_v42  ;;  %v1904_v41 = vpop.f32.mrf.mxu2  ;;  %v1917_v56 = vpop.f32.mrf.mxu3 }
 0x625   : > { %2566 = vpow2.f32 %v2383_v13  ;;  %v1880_v36 = vpop.f32.mrf.mxu0  ;;  %v1893_v20 = vpop.f32.mrf.mxu1  ;;  %v1918_v8 = vadd.f32 %v1917_v56, %v1865_v2  ;;  %v1905_v24 = vadd.f32 %v1904_v41, %v1852_v60 }
 0x627   : > { %v1924_v30 = vadd.f32 %v1918_v8, %v3099_v22  ;;  %v1923_v47 = vadd.f32 %v1905_v24, %v3101_v54 }
 0x62a   : > { %v2565_v23 = vpop.eup %2564 }
 0x62b   : > { %v2567_v49 = vpop.eup %2566  ;;  %v1928_v62 = vadd.f32 1.0, %v2565_v23 }
 0x62c   : > { %v1947_v34 = vadd.f32 1.0, %v2567_v49  ;;  %v1919_v48 = vpop.f32.mrf.mxu3  ;;  %v1906_v31 = vpop.f32.mrf.mxu2 }
 0x62d   : > { %2568 = vrcp.f32 %v1928_v62  ;;  %v1940_v4 = vand.u32 2147483648, %v1928_v62  ;;  %v1938_v16 = vand.u32 2147483647, %v1928_v62  ;;  %vm1934_vm0 = vweird.f32 %v1928_v62 }
 0x62e   : > { %2570 = vrcp.f32 %v1947_v34  ;;  %v1959_v43 = vand.u32 2147483648, %v1947_v34  ;;  %vm1953_vm4 = vweird.f32 %v1947_v34  ;;  %v1957_v52 = vand.u32 2147483647, %v1947_v34 }
 0x62f   : > { %v1941_v26 = vor.u32 1.1754944e-38, %v1940_v4  ;;  %vm1939_vm2 = vcmp.eq.f32.partialorder %v1938_v16, 8.507059e+37 }
 0x630   : > { %v1960_v63 = vor.u32 1.1754944e-38, %v1959_v43  ;;  %vm1958_vm6 = vcmp.eq.f32.partialorder %v1957_v52, 8.507059e+37 }
 0x633   : > { %v2569_v11 = vpop.eup %2568 }
 0x634   : > { %v2571_v10 = vpop.eup %2570  ;;  %v1930_v6 = vmul.f32 %v2569_v11, %v1928_v62  ;;  %vm1935_vm15 = vweird.f32 %v2569_v11 }
 0x635   : > { %v1949_v19 = vmul.f32 %v2571_v10, %v1947_v34  ;;  %vm1936_vm1 = vmor %vm1934_vm0, %vm1935_vm15  ;;  %vm1954_vm3 = vweird.f32 %v2571_v10 }
 0x636   : > { %v1931_v38 = vsub.f32 1.0, %v1930_v6  ;;  %vm1955_vm5 = vmor %vm1953_vm4, %vm1954_vm3 }
 0x637   : > { %v1950_v44 = vsub.f32 1.0, %v1949_v19 }
 0x638   : > { %v1932_v12 = vmul.f32 %v2569_v11, %v1931_v38 }
 0x639   : > { %v1951_v17 = vmul.f32 %v2571_v10, %v1950_v44 }
 0x63a   : > { %v1933_v25 = vadd.f32 %v2569_v11, %v1932_v12 }
 0x63b   : > { %v1952_v37 = vadd.f32 %v2571_v10, %v1951_v17 }
 0x63c   : > { %v1937_v32 = vsel %vm1936_vm1, %v2569_v11, %v1933_v25 }
 0x63d   : > { %v1942_v40 = vsel %vm1939_vm2, %v1941_v26, %v1937_v32  ;;  %v1956_v59 = vsel %vm1955_vm5, %v2571_v10, %v1952_v37 }
 0x63e   : > { %v1963_v51 = vmul.f32 %v1942_v40, %v1924_v30  ;;  %v1961_v22 = vsel %vm1958_vm6, %v1960_v63, %v1956_v59 }
 0x63f   : > { %v1966_v0 = vsub.f32 1.0, %v1961_v22  ;;  %v1968_v15 = vmul.f32 %v1961_v22, %v3564_v39 }
 0x640   : > { %v1964_v55 = vadd.f32 %v1963_v51, %v1923_v47 }
 0x642   : > { %2572 = vtanh.f32 %v1964_v55 }
 0x648   : > { %v2573_v9 = vpop.eup %2572 }
 0x649   : > { %v1967_v14 = vmul.f32 %v2573_v9, %v1966_v0 }
 0x64a   : > { %1980 = sbr.rel (%p2384_p2) target bundleno = 1623 (0x657), region = 44 }
 0x64b   : > { %v1969_v54 = vadd.f32 %v1968_v15, %v1967_v14 }
 0x64d   : > { %v1975_v21 = vsel %vm1974_vm7, %v1969_v54, %v3564_v39 }
 0x64e   : > { %1976 = vst [vmem:[#allocation2] sm:$0xff] %v1975_v21 }
 0x655   : > { %v1981_v28 = vld [vmem:[#allocation2] sm:$0xff] }
 0x656   : > { %1982 = vst [vmem:[%s2700_s26] sm:$0xff] %v1981_v28 }
 0x657 PF: > { %s14_s19 = sadd.s32 1, %s2612_s19   ;;  %s3865_s15 = smov %s2604_s17 }
 0x658   : > { %p11_p3 = scmp.ge.s32.totalorder %s14_s19, 6   ;;  %s3866_s16 = smov %s2608_s18 }
 0x659   : > { %s3867_s17 = smov %s3870_s20  ;;  %s3868_s18 = smov %s3874_s21 }
 0x65a   :  { %13 = sbr.rel (!%p11_p3) target bundleno = 3 (0x3), region = 90 }

</bundles_post_ra>
